<compile_context>
chip_gen: v7x
topology: tpu7x:2x2x1
jax: 0.10.0
libtpu: 0.0.40
codegen_flags: <defaults>
</compile_context>

<pallas_src>
import jax
import jax.numpy as jnp
import numpy as np
from jax.experimental import pallas as pl
from jax.experimental.pallas import tpu as pltpu

# Channel / kernel-size schedule from the module's __init__ (enc_canale + dec_stem).
CHANNELS = [8, 12, 18, 25, 30, 45, 60, 75, 61, 41, 25, 19, 12, 3]
KSIZES   = [1, 3, 5, 7, 7, 9, 13, 13, 13, 9, 9, 7, 7]
NUM_LAYERS = len(KSIZES)                 # 13
CPAD = 128                               # channel (lane) padding for activations/Cout
W_OUT = 2                                # forward returns x[:, :, :2]
PADH = 8                                 # halo rows per side; >= max (K-1)//2 == 6,
                                         # chosen so PADH*W_OUT == 16 is sublane-aligned
NB_PAD = 16                              # bias rows padded to a sublane multiple


def _round8(n):
    return (n + 7) // 8 * 8


# Static packing schedule: per layer (K, Cin, round8(Cin), per-tap row offsets
# into the packed weight tensor).  Computed once at import time.
_LAYER_SCHED = []
_row = 0
for _cin, _cout, _k in zip(CHANNELS[:-1], CHANNELS[1:], KSIZES):
    _cin_pad = _round8(_cin)
    _offs = tuple(_row + t * _cin_pad for t in range(_k))
    _LAYER_SCHED.append((_k, _cin, _cin_pad, _offs))
    _row += _k * _cin_pad
W_ROWS = _row                            # 4760 packed weight rows (multiple of 8)


def _make_fused_kernel(H, W):
    """Kernel running all 13 'same' 1-D convs on VMEM-resident activations."""
    HW = H * W                           # rows per activation (interleaved h*W + w)
    INT = PADH * W                       # first interior row of the padded slab

    def kernel(x_ref, w_ref, b_ref, o_ref, buf_a, buf_b):
        # x_ref: (H*W, 128)      input, channels zero-padded on lanes
        # w_ref: (W_ROWS, 128)   compactly packed per-tap weights (see pack_params)
        # b_ref: (NB_PAD, 128)   per-layer biases, zero-padded
        # o_ref: (H*W, 128)      last layer's activations (lane-dense)
        # buf_a/buf_b: ((H+2*PADH)*W, 128) ping-pong slabs with zero halos.
        buf_a[...] = jnp.zeros_like(buf_a)
        buf_b[...] = jnp.zeros_like(buf_b)
        buf_a[INT:INT + HW, :] = x_ref[...]

        bufs = (buf_a, buf_b)
        for l, (k_size, cin, cin_pad, offs) in enumerate(_LAYER_SCHED):
            src = bufs[l % 2]
            dst = bufs[(l + 1) % 2]
            p = (k_size - 1) // 2                      # odd K -> symmetric 'same' pad
            acc = jnp.zeros((HW, CPAD), jnp.float32)
            for t in range(k_size):                    # static tap loop (103 matmuls)
                # A shift of t rows along H is a shift of t*W interleaved rows;
                # halo rows are zero, giving exact 'same' zero padding.
                row0 = (PADH - p + t) * W
                lhs = src[row0:row0 + HW, 0:cin_pad]   # (HW, cin_pad); extra lanes are 0
                rhs = w_ref[offs[t]:offs[t] + cin_pad, :]  # (cin_pad, 128) compact tap
                acc = acc + jnp.dot(lhs, rhs, preferred_element_type=jnp.float32)
            out = acc + b_ref[pl.ds(l, 1), :]
            if l == NUM_LAYERS - 1:
                o_ref[...] = out                       # skip the last slab round-trip
            else:
                dst[INT:INT + HW, :] = out

    return kernel


def fused_forward_call(x2d, w_packed, b_packed, *, H, W):
    HW = H * W
    slab_rows = (H + 2 * PADH) * W
    return pl.pallas_call(
        _make_fused_kernel(H, W),
        out_shape=jax.ShapeDtypeStruct((HW, CPAD), jnp.float32),
        in_specs=[
            pl.BlockSpec((HW, CPAD), lambda: (0, 0)),
            pl.BlockSpec((W_ROWS, CPAD), lambda: (0, 0)),
            pl.BlockSpec((NB_PAD, CPAD), lambda: (0, 0)),
        ],
        out_specs=pl.BlockSpec((HW, CPAD), lambda: (0, 0)),
        scratch_shapes=[
            pltpu.VMEM((slab_rows, CPAD), jnp.float32),
            pltpu.VMEM((slab_rows, CPAD), jnp.float32),
        ],
        compiler_params=pltpu.CompilerParams(
            vmem_limit_bytes=32 * 1024 * 1024),        # safe on v5e/v6e/v7x
    )(x2d, w_packed, b_packed)


# ---- parameter construction / one-time packing (host-side, done once) -------
def init_params(key):
    """Deterministic synthetic weights (PyTorch-conv-like uniform init)."""
    params = []
    for cin, cout, k in zip(CHANNELS[:-1], CHANNELS[1:], KSIZES):
        key, kw, kb = jax.random.split(key, 3)
        bound = 1.0 / np.sqrt(cin * k)
        w = jax.random.uniform(kw, (k, cin, cout), jnp.float32, -bound, bound)
        b = jax.random.uniform(kb, (cout,), jnp.float32, -bound, bound)
        params.append((w, b))
    return params


def pack_params(params):
    """Pack raw (K, Cin, Cout) taps into one compact (W_ROWS, 128) tensor + biases.

    Done ONCE at init (not per forward).  Each tap occupies round8(Cin) rows
    (Cout zero-padded on lanes to 128); no 128x128 padding, no kron expansion.
    """
    w_packed = np.zeros((W_ROWS, CPAD), np.float32)
    b_packed = np.zeros((NB_PAD, CPAD), np.float32)
    for l, (w, b) in enumerate(params):
        k, cin, cout = w.shape
        _, _, _, offs = _LAYER_SCHED[l]
        for t in range(k):
            w_packed[offs[t]:offs[t] + cin, :cout] = np.asarray(w[t])
        b_packed[l, :cout] = np.asarray(b)
    return jnp.asarray(w_packed), jnp.asarray(b_packed)


# ---- forward pass ------------------------------------------------------------
@jax.jit
def audio_model_forward(x, w_packed, b_packed):
    """x: (H, W, 8) float32 -> (3, H, 2) float32, matching the PyTorch forward."""
    H, w_full, cin0 = x.shape
    W = W_OUT
    # The (k,1) convs never mix across W, so only the first 2 columns can reach
    # the (3, H, 2) output -> slice them up front (exact, checked vs reference).
    xs = x[:, :W, :].reshape(H * W, cin0)               # rows interleaved h*W + w
    x2d = jnp.zeros((H * W, CPAD), jnp.float32).at[:, :cin0].set(xs)
    out2d = fused_forward_call(x2d, w_packed, b_packed, H=H, W=W)
    y = out2d.reshape(H, W, CPAD)[:, :, :CHANNELS[-1]]  # (H, 2, 3)
    return jnp.transpose(y, (2, 0, 1))                  # (3, H, 2)  == x[:, :, :2]


# ---- pure-JAX reference (full W; for correctness check only) -----------------
def _conv1d_same_ref(x, w, b):
    H, W, Cin = x.shape
    K, _, Cout = w.shape
    pad = (K - 1) // 2
    xp = jnp.pad(x, ((pad, pad), (0, 0), (0, 0)))
    y = jnp.zeros((H, W, Cout), jnp.float32)
    for k in range(K):
        y = y + jnp.einsum('hwc,cd->hwd', xp[k:k + H], w[k])
    return y + b


def _ref_forward(x, params):
    h = x
    for w, b in params:
        h = _conv1d_same_ref(h, w, b)
    return jnp.transpose(h, (2, 0, 1))[:, :, :2]


if __name__ == "__main__":
    key = jax.random.PRNGKey(0)
    kx, kp = jax.random.split(key)

    H, W, C = 16, 4, 8                      # small shapes consistent with the module
    x = jax.random.normal(kx, (H, W, C), jnp.float32)
    params = init_params(kp)
    w_packed, b_packed = pack_params(params)   # one-time packing, reused every call

    out = audio_model_forward(x, w_packed, b_packed)
    out = jax.block_until_ready(out)
    assert out.shape == (3, H, 2), out.shape

    # Reference runs the FULL W=4 network and slices at the end, validating
    # that slicing W up front in the kernel is exact.
    ref = jax.block_until_ready(_ref_forward(x, params))
    np.testing.assert_allclose(np.asarray(out), np.asarray(ref), rtol=1e-4, atol=1e-4)

    print("KERNEL_OK")
</pallas_src>

<mosaic_0001>
module attributes {stable_mosaic.version = 11 : i64} {
  func.func @kernel(%arg0: memref<32x128xf32, #tpu.memory_space<vmem>>, %arg1: memref<4760x128xf32, #tpu.memory_space<vmem>>, %arg2: memref<16x128xf32, #tpu.memory_space<vmem>>, %arg3: memref<32x128xf32, #tpu.memory_space<vmem>>, %arg4: memref<64x128xf32, #tpu.memory_space<vmem>>, %arg5: memref<64x128xf32, #tpu.memory_space<vmem>>) attributes {dimension_semantics = [], scalar_prefetch = 0 : i64, scratch_operands = 2 : i64, tpu.core_type = #tpu.core_type<tc>} {
    %cst = arith.constant 0.000000e+00 : f32
    %0 = vector.broadcast %cst : f32 to vector<64x128xf32>
    %c0 = arith.constant 0 : index
    %c0_0 = arith.constant 0 : index
    %1 = vector.load %arg4[%c0, %c0_0] : memref<64x128xf32, #tpu.memory_space<vmem>>, vector<64x128xf32>
    tpu.vector_store %arg4[%c0, %c0_0], %0 {strides = array<i32>} : memref<64x128xf32, #tpu.memory_space<vmem>>, vector<64x128xf32>,
    %cst_1 = arith.constant 0.000000e+00 : f32
    %2 = vector.broadcast %cst_1 : f32 to vector<64x128xf32>
    %c0_2 = arith.constant 0 : index
    %c0_3 = arith.constant 0 : index
    %3 = vector.load %arg5[%c0_2, %c0_3] : memref<64x128xf32, #tpu.memory_space<vmem>>, vector<64x128xf32>
    tpu.vector_store %arg5[%c0_2, %c0_3], %2 {strides = array<i32>} : memref<64x128xf32, #tpu.memory_space<vmem>>, vector<64x128xf32>,
    %c0_4 = arith.constant 0 : index
    %c0_5 = arith.constant 0 : index
    %4 = vector.load %arg0[%c0_4, %c0_5] : memref<32x128xf32, #tpu.memory_space<vmem>>, vector<32x128xf32>
    %c16 = arith.constant 16 : index
    %c0_6 = arith.constant 0 : index
    %5 = vector.load %arg4[%c16, %c0_6] : memref<64x128xf32, #tpu.memory_space<vmem>>, vector<32x128xf32>
    tpu.vector_store %arg4[%c16, %c0_6], %4 {strides = array<i32>} : memref<64x128xf32, #tpu.memory_space<vmem>>, vector<32x128xf32>,
    %cst_7 = arith.constant 0.000000e+00 : f32
    %6 = vector.broadcast %cst_7 : f32 to vector<32x128xf32>
    %c16_8 = arith.constant 16 : index
    %c0_9 = arith.constant 0 : index
    %7 = vector.load %arg4[%c16_8, %c0_9] : memref<64x128xf32, #tpu.memory_space<vmem>>, vector<32x8xf32>
    %c0_10 = arith.constant 0 : index
    %c0_11 = arith.constant 0 : index
    %8 = vector.load %arg1[%c0_10, %c0_11] : memref<4760x128xf32, #tpu.memory_space<vmem>>, vector<8x128xf32>
    %cst_12 = arith.constant dense<0.000000e+00> : vector<32x128xf32>
    %9 = tpu.matmul %7, %8, %cst_12 {dimension_numbers = #tpu.dot_dimension_numbers<[1], [0], [0], [1], [0, 0, 1, 1], [], []>} : vector<32x8xf32>, vector<8x128xf32>, vector<32x128xf32> -> vector<32x128xf32>
    %10 = arith.addf %6, %9 : vector<32x128xf32>
    %c0_13 = arith.constant 0 : index
    %c0_14 = arith.constant 0 : index
    %11 = vector.load %arg2[%c0_13, %c0_14] : memref<16x128xf32, #tpu.memory_space<vmem>>, vector<1x128xf32>
    %12 = vector.broadcast %11 : vector<1x128xf32> to vector<32x128xf32>
    %13 = arith.addf %10, %12 : vector<32x128xf32>
    %c16_15 = arith.constant 16 : index
    %c0_16 = arith.constant 0 : index
    %14 = vector.load %arg5[%c16_15, %c0_16] : memref<64x128xf32, #tpu.memory_space<vmem>>, vector<32x128xf32>
    tpu.vector_store %arg5[%c16_15, %c0_16], %13 {strides = array<i32>} : memref<64x128xf32, #tpu.memory_space<vmem>>, vector<32x128xf32>,
    %cst_17 = arith.constant 0.000000e+00 : f32
    %15 = vector.broadcast %cst_17 : f32 to vector<32x128xf32>
    %c14 = arith.constant 14 : index
    %c0_18 = arith.constant 0 : index
    %16 = vector.load %arg5[%c14, %c0_18] : memref<64x128xf32, #tpu.memory_space<vmem>>, vector<32x16xf32>
    %c8 = arith.constant 8 : index
    %c0_19 = arith.constant 0 : index
    %17 = vector.load %arg1[%c8, %c0_19] : memref<4760x128xf32, #tpu.memory_space<vmem>>, vector<16x128xf32>
    %cst_20 = arith.constant dense<0.000000e+00> : vector<32x128xf32>
    %18 = tpu.matmul %16, %17, %cst_20 {dimension_numbers = #tpu.dot_dimension_numbers<[1], [0], [0], [1], [0, 0, 1, 1], [], []>} : vector<32x16xf32>, vector<16x128xf32>, vector<32x128xf32> -> vector<32x128xf32>
    %19 = arith.addf %15, %18 : vector<32x128xf32>
    %c16_21 = arith.constant 16 : index
    %c0_22 = arith.constant 0 : index
    %20 = vector.load %arg5[%c16_21, %c0_22] : memref<64x128xf32, #tpu.memory_space<vmem>>, vector<32x16xf32>
    %c24 = arith.constant 24 : index
    %c0_23 = arith.constant 0 : index
    %21 = vector.load %arg1[%c24, %c0_23] : memref<4760x128xf32, #tpu.memory_space<vmem>>, vector<16x128xf32>
    %cst_24 = arith.constant dense<0.000000e+00> : vector<32x128xf32>
    %22 = tpu.matmul %20, %21, %cst_24 {dimension_numbers = #tpu.dot_dimension_numbers<[1], [0], [0], [1], [0, 0, 1, 1], [], []>} : vector<32x16xf32>, vector<16x128xf32>, vector<32x128xf32> -> vector<32x128xf32>
    %23 = arith.addf %19, %22 : vector<32x128xf32>
    %c18 = arith.constant 18 : index
    %c0_25 = arith.constant 0 : index
    %24 = vector.load %arg5[%c18, %c0_25] : memref<64x128xf32, #tpu.memory_space<vmem>>, vector<32x16xf32>
    %c40 = arith.constant 40 : index
    %c0_26 = arith.constant 0 : index
    %25 = vector.load %arg1[%c40, %c0_26] : memref<4760x128xf32, #tpu.memory_space<vmem>>, vector<16x128xf32>
    %cst_27 = arith.constant dense<0.000000e+00> : vector<32x128xf32>
    %26 = tpu.matmul %24, %25, %cst_27 {dimension_numbers = #tpu.dot_dimension_numbers<[1], [0], [0], [1], [0, 0, 1, 1], [], []>} : vector<32x16xf32>, vector<16x128xf32>, vector<32x128xf32> -> vector<32x128xf32>
    %27 = arith.addf %23, %26 : vector<32x128xf32>
    %c1 = arith.constant 1 : index
    %c0_28 = arith.constant 0 : index
    %28 = vector.load %arg2[%c1, %c0_28] : memref<16x128xf32, #tpu.memory_space<vmem>>, vector<1x128xf32>
    %29 = vector.broadcast %28 : vector<1x128xf32> to vector<32x128xf32>
    %30 = arith.addf %27, %29 : vector<32x128xf32>
    %c16_29 = arith.constant 16 : index
    %c0_30 = arith.constant 0 : index
    %31 = vector.load %arg4[%c16_29, %c0_30] : memref<64x128xf32, #tpu.memory_space<vmem>>, vector<32x128xf32>
    tpu.vector_store %arg4[%c16_29, %c0_30], %30 {strides = array<i32>} : memref<64x128xf32, #tpu.memory_space<vmem>>, vector<32x128xf32>,
    %cst_31 = arith.constant 0.000000e+00 : f32
    %32 = vector.broadcast %cst_31 : f32 to vector<32x128xf32>
    %c12 = arith.constant 12 : index
    %c0_32 = arith.constant 0 : index
    %33 = vector.load %arg4[%c12, %c0_32] : memref<64x128xf32, #tpu.memory_space<vmem>>, vector<32x24xf32>
    %c56 = arith.constant 56 : index
    %c0_33 = arith.constant 0 : index
    %34 = vector.load %arg1[%c56, %c0_33] : memref<4760x128xf32, #tpu.memory_space<vmem>>, vector<24x128xf32>
    %cst_34 = arith.constant dense<0.000000e+00> : vector<32x128xf32>
    %35 = tpu.matmul %33, %34, %cst_34 {dimension_numbers = #tpu.dot_dimension_numbers<[1], [0], [0], [1], [0, 0, 1, 1], [], []>} : vector<32x24xf32>, vector<24x128xf32>, vector<32x128xf32> -> vector<32x128xf32>
    %36 = arith.addf %32, %35 : vector<32x128xf32>
    %c14_35 = arith.constant 14 : index
    %c0_36 = arith.constant 0 : index
    %37 = vector.load %arg4[%c14_35, %c0_36] : memref<64x128xf32, #tpu.memory_space<vmem>>, vector<32x24xf32>
    %c80 = arith.constant 80 : index
    %c0_37 = arith.constant 0 : index
    %38 = vector.load %arg1[%c80, %c0_37] : memref<4760x128xf32, #tpu.memory_space<vmem>>, vector<24x128xf32>
    %cst_38 = arith.constant dense<0.000000e+00> : vector<32x128xf32>
    %39 = tpu.matmul %37, %38, %cst_38 {dimension_numbers = #tpu.dot_dimension_numbers<[1], [0], [0], [1], [0, 0, 1, 1], [], []>} : vector<32x24xf32>, vector<24x128xf32>, vector<32x128xf32> -> vector<32x128xf32>
    %40 = arith.addf %36, %39 : vector<32x128xf32>
    %c16_39 = arith.constant 16 : index
    %c0_40 = arith.constant 0 : index
    %41 = vector.load %arg4[%c16_39, %c0_40] : memref<64x128xf32, #tpu.memory_space<vmem>>, vector<32x24xf32>
    %c104 = arith.constant 104 : index
    %c0_41 = arith.constant 0 : index
    %42 = vector.load %arg1[%c104, %c0_41] : memref<4760x128xf32, #tpu.memory_space<vmem>>, vector<24x128xf32>
    %cst_42 = arith.constant dense<0.000000e+00> : vector<32x128xf32>
    %43 = tpu.matmul %41, %42, %cst_42 {dimension_numbers = #tpu.dot_dimension_numbers<[1], [0], [0], [1], [0, 0, 1, 1], [], []>} : vector<32x24xf32>, vector<24x128xf32>, vector<32x128xf32> -> vector<32x128xf32>
    %44 = arith.addf %40, %43 : vector<32x128xf32>
    %c18_43 = arith.constant 18 : index
    %c0_44 = arith.constant 0 : index
    %45 = vector.load %arg4[%c18_43, %c0_44] : memref<64x128xf32, #tpu.memory_space<vmem>>, vector<32x24xf32>
    %c128 = arith.constant 128 : index
    %c0_45 = arith.constant 0 : index
    %46 = vector.load %arg1[%c128, %c0_45] : memref<4760x128xf32, #tpu.memory_space<vmem>>, vector<24x128xf32>
    %cst_46 = arith.constant dense<0.000000e+00> : vector<32x128xf32>
    %47 = tpu.matmul %45, %46, %cst_46 {dimension_numbers = #tpu.dot_dimension_numbers<[1], [0], [0], [1], [0, 0, 1, 1], [], []>} : vector<32x24xf32>, vector<24x128xf32>, vector<32x128xf32> -> vector<32x128xf32>
    %48 = arith.addf %44, %47 : vector<32x128xf32>
    %c20 = arith.constant 20 : index
    %c0_47 = arith.constant 0 : index
    %49 = vector.load %arg4[%c20, %c0_47] : memref<64x128xf32, #tpu.memory_space<vmem>>, vector<32x24xf32>
    %c152 = arith.constant 152 : index
    %c0_48 = arith.constant 0 : index
    %50 = vector.load %arg1[%c152, %c0_48] : memref<4760x128xf32, #tpu.memory_space<vmem>>, vector<24x128xf32>
    %cst_49 = arith.constant dense<0.000000e+00> : vector<32x128xf32>
    %51 = tpu.matmul %49, %50, %cst_49 {dimension_numbers = #tpu.dot_dimension_numbers<[1], [0], [0], [1], [0, 0, 1, 1], [], []>} : vector<32x24xf32>, vector<24x128xf32>, vector<32x128xf32> -> vector<32x128xf32>
    %52 = arith.addf %48, %51 : vector<32x128xf32>
    %c2 = arith.constant 2 : index
    %c0_50 = arith.constant 0 : index
    %53 = vector.load %arg2[%c2, %c0_50] : memref<16x128xf32, #tpu.memory_space<vmem>>, vector<1x128xf32>
    %54 = vector.broadcast %53 : vector<1x128xf32> to vector<32x128xf32>
    %55 = arith.addf %52, %54 : vector<32x128xf32>
    %c16_51 = arith.constant 16 : index
    %c0_52 = arith.constant 0 : index
    %56 = vector.load %arg5[%c16_51, %c0_52] : memref<64x128xf32, #tpu.memory_space<vmem>>, vector<32x128xf32>
    tpu.vector_store %arg5[%c16_51, %c0_52], %55 {strides = array<i32>} : memref<64x128xf32, #tpu.memory_space<vmem>>, vector<32x128xf32>,
    %cst_53 = arith.constant 0.000000e+00 : f32
    %57 = vector.broadcast %cst_53 : f32 to vector<32x128xf32>
    %c10 = arith.constant 10 : index
    %c0_54 = arith.constant 0 : index
    %58 = vector.load %arg5[%c10, %c0_54] : memref<64x128xf32, #tpu.memory_space<vmem>>, vector<32x32xf32>
    %c176 = arith.constant 176 : index
    %c0_55 = arith.constant 0 : index
    %59 = vector.load %arg1[%c176, %c0_55] : memref<4760x128xf32, #tpu.memory_space<vmem>>, vector<32x128xf32>
    %cst_56 = arith.constant dense<0.000000e+00> : vector<32x128xf32>
    %60 = tpu.matmul %58, %59, %cst_56 {dimension_numbers = #tpu.dot_dimension_numbers<[1], [0], [0], [1], [0, 0, 1, 1], [], []>} : vector<32x32xf32>, vector<32x128xf32>, vector<32x128xf32> -> vector<32x128xf32>
    %61 = arith.addf %57, %60 : vector<32x128xf32>
    %c12_57 = arith.constant 12 : index
    %c0_58 = arith.constant 0 : index
    %62 = vector.load %arg5[%c12_57, %c0_58] : memref<64x128xf32, #tpu.memory_space<vmem>>, vector<32x32xf32>
    %c208 = arith.constant 208 : index
    %c0_59 = arith.constant 0 : index
    %63 = vector.load %arg1[%c208, %c0_59] : memref<4760x128xf32, #tpu.memory_space<vmem>>, vector<32x128xf32>
    %cst_60 = arith.constant dense<0.000000e+00> : vector<32x128xf32>
    %64 = tpu.matmul %62, %63, %cst_60 {dimension_numbers = #tpu.dot_dimension_numbers<[1], [0], [0], [1], [0, 0, 1, 1], [], []>} : vector<32x32xf32>, vector<32x128xf32>, vector<32x128xf32> -> vector<32x128xf32>
    %65 = arith.addf %61, %64 : vector<32x128xf32>
    %c14_61 = arith.constant 14 : index
    %c0_62 = arith.constant 0 : index
    %66 = vector.load %arg5[%c14_61, %c0_62] : memref<64x128xf32, #tpu.memory_space<vmem>>, vector<32x32xf32>
    %c240 = arith.constant 240 : index
    %c0_63 = arith.constant 0 : index
    %67 = vector.load %arg1[%c240, %c0_63] : memref<4760x128xf32, #tpu.memory_space<vmem>>, vector<32x128xf32>
    %cst_64 = arith.constant dense<0.000000e+00> : vector<32x128xf32>
    %68 = tpu.matmul %66, %67, %cst_64 {dimension_numbers = #tpu.dot_dimension_numbers<[1], [0], [0], [1], [0, 0, 1, 1], [], []>} : vector<32x32xf32>, vector<32x128xf32>, vector<32x128xf32> -> vector<32x128xf32>
    %69 = arith.addf %65, %68 : vector<32x128xf32>
    %c16_65 = arith.constant 16 : index
    %c0_66 = arith.constant 0 : index
    %70 = vector.load %arg5[%c16_65, %c0_66] : memref<64x128xf32, #tpu.memory_space<vmem>>, vector<32x32xf32>
    %c272 = arith.constant 272 : index
    %c0_67 = arith.constant 0 : index
    %71 = vector.load %arg1[%c272, %c0_67] : memref<4760x128xf32, #tpu.memory_space<vmem>>, vector<32x128xf32>
    %cst_68 = arith.constant dense<0.000000e+00> : vector<32x128xf32>
    %72 = tpu.matmul %70, %71, %cst_68 {dimension_numbers = #tpu.dot_dimension_numbers<[1], [0], [0], [1], [0, 0, 1, 1], [], []>} : vector<32x32xf32>, vector<32x128xf32>, vector<32x128xf32> -> vector<32x128xf32>
    %73 = arith.addf %69, %72 : vector<32x128xf32>
    %c18_69 = arith.constant 18 : index
    %c0_70 = arith.constant 0 : index
    %74 = vector.load %arg5[%c18_69, %c0_70] : memref<64x128xf32, #tpu.memory_space<vmem>>, vector<32x32xf32>
    %c304 = arith.constant 304 : index
    %c0_71 = arith.constant 0 : index
    %75 = vector.load %arg1[%c304, %c0_71] : memref<4760x128xf32, #tpu.memory_space<vmem>>, vector<32x128xf32>
    %cst_72 = arith.constant dense<0.000000e+00> : vector<32x128xf32>
    %76 = tpu.matmul %74, %75, %cst_72 {dimension_numbers = #tpu.dot_dimension_numbers<[1], [0], [0], [1], [0, 0, 1, 1], [], []>} : vector<32x32xf32>, vector<32x128xf32>, vector<32x128xf32> -> vector<32x128xf32>
    %77 = arith.addf %73, %76 : vector<32x128xf32>
    %c20_73 = arith.constant 20 : index
    %c0_74 = arith.constant 0 : index
    %78 = vector.load %arg5[%c20_73, %c0_74] : memref<64x128xf32, #tpu.memory_space<vmem>>, vector<32x32xf32>
    %c336 = arith.constant 336 : index
    %c0_75 = arith.constant 0 : index
    %79 = vector.load %arg1[%c336, %c0_75] : memref<4760x128xf32, #tpu.memory_space<vmem>>, vector<32x128xf32>
    %cst_76 = arith.constant dense<0.000000e+00> : vector<32x128xf32>
    %80 = tpu.matmul %78, %79, %cst_76 {dimension_numbers = #tpu.dot_dimension_numbers<[1], [0], [0], [1], [0, 0, 1, 1], [], []>} : vector<32x32xf32>, vector<32x128xf32>, vector<32x128xf32> -> vector<32x128xf32>
    %81 = arith.addf %77, %80 : vector<32x128xf32>
    %c22 = arith.constant 22 : index
    %c0_77 = arith.constant 0 : index
    %82 = vector.load %arg5[%c22, %c0_77] : memref<64x128xf32, #tpu.memory_space<vmem>>, vector<32x32xf32>
    %c368 = arith.constant 368 : index
    %c0_78 = arith.constant 0 : index
    %83 = vector.load %arg1[%c368, %c0_78] : memref<4760x128xf32, #tpu.memory_space<vmem>>, vector<32x128xf32>
    %cst_79 = arith.constant dense<0.000000e+00> : vector<32x128xf32>
    %84 = tpu.matmul %82, %83, %cst_79 {dimension_numbers = #tpu.dot_dimension_numbers<[1], [0], [0], [1], [0, 0, 1, 1], [], []>} : vector<32x32xf32>, vector<32x128xf32>, vector<32x128xf32> -> vector<32x128xf32>
    %85 = arith.addf %81, %84 : vector<32x128xf32>
    %c3 = arith.constant 3 : index
    %c0_80 = arith.constant 0 : index
    %86 = vector.load %arg2[%c3, %c0_80] : memref<16x128xf32, #tpu.memory_space<vmem>>, vector<1x128xf32>
    %87 = vector.broadcast %86 : vector<1x128xf32> to vector<32x128xf32>
    %88 = arith.addf %85, %87 : vector<32x128xf32>
    %c16_81 = arith.constant 16 : index
    %c0_82 = arith.constant 0 : index
    %89 = vector.load %arg4[%c16_81, %c0_82] : memref<64x128xf32, #tpu.memory_space<vmem>>, vector<32x128xf32>
    tpu.vector_store %arg4[%c16_81, %c0_82], %88 {strides = array<i32>} : memref<64x128xf32, #tpu.memory_space<vmem>>, vector<32x128xf32>,
    %cst_83 = arith.constant 0.000000e+00 : f32
    %90 = vector.broadcast %cst_83 : f32 to vector<32x128xf32>
    %c10_84 = arith.constant 10 : index
    %c0_85 = arith.constant 0 : index
    %91 = vector.load %arg4[%c10_84, %c0_85] : memref<64x128xf32, #tpu.memory_space<vmem>>, vector<32x32xf32>
    %c400 = arith.constant 400 : index
    %c0_86 = arith.constant 0 : index
    %92 = vector.load %arg1[%c400, %c0_86] : memref<4760x128xf32, #tpu.memory_space<vmem>>, vector<32x128xf32>
    %cst_87 = arith.constant dense<0.000000e+00> : vector<32x128xf32>
    %93 = tpu.matmul %91, %92, %cst_87 {dimension_numbers = #tpu.dot_dimension_numbers<[1], [0], [0], [1], [0, 0, 1, 1], [], []>} : vector<32x32xf32>, vector<32x128xf32>, vector<32x128xf32> -> vector<32x128xf32>
    %94 = arith.addf %90, %93 : vector<32x128xf32>
    %c12_88 = arith.constant 12 : index
    %c0_89 = arith.constant 0 : index
    %95 = vector.load %arg4[%c12_88, %c0_89] : memref<64x128xf32, #tpu.memory_space<vmem>>, vector<32x32xf32>
    %c432 = arith.constant 432 : index
    %c0_90 = arith.constant 0 : index
    %96 = vector.load %arg1[%c432, %c0_90] : memref<4760x128xf32, #tpu.memory_space<vmem>>, vector<32x128xf32>
    %cst_91 = arith.constant dense<0.000000e+00> : vector<32x128xf32>
    %97 = tpu.matmul %95, %96, %cst_91 {dimension_numbers = #tpu.dot_dimension_numbers<[1], [0], [0], [1], [0, 0, 1, 1], [], []>} : vector<32x32xf32>, vector<32x128xf32>, vector<32x128xf32> -> vector<32x128xf32>
    %98 = arith.addf %94, %97 : vector<32x128xf32>
    %c14_92 = arith.constant 14 : index
    %c0_93 = arith.constant 0 : index
    %99 = vector.load %arg4[%c14_92, %c0_93] : memref<64x128xf32, #tpu.memory_space<vmem>>, vector<32x32xf32>
    %c464 = arith.constant 464 : index
    %c0_94 = arith.constant 0 : index
    %100 = vector.load %arg1[%c464, %c0_94] : memref<4760x128xf32, #tpu.memory_space<vmem>>, vector<32x128xf32>
    %cst_95 = arith.constant dense<0.000000e+00> : vector<32x128xf32>
    %101 = tpu.matmul %99, %100, %cst_95 {dimension_numbers = #tpu.dot_dimension_numbers<[1], [0], [0], [1], [0, 0, 1, 1], [], []>} : vector<32x32xf32>, vector<32x128xf32>, vector<32x128xf32> -> vector<32x128xf32>
    %102 = arith.addf %98, %101 : vector<32x128xf32>
    %c16_96 = arith.constant 16 : index
    %c0_97 = arith.constant 0 : index
    %103 = vector.load %arg4[%c16_96, %c0_97] : memref<64x128xf32, #tpu.memory_space<vmem>>, vector<32x32xf32>
    %c496 = arith.constant 496 : index
    %c0_98 = arith.constant 0 : index
    %104 = vector.load %arg1[%c496, %c0_98] : memref<4760x128xf32, #tpu.memory_space<vmem>>, vector<32x128xf32>
    %cst_99 = arith.constant dense<0.000000e+00> : vector<32x128xf32>
    %105 = tpu.matmul %103, %104, %cst_99 {dimension_numbers = #tpu.dot_dimension_numbers<[1], [0], [0], [1], [0, 0, 1, 1], [], []>} : vector<32x32xf32>, vector<32x128xf32>, vector<32x128xf32> -> vector<32x128xf32>
    %106 = arith.addf %102, %105 : vector<32x128xf32>
    %c18_100 = arith.constant 18 : index
    %c0_101 = arith.constant 0 : index
    %107 = vector.load %arg4[%c18_100, %c0_101] : memref<64x128xf32, #tpu.memory_space<vmem>>, vector<32x32xf32>
    %c528 = arith.constant 528 : index
    %c0_102 = arith.constant 0 : index
    %108 = vector.load %arg1[%c528, %c0_102] : memref<4760x128xf32, #tpu.memory_space<vmem>>, vector<32x128xf32>
    %cst_103 = arith.constant dense<0.000000e+00> : vector<32x128xf32>
    %109 = tpu.matmul %107, %108, %cst_103 {dimension_numbers = #tpu.dot_dimension_numbers<[1], [0], [0], [1], [0, 0, 1, 1], [], []>} : vector<32x32xf32>, vector<32x128xf32>, vector<32x128xf32> -> vector<32x128xf32>
    %110 = arith.addf %106, %109 : vector<32x128xf32>
    %c20_104 = arith.constant 20 : index
    %c0_105 = arith.constant 0 : index
    %111 = vector.load %arg4[%c20_104, %c0_105] : memref<64x128xf32, #tpu.memory_space<vmem>>, vector<32x32xf32>
    %c560 = arith.constant 560 : index
    %c0_106 = arith.constant 0 : index
    %112 = vector.load %arg1[%c560, %c0_106] : memref<4760x128xf32, #tpu.memory_space<vmem>>, vector<32x128xf32>
    %cst_107 = arith.constant dense<0.000000e+00> : vector<32x128xf32>
    %113 = tpu.matmul %111, %112, %cst_107 {dimension_numbers = #tpu.dot_dimension_numbers<[1], [0], [0], [1], [0, 0, 1, 1], [], []>} : vector<32x32xf32>, vector<32x128xf32>, vector<32x128xf32> -> vector<32x128xf32>
    %114 = arith.addf %110, %113 : vector<32x128xf32>
    %c22_108 = arith.constant 22 : index
    %c0_109 = arith.constant 0 : index
    %115 = vector.load %arg4[%c22_108, %c0_109] : memref<64x128xf32, #tpu.memory_space<vmem>>, vector<32x32xf32>
    %c592 = arith.constant 592 : index
    %c0_110 = arith.constant 0 : index
    %116 = vector.load %arg1[%c592, %c0_110] : memref<4760x128xf32, #tpu.memory_space<vmem>>, vector<32x128xf32>
    %cst_111 = arith.constant dense<0.000000e+00> : vector<32x128xf32>
    %117 = tpu.matmul %115, %116, %cst_111 {dimension_numbers = #tpu.dot_dimension_numbers<[1], [0], [0], [1], [0, 0, 1, 1], [], []>} : vector<32x32xf32>, vector<32x128xf32>, vector<32x128xf32> -> vector<32x128xf32>
    %118 = arith.addf %114, %117 : vector<32x128xf32>
    %c4 = arith.constant 4 : index
    %c0_112 = arith.constant 0 : index
    %119 = vector.load %arg2[%c4, %c0_112] : memref<16x128xf32, #tpu.memory_space<vmem>>, vector<1x128xf32>
    %120 = vector.broadcast %119 : vector<1x128xf32> to vector<32x128xf32>
    %121 = arith.addf %118, %120 : vector<32x128xf32>
    %c16_113 = arith.constant 16 : index
    %c0_114 = arith.constant 0 : index
    %122 = vector.load %arg5[%c16_113, %c0_114] : memref<64x128xf32, #tpu.memory_space<vmem>>, vector<32x128xf32>
    tpu.vector_store %arg5[%c16_113, %c0_114], %121 {strides = array<i32>} : memref<64x128xf32, #tpu.memory_space<vmem>>, vector<32x128xf32>,
    %cst_115 = arith.constant 0.000000e+00 : f32
    %123 = vector.broadcast %cst_115 : f32 to vector<32x128xf32>
    %c8_116 = arith.constant 8 : index
    %c0_117 = arith.constant 0 : index
    %124 = vector.load %arg5[%c8_116, %c0_117] : memref<64x128xf32, #tpu.memory_space<vmem>>, vector<32x48xf32>
    %c624 = arith.constant 624 : index
    %c0_118 = arith.constant 0 : index
    %125 = vector.load %arg1[%c624, %c0_118] : memref<4760x128xf32, #tpu.memory_space<vmem>>, vector<48x128xf32>
    %cst_119 = arith.constant dense<0.000000e+00> : vector<32x128xf32>
    %126 = tpu.matmul %124, %125, %cst_119 {dimension_numbers = #tpu.dot_dimension_numbers<[1], [0], [0], [1], [0, 0, 1, 1], [], []>} : vector<32x48xf32>, vector<48x128xf32>, vector<32x128xf32> -> vector<32x128xf32>
    %127 = arith.addf %123, %126 : vector<32x128xf32>
    %c10_120 = arith.constant 10 : index
    %c0_121 = arith.constant 0 : index
    %128 = vector.load %arg5[%c10_120, %c0_121] : memref<64x128xf32, #tpu.memory_space<vmem>>, vector<32x48xf32>
    %c672 = arith.constant 672 : index
    %c0_122 = arith.constant 0 : index
    %129 = vector.load %arg1[%c672, %c0_122] : memref<4760x128xf32, #tpu.memory_space<vmem>>, vector<48x128xf32>
    %cst_123 = arith.constant dense<0.000000e+00> : vector<32x128xf32>
    %130 = tpu.matmul %128, %129, %cst_123 {dimension_numbers = #tpu.dot_dimension_numbers<[1], [0], [0], [1], [0, 0, 1, 1], [], []>} : vector<32x48xf32>, vector<48x128xf32>, vector<32x128xf32> -> vector<32x128xf32>
    %131 = arith.addf %127, %130 : vector<32x128xf32>
    %c12_124 = arith.constant 12 : index
    %c0_125 = arith.constant 0 : index
    %132 = vector.load %arg5[%c12_124, %c0_125] : memref<64x128xf32, #tpu.memory_space<vmem>>, vector<32x48xf32>
    %c720 = arith.constant 720 : index
    %c0_126 = arith.constant 0 : index
    %133 = vector.load %arg1[%c720, %c0_126] : memref<4760x128xf32, #tpu.memory_space<vmem>>, vector<48x128xf32>
    %cst_127 = arith.constant dense<0.000000e+00> : vector<32x128xf32>
    %134 = tpu.matmul %132, %133, %cst_127 {dimension_numbers = #tpu.dot_dimension_numbers<[1], [0], [0], [1], [0, 0, 1, 1], [], []>} : vector<32x48xf32>, vector<48x128xf32>, vector<32x128xf32> -> vector<32x128xf32>
    %135 = arith.addf %131, %134 : vector<32x128xf32>
    %c14_128 = arith.constant 14 : index
    %c0_129 = arith.constant 0 : index
    %136 = vector.load %arg5[%c14_128, %c0_129] : memref<64x128xf32, #tpu.memory_space<vmem>>, vector<32x48xf32>
    %c768 = arith.constant 768 : index
    %c0_130 = arith.constant 0 : index
    %137 = vector.load %arg1[%c768, %c0_130] : memref<4760x128xf32, #tpu.memory_space<vmem>>, vector<48x128xf32>
    %cst_131 = arith.constant dense<0.000000e+00> : vector<32x128xf32>
    %138 = tpu.matmul %136, %137, %cst_131 {dimension_numbers = #tpu.dot_dimension_numbers<[1], [0], [0], [1], [0, 0, 1, 1], [], []>} : vector<32x48xf32>, vector<48x128xf32>, vector<32x128xf32> -> vector<32x128xf32>
    %139 = arith.addf %135, %138 : vector<32x128xf32>
    %c16_132 = arith.constant 16 : index
    %c0_133 = arith.constant 0 : index
    %140 = vector.load %arg5[%c16_132, %c0_133] : memref<64x128xf32, #tpu.memory_space<vmem>>, vector<32x48xf32>
    %c816 = arith.constant 816 : index
    %c0_134 = arith.constant 0 : index
    %141 = vector.load %arg1[%c816, %c0_134] : memref<4760x128xf32, #tpu.memory_space<vmem>>, vector<48x128xf32>
    %cst_135 = arith.constant dense<0.000000e+00> : vector<32x128xf32>
    %142 = tpu.matmul %140, %141, %cst_135 {dimension_numbers = #tpu.dot_dimension_numbers<[1], [0], [0], [1], [0, 0, 1, 1], [], []>} : vector<32x48xf32>, vector<48x128xf32>, vector<32x128xf32> -> vector<32x128xf32>
    %143 = arith.addf %139, %142 : vector<32x128xf32>
    %c18_136 = arith.constant 18 : index
    %c0_137 = arith.constant 0 : index
    %144 = vector.load %arg5[%c18_136, %c0_137] : memref<64x128xf32, #tpu.memory_space<vmem>>, vector<32x48xf32>
    %c864 = arith.constant 864 : index
    %c0_138 = arith.constant 0 : index
    %145 = vector.load %arg1[%c864, %c0_138] : memref<4760x128xf32, #tpu.memory_space<vmem>>, vector<48x128xf32>
    %cst_139 = arith.constant dense<0.000000e+00> : vector<32x128xf32>
    %146 = tpu.matmul %144, %145, %cst_139 {dimension_numbers = #tpu.dot_dimension_numbers<[1], [0], [0], [1], [0, 0, 1, 1], [], []>} : vector<32x48xf32>, vector<48x128xf32>, vector<32x128xf32> -> vector<32x128xf32>
    %147 = arith.addf %143, %146 : vector<32x128xf32>
    %c20_140 = arith.constant 20 : index
    %c0_141 = arith.constant 0 : index
    %148 = vector.load %arg5[%c20_140, %c0_141] : memref<64x128xf32, #tpu.memory_space<vmem>>, vector<32x48xf32>
    %c912 = arith.constant 912 : index
    %c0_142 = arith.constant 0 : index
    %149 = vector.load %arg1[%c912, %c0_142] : memref<4760x128xf32, #tpu.memory_space<vmem>>, vector<48x128xf32>
    %cst_143 = arith.constant dense<0.000000e+00> : vector<32x128xf32>
    %150 = tpu.matmul %148, %149, %cst_143 {dimension_numbers = #tpu.dot_dimension_numbers<[1], [0], [0], [1], [0, 0, 1, 1], [], []>} : vector<32x48xf32>, vector<48x128xf32>, vector<32x128xf32> -> vector<32x128xf32>
    %151 = arith.addf %147, %150 : vector<32x128xf32>
    %c22_144 = arith.constant 22 : index
    %c0_145 = arith.constant 0 : index
    %152 = vector.load %arg5[%c22_144, %c0_145] : memref<64x128xf32, #tpu.memory_space<vmem>>, vector<32x48xf32>
    %c960 = arith.constant 960 : index
    %c0_146 = arith.constant 0 : index
    %153 = vector.load %arg1[%c960, %c0_146] : memref<4760x128xf32, #tpu.memory_space<vmem>>, vector<48x128xf32>
    %cst_147 = arith.constant dense<0.000000e+00> : vector<32x128xf32>
    %154 = tpu.matmul %152, %153, %cst_147 {dimension_numbers = #tpu.dot_dimension_numbers<[1], [0], [0], [1], [0, 0, 1, 1], [], []>} : vector<32x48xf32>, vector<48x128xf32>, vector<32x128xf32> -> vector<32x128xf32>
    %155 = arith.addf %151, %154 : vector<32x128xf32>
    %c24_148 = arith.constant 24 : index
    %c0_149 = arith.constant 0 : index
    %156 = vector.load %arg5[%c24_148, %c0_149] : memref<64x128xf32, #tpu.memory_space<vmem>>, vector<32x48xf32>
    %c1008 = arith.constant 1008 : index
    %c0_150 = arith.constant 0 : index
    %157 = vector.load %arg1[%c1008, %c0_150] : memref<4760x128xf32, #tpu.memory_space<vmem>>, vector<48x128xf32>
    %cst_151 = arith.constant dense<0.000000e+00> : vector<32x128xf32>
    %158 = tpu.matmul %156, %157, %cst_151 {dimension_numbers = #tpu.dot_dimension_numbers<[1], [0], [0], [1], [0, 0, 1, 1], [], []>} : vector<32x48xf32>, vector<48x128xf32>, vector<32x128xf32> -> vector<32x128xf32>
    %159 = arith.addf %155, %158 : vector<32x128xf32>
    %c5 = arith.constant 5 : index
    %c0_152 = arith.constant 0 : index
    %160 = vector.load %arg2[%c5, %c0_152] : memref<16x128xf32, #tpu.memory_space<vmem>>, vector<1x128xf32>
    %161 = vector.broadcast %160 : vector<1x128xf32> to vector<32x128xf32>
    %162 = arith.addf %159, %161 : vector<32x128xf32>
    %c16_153 = arith.constant 16 : index
    %c0_154 = arith.constant 0 : index
    %163 = vector.load %arg4[%c16_153, %c0_154] : memref<64x128xf32, #tpu.memory_space<vmem>>, vector<32x128xf32>
    tpu.vector_store %arg4[%c16_153, %c0_154], %162 {strides = array<i32>} : memref<64x128xf32, #tpu.memory_space<vmem>>, vector<32x128xf32>,
    %cst_155 = arith.constant 0.000000e+00 : f32
    %164 = vector.broadcast %cst_155 : f32 to vector<32x128xf32>
    %c4_156 = arith.constant 4 : index
    %c0_157 = arith.constant 0 : index
    %165 = vector.load %arg4[%c4_156, %c0_157] : memref<64x128xf32, #tpu.memory_space<vmem>>, vector<32x64xf32>
    %c1056 = arith.constant 1056 : index
    %c0_158 = arith.constant 0 : index
    %166 = vector.load %arg1[%c1056, %c0_158] : memref<4760x128xf32, #tpu.memory_space<vmem>>, vector<64x128xf32>
    %cst_159 = arith.constant dense<0.000000e+00> : vector<32x128xf32>
    %167 = tpu.matmul %165, %166, %cst_159 {dimension_numbers = #tpu.dot_dimension_numbers<[1], [0], [0], [1], [0, 0, 1, 1], [], []>} : vector<32x64xf32>, vector<64x128xf32>, vector<32x128xf32> -> vector<32x128xf32>
    %168 = arith.addf %164, %167 : vector<32x128xf32>
    %c6 = arith.constant 6 : index
    %c0_160 = arith.constant 0 : index
    %169 = vector.load %arg4[%c6, %c0_160] : memref<64x128xf32, #tpu.memory_space<vmem>>, vector<32x64xf32>
    %c1120 = arith.constant 1120 : index
    %c0_161 = arith.constant 0 : index
    %170 = vector.load %arg1[%c1120, %c0_161] : memref<4760x128xf32, #tpu.memory_space<vmem>>, vector<64x128xf32>
    %cst_162 = arith.constant dense<0.000000e+00> : vector<32x128xf32>
    %171 = tpu.matmul %169, %170, %cst_162 {dimension_numbers = #tpu.dot_dimension_numbers<[1], [0], [0], [1], [0, 0, 1, 1], [], []>} : vector<32x64xf32>, vector<64x128xf32>, vector<32x128xf32> -> vector<32x128xf32>
    %172 = arith.addf %168, %171 : vector<32x128xf32>
    %c8_163 = arith.constant 8 : index
    %c0_164 = arith.constant 0 : index
    %173 = vector.load %arg4[%c8_163, %c0_164] : memref<64x128xf32, #tpu.memory_space<vmem>>, vector<32x64xf32>
    %c1184 = arith.constant 1184 : index
    %c0_165 = arith.constant 0 : index
    %174 = vector.load %arg1[%c1184, %c0_165] : memref<4760x128xf32, #tpu.memory_space<vmem>>, vector<64x128xf32>
    %cst_166 = arith.constant dense<0.000000e+00> : vector<32x128xf32>
    %175 = tpu.matmul %173, %174, %cst_166 {dimension_numbers = #tpu.dot_dimension_numbers<[1], [0], [0], [1], [0, 0, 1, 1], [], []>} : vector<32x64xf32>, vector<64x128xf32>, vector<32x128xf32> -> vector<32x128xf32>
    %176 = arith.addf %172, %175 : vector<32x128xf32>
    %c10_167 = arith.constant 10 : index
    %c0_168 = arith.constant 0 : index
    %177 = vector.load %arg4[%c10_167, %c0_168] : memref<64x128xf32, #tpu.memory_space<vmem>>, vector<32x64xf32>
    %c1248 = arith.constant 1248 : index
    %c0_169 = arith.constant 0 : index
    %178 = vector.load %arg1[%c1248, %c0_169] : memref<4760x128xf32, #tpu.memory_space<vmem>>, vector<64x128xf32>
    %cst_170 = arith.constant dense<0.000000e+00> : vector<32x128xf32>
    %179 = tpu.matmul %177, %178, %cst_170 {dimension_numbers = #tpu.dot_dimension_numbers<[1], [0], [0], [1], [0, 0, 1, 1], [], []>} : vector<32x64xf32>, vector<64x128xf32>, vector<32x128xf32> -> vector<32x128xf32>
    %180 = arith.addf %176, %179 : vector<32x128xf32>
    %c12_171 = arith.constant 12 : index
    %c0_172 = arith.constant 0 : index
    %181 = vector.load %arg4[%c12_171, %c0_172] : memref<64x128xf32, #tpu.memory_space<vmem>>, vector<32x64xf32>
    %c1312 = arith.constant 1312 : index
    %c0_173 = arith.constant 0 : index
    %182 = vector.load %arg1[%c1312, %c0_173] : memref<4760x128xf32, #tpu.memory_space<vmem>>, vector<64x128xf32>
    %cst_174 = arith.constant dense<0.000000e+00> : vector<32x128xf32>
    %183 = tpu.matmul %181, %182, %cst_174 {dimension_numbers = #tpu.dot_dimension_numbers<[1], [0], [0], [1], [0, 0, 1, 1], [], []>} : vector<32x64xf32>, vector<64x128xf32>, vector<32x128xf32> -> vector<32x128xf32>
    %184 = arith.addf %180, %183 : vector<32x128xf32>
    %c14_175 = arith.constant 14 : index
    %c0_176 = arith.constant 0 : index
    %185 = vector.load %arg4[%c14_175, %c0_176] : memref<64x128xf32, #tpu.memory_space<vmem>>, vector<32x64xf32>
    %c1376 = arith.constant 1376 : index
    %c0_177 = arith.constant 0 : index
    %186 = vector.load %arg1[%c1376, %c0_177] : memref<4760x128xf32, #tpu.memory_space<vmem>>, vector<64x128xf32>
    %cst_178 = arith.constant dense<0.000000e+00> : vector<32x128xf32>
    %187 = tpu.matmul %185, %186, %cst_178 {dimension_numbers = #tpu.dot_dimension_numbers<[1], [0], [0], [1], [0, 0, 1, 1], [], []>} : vector<32x64xf32>, vector<64x128xf32>, vector<32x128xf32> -> vector<32x128xf32>
    %188 = arith.addf %184, %187 : vector<32x128xf32>
    %c16_179 = arith.constant 16 : index
    %c0_180 = arith.constant 0 : index
    %189 = vector.load %arg4[%c16_179, %c0_180] : memref<64x128xf32, #tpu.memory_space<vmem>>, vector<32x64xf32>
    %c1440 = arith.constant 1440 : index
    %c0_181 = arith.constant 0 : index
    %190 = vector.load %arg1[%c1440, %c0_181] : memref<4760x128xf32, #tpu.memory_space<vmem>>, vector<64x128xf32>
    %cst_182 = arith.constant dense<0.000000e+00> : vector<32x128xf32>
    %191 = tpu.matmul %189, %190, %cst_182 {dimension_numbers = #tpu.dot_dimension_numbers<[1], [0], [0], [1], [0, 0, 1, 1], [], []>} : vector<32x64xf32>, vector<64x128xf32>, vector<32x128xf32> -> vector<32x128xf32>
    %192 = arith.addf %188, %191 : vector<32x128xf32>
    %c18_183 = arith.constant 18 : index
    %c0_184 = arith.constant 0 : index
    %193 = vector.load %arg4[%c18_183, %c0_184] : memref<64x128xf32, #tpu.memory_space<vmem>>, vector<32x64xf32>
    %c1504 = arith.constant 1504 : index
    %c0_185 = arith.constant 0 : index
    %194 = vector.load %arg1[%c1504, %c0_185] : memref<4760x128xf32, #tpu.memory_space<vmem>>, vector<64x128xf32>
    %cst_186 = arith.constant dense<0.000000e+00> : vector<32x128xf32>
    %195 = tpu.matmul %193, %194, %cst_186 {dimension_numbers = #tpu.dot_dimension_numbers<[1], [0], [0], [1], [0, 0, 1, 1], [], []>} : vector<32x64xf32>, vector<64x128xf32>, vector<32x128xf32> -> vector<32x128xf32>
    %196 = arith.addf %192, %195 : vector<32x128xf32>
    %c20_187 = arith.constant 20 : index
    %c0_188 = arith.constant 0 : index
    %197 = vector.load %arg4[%c20_187, %c0_188] : memref<64x128xf32, #tpu.memory_space<vmem>>, vector<32x64xf32>
    %c1568 = arith.constant 1568 : index
    %c0_189 = arith.constant 0 : index
    %198 = vector.load %arg1[%c1568, %c0_189] : memref<4760x128xf32, #tpu.memory_space<vmem>>, vector<64x128xf32>
    %cst_190 = arith.constant dense<0.000000e+00> : vector<32x128xf32>
    %199 = tpu.matmul %197, %198, %cst_190 {dimension_numbers = #tpu.dot_dimension_numbers<[1], [0], [0], [1], [0, 0, 1, 1], [], []>} : vector<32x64xf32>, vector<64x128xf32>, vector<32x128xf32> -> vector<32x128xf32>
    %200 = arith.addf %196, %199 : vector<32x128xf32>
    %c22_191 = arith.constant 22 : index
    %c0_192 = arith.constant 0 : index
    %201 = vector.load %arg4[%c22_191, %c0_192] : memref<64x128xf32, #tpu.memory_space<vmem>>, vector<32x64xf32>
    %c1632 = arith.constant 1632 : index
    %c0_193 = arith.constant 0 : index
    %202 = vector.load %arg1[%c1632, %c0_193] : memref<4760x128xf32, #tpu.memory_space<vmem>>, vector<64x128xf32>
    %cst_194 = arith.constant dense<0.000000e+00> : vector<32x128xf32>
    %203 = tpu.matmul %201, %202, %cst_194 {dimension_numbers = #tpu.dot_dimension_numbers<[1], [0], [0], [1], [0, 0, 1, 1], [], []>} : vector<32x64xf32>, vector<64x128xf32>, vector<32x128xf32> -> vector<32x128xf32>
    %204 = arith.addf %200, %203 : vector<32x128xf32>
    %c24_195 = arith.constant 24 : index
    %c0_196 = arith.constant 0 : index
    %205 = vector.load %arg4[%c24_195, %c0_196] : memref<64x128xf32, #tpu.memory_space<vmem>>, vector<32x64xf32>
    %c1696 = arith.constant 1696 : index
    %c0_197 = arith.constant 0 : index
    %206 = vector.load %arg1[%c1696, %c0_197] : memref<4760x128xf32, #tpu.memory_space<vmem>>, vector<64x128xf32>
    %cst_198 = arith.constant dense<0.000000e+00> : vector<32x128xf32>
    %207 = tpu.matmul %205, %206, %cst_198 {dimension_numbers = #tpu.dot_dimension_numbers<[1], [0], [0], [1], [0, 0, 1, 1], [], []>} : vector<32x64xf32>, vector<64x128xf32>, vector<32x128xf32> -> vector<32x128xf32>
    %208 = arith.addf %204, %207 : vector<32x128xf32>
    %c26 = arith.constant 26 : index
    %c0_199 = arith.constant 0 : index
    %209 = vector.load %arg4[%c26, %c0_199] : memref<64x128xf32, #tpu.memory_space<vmem>>, vector<32x64xf32>
    %c1760 = arith.constant 1760 : index
    %c0_200 = arith.constant 0 : index
    %210 = vector.load %arg1[%c1760, %c0_200] : memref<4760x128xf32, #tpu.memory_space<vmem>>, vector<64x128xf32>
    %cst_201 = arith.constant dense<0.000000e+00> : vector<32x128xf32>
    %211 = tpu.matmul %209, %210, %cst_201 {dimension_numbers = #tpu.dot_dimension_numbers<[1], [0], [0], [1], [0, 0, 1, 1], [], []>} : vector<32x64xf32>, vector<64x128xf32>, vector<32x128xf32> -> vector<32x128xf32>
    %212 = arith.addf %208, %211 : vector<32x128xf32>
    %c28 = arith.constant 28 : index
    %c0_202 = arith.constant 0 : index
    %213 = vector.load %arg4[%c28, %c0_202] : memref<64x128xf32, #tpu.memory_space<vmem>>, vector<32x64xf32>
    %c1824 = arith.constant 1824 : index
    %c0_203 = arith.constant 0 : index
    %214 = vector.load %arg1[%c1824, %c0_203] : memref<4760x128xf32, #tpu.memory_space<vmem>>, vector<64x128xf32>
    %cst_204 = arith.constant dense<0.000000e+00> : vector<32x128xf32>
    %215 = tpu.matmul %213, %214, %cst_204 {dimension_numbers = #tpu.dot_dimension_numbers<[1], [0], [0], [1], [0, 0, 1, 1], [], []>} : vector<32x64xf32>, vector<64x128xf32>, vector<32x128xf32> -> vector<32x128xf32>
    %216 = arith.addf %212, %215 : vector<32x128xf32>
    %c6_205 = arith.constant 6 : index
    %c0_206 = arith.constant 0 : index
    %217 = vector.load %arg2[%c6_205, %c0_206] : memref<16x128xf32, #tpu.memory_space<vmem>>, vector<1x128xf32>
    %218 = vector.broadcast %217 : vector<1x128xf32> to vector<32x128xf32>
    %219 = arith.addf %216, %218 : vector<32x128xf32>
    %c16_207 = arith.constant 16 : index
    %c0_208 = arith.constant 0 : index
    %220 = vector.load %arg5[%c16_207, %c0_208] : memref<64x128xf32, #tpu.memory_space<vmem>>, vector<32x128xf32>
    tpu.vector_store %arg5[%c16_207, %c0_208], %219 {strides = array<i32>} : memref<64x128xf32, #tpu.memory_space<vmem>>, vector<32x128xf32>,
    %cst_209 = arith.constant 0.000000e+00 : f32
    %221 = vector.broadcast %cst_209 : f32 to vector<32x128xf32>
    %c4_210 = arith.constant 4 : index
    %c0_211 = arith.constant 0 : index
    %222 = vector.load %arg5[%c4_210, %c0_211] : memref<64x128xf32, #tpu.memory_space<vmem>>, vector<32x80xf32>
    %c1888 = arith.constant 1888 : index
    %c0_212 = arith.constant 0 : index
    %223 = vector.load %arg1[%c1888, %c0_212] : memref<4760x128xf32, #tpu.memory_space<vmem>>, vector<80x128xf32>
    %cst_213 = arith.constant dense<0.000000e+00> : vector<32x128xf32>
    %224 = tpu.matmul %222, %223, %cst_213 {dimension_numbers = #tpu.dot_dimension_numbers<[1], [0], [0], [1], [0, 0, 1, 1], [], []>} : vector<32x80xf32>, vector<80x128xf32>, vector<32x128xf32> -> vector<32x128xf32>
    %225 = arith.addf %221, %224 : vector<32x128xf32>
    %c6_214 = arith.constant 6 : index
    %c0_215 = arith.constant 0 : index
    %226 = vector.load %arg5[%c6_214, %c0_215] : memref<64x128xf32, #tpu.memory_space<vmem>>, vector<32x80xf32>
    %c1968 = arith.constant 1968 : index
    %c0_216 = arith.constant 0 : index
    %227 = vector.load %arg1[%c1968, %c0_216] : memref<4760x128xf32, #tpu.memory_space<vmem>>, vector<80x128xf32>
    %cst_217 = arith.constant dense<0.000000e+00> : vector<32x128xf32>
    %228 = tpu.matmul %226, %227, %cst_217 {dimension_numbers = #tpu.dot_dimension_numbers<[1], [0], [0], [1], [0, 0, 1, 1], [], []>} : vector<32x80xf32>, vector<80x128xf32>, vector<32x128xf32> -> vector<32x128xf32>
    %229 = arith.addf %225, %228 : vector<32x128xf32>
    %c8_218 = arith.constant 8 : index
    %c0_219 = arith.constant 0 : index
    %230 = vector.load %arg5[%c8_218, %c0_219] : memref<64x128xf32, #tpu.memory_space<vmem>>, vector<32x80xf32>
    %c2048 = arith.constant 2048 : index
    %c0_220 = arith.constant 0 : index
    %231 = vector.load %arg1[%c2048, %c0_220] : memref<4760x128xf32, #tpu.memory_space<vmem>>, vector<80x128xf32>
    %cst_221 = arith.constant dense<0.000000e+00> : vector<32x128xf32>
    %232 = tpu.matmul %230, %231, %cst_221 {dimension_numbers = #tpu.dot_dimension_numbers<[1], [0], [0], [1], [0, 0, 1, 1], [], []>} : vector<32x80xf32>, vector<80x128xf32>, vector<32x128xf32> -> vector<32x128xf32>
    %233 = arith.addf %229, %232 : vector<32x128xf32>
    %c10_222 = arith.constant 10 : index
    %c0_223 = arith.constant 0 : index
    %234 = vector.load %arg5[%c10_222, %c0_223] : memref<64x128xf32, #tpu.memory_space<vmem>>, vector<32x80xf32>
    %c2128 = arith.constant 2128 : index
    %c0_224 = arith.constant 0 : index
    %235 = vector.load %arg1[%c2128, %c0_224] : memref<4760x128xf32, #tpu.memory_space<vmem>>, vector<80x128xf32>
    %cst_225 = arith.constant dense<0.000000e+00> : vector<32x128xf32>
    %236 = tpu.matmul %234, %235, %cst_225 {dimension_numbers = #tpu.dot_dimension_numbers<[1], [0], [0], [1], [0, 0, 1, 1], [], []>} : vector<32x80xf32>, vector<80x128xf32>, vector<32x128xf32> -> vector<32x128xf32>
    %237 = arith.addf %233, %236 : vector<32x128xf32>
    %c12_226 = arith.constant 12 : index
    %c0_227 = arith.constant 0 : index
    %238 = vector.load %arg5[%c12_226, %c0_227] : memref<64x128xf32, #tpu.memory_space<vmem>>, vector<32x80xf32>
    %c2208 = arith.constant 2208 : index
    %c0_228 = arith.constant 0 : index
    %239 = vector.load %arg1[%c2208, %c0_228] : memref<4760x128xf32, #tpu.memory_space<vmem>>, vector<80x128xf32>
    %cst_229 = arith.constant dense<0.000000e+00> : vector<32x128xf32>
    %240 = tpu.matmul %238, %239, %cst_229 {dimension_numbers = #tpu.dot_dimension_numbers<[1], [0], [0], [1], [0, 0, 1, 1], [], []>} : vector<32x80xf32>, vector<80x128xf32>, vector<32x128xf32> -> vector<32x128xf32>
    %241 = arith.addf %237, %240 : vector<32x128xf32>
    %c14_230 = arith.constant 14 : index
    %c0_231 = arith.constant 0 : index
    %242 = vector.load %arg5[%c14_230, %c0_231] : memref<64x128xf32, #tpu.memory_space<vmem>>, vector<32x80xf32>
    %c2288 = arith.constant 2288 : index
    %c0_232 = arith.constant 0 : index
    %243 = vector.load %arg1[%c2288, %c0_232] : memref<4760x128xf32, #tpu.memory_space<vmem>>, vector<80x128xf32>
    %cst_233 = arith.constant dense<0.000000e+00> : vector<32x128xf32>
    %244 = tpu.matmul %242, %243, %cst_233 {dimension_numbers = #tpu.dot_dimension_numbers<[1], [0], [0], [1], [0, 0, 1, 1], [], []>} : vector<32x80xf32>, vector<80x128xf32>, vector<32x128xf32> -> vector<32x128xf32>
    %245 = arith.addf %241, %244 : vector<32x128xf32>
    %c16_234 = arith.constant 16 : index
    %c0_235 = arith.constant 0 : index
    %246 = vector.load %arg5[%c16_234, %c0_235] : memref<64x128xf32, #tpu.memory_space<vmem>>, vector<32x80xf32>
    %c2368 = arith.constant 2368 : index
    %c0_236 = arith.constant 0 : index
    %247 = vector.load %arg1[%c2368, %c0_236] : memref<4760x128xf32, #tpu.memory_space<vmem>>, vector<80x128xf32>
    %cst_237 = arith.constant dense<0.000000e+00> : vector<32x128xf32>
    %248 = tpu.matmul %246, %247, %cst_237 {dimension_numbers = #tpu.dot_dimension_numbers<[1], [0], [0], [1], [0, 0, 1, 1], [], []>} : vector<32x80xf32>, vector<80x128xf32>, vector<32x128xf32> -> vector<32x128xf32>
    %249 = arith.addf %245, %248 : vector<32x128xf32>
    %c18_238 = arith.constant 18 : index
    %c0_239 = arith.constant 0 : index
    %250 = vector.load %arg5[%c18_238, %c0_239] : memref<64x128xf32, #tpu.memory_space<vmem>>, vector<32x80xf32>
    %c2448 = arith.constant 2448 : index
    %c0_240 = arith.constant 0 : index
    %251 = vector.load %arg1[%c2448, %c0_240] : memref<4760x128xf32, #tpu.memory_space<vmem>>, vector<80x128xf32>
    %cst_241 = arith.constant dense<0.000000e+00> : vector<32x128xf32>
    %252 = tpu.matmul %250, %251, %cst_241 {dimension_numbers = #tpu.dot_dimension_numbers<[1], [0], [0], [1], [0, 0, 1, 1], [], []>} : vector<32x80xf32>, vector<80x128xf32>, vector<32x128xf32> -> vector<32x128xf32>
    %253 = arith.addf %249, %252 : vector<32x128xf32>
    %c20_242 = arith.constant 20 : index
    %c0_243 = arith.constant 0 : index
    %254 = vector.load %arg5[%c20_242, %c0_243] : memref<64x128xf32, #tpu.memory_space<vmem>>, vector<32x80xf32>
    %c2528 = arith.constant 2528 : index
    %c0_244 = arith.constant 0 : index
    %255 = vector.load %arg1[%c2528, %c0_244] : memref<4760x128xf32, #tpu.memory_space<vmem>>, vector<80x128xf32>
    %cst_245 = arith.constant dense<0.000000e+00> : vector<32x128xf32>
    %256 = tpu.matmul %254, %255, %cst_245 {dimension_numbers = #tpu.dot_dimension_numbers<[1], [0], [0], [1], [0, 0, 1, 1], [], []>} : vector<32x80xf32>, vector<80x128xf32>, vector<32x128xf32> -> vector<32x128xf32>
    %257 = arith.addf %253, %256 : vector<32x128xf32>
    %c22_246 = arith.constant 22 : index
    %c0_247 = arith.constant 0 : index
    %258 = vector.load %arg5[%c22_246, %c0_247] : memref<64x128xf32, #tpu.memory_space<vmem>>, vector<32x80xf32>
    %c2608 = arith.constant 2608 : index
    %c0_248 = arith.constant 0 : index
    %259 = vector.load %arg1[%c2608, %c0_248] : memref<4760x128xf32, #tpu.memory_space<vmem>>, vector<80x128xf32>
    %cst_249 = arith.constant dense<0.000000e+00> : vector<32x128xf32>
    %260 = tpu.matmul %258, %259, %cst_249 {dimension_numbers = #tpu.dot_dimension_numbers<[1], [0], [0], [1], [0, 0, 1, 1], [], []>} : vector<32x80xf32>, vector<80x128xf32>, vector<32x128xf32> -> vector<32x128xf32>
    %261 = arith.addf %257, %260 : vector<32x128xf32>
    %c24_250 = arith.constant 24 : index
    %c0_251 = arith.constant 0 : index
    %262 = vector.load %arg5[%c24_250, %c0_251] : memref<64x128xf32, #tpu.memory_space<vmem>>, vector<32x80xf32>
    %c2688 = arith.constant 2688 : index
    %c0_252 = arith.constant 0 : index
    %263 = vector.load %arg1[%c2688, %c0_252] : memref<4760x128xf32, #tpu.memory_space<vmem>>, vector<80x128xf32>
    %cst_253 = arith.constant dense<0.000000e+00> : vector<32x128xf32>
    %264 = tpu.matmul %262, %263, %cst_253 {dimension_numbers = #tpu.dot_dimension_numbers<[1], [0], [0], [1], [0, 0, 1, 1], [], []>} : vector<32x80xf32>, vector<80x128xf32>, vector<32x128xf32> -> vector<32x128xf32>
    %265 = arith.addf %261, %264 : vector<32x128xf32>
    %c26_254 = arith.constant 26 : index
    %c0_255 = arith.constant 0 : index
    %266 = vector.load %arg5[%c26_254, %c0_255] : memref<64x128xf32, #tpu.memory_space<vmem>>, vector<32x80xf32>
    %c2768 = arith.constant 2768 : index
    %c0_256 = arith.constant 0 : index
    %267 = vector.load %arg1[%c2768, %c0_256] : memref<4760x128xf32, #tpu.memory_space<vmem>>, vector<80x128xf32>
    %cst_257 = arith.constant dense<0.000000e+00> : vector<32x128xf32>
    %268 = tpu.matmul %266, %267, %cst_257 {dimension_numbers = #tpu.dot_dimension_numbers<[1], [0], [0], [1], [0, 0, 1, 1], [], []>} : vector<32x80xf32>, vector<80x128xf32>, vector<32x128xf32> -> vector<32x128xf32>
    %269 = arith.addf %265, %268 : vector<32x128xf32>
    %c28_258 = arith.constant 28 : index
    %c0_259 = arith.constant 0 : index
    %270 = vector.load %arg5[%c28_258, %c0_259] : memref<64x128xf32, #tpu.memory_space<vmem>>, vector<32x80xf32>
    %c2848 = arith.constant 2848 : index
    %c0_260 = arith.constant 0 : index
    %271 = vector.load %arg1[%c2848, %c0_260] : memref<4760x128xf32, #tpu.memory_space<vmem>>, vector<80x128xf32>
    %cst_261 = arith.constant dense<0.000000e+00> : vector<32x128xf32>
    %272 = tpu.matmul %270, %271, %cst_261 {dimension_numbers = #tpu.dot_dimension_numbers<[1], [0], [0], [1], [0, 0, 1, 1], [], []>} : vector<32x80xf32>, vector<80x128xf32>, vector<32x128xf32> -> vector<32x128xf32>
    %273 = arith.addf %269, %272 : vector<32x128xf32>
    %c7 = arith.constant 7 : index
    %c0_262 = arith.constant 0 : index
    %274 = vector.load %arg2[%c7, %c0_262] : memref<16x128xf32, #tpu.memory_space<vmem>>, vector<1x128xf32>
    %275 = vector.broadcast %274 : vector<1x128xf32> to vector<32x128xf32>
    %276 = arith.addf %273, %275 : vector<32x128xf32>
    %c16_263 = arith.constant 16 : index
    %c0_264 = arith.constant 0 : index
    %277 = vector.load %arg4[%c16_263, %c0_264] : memref<64x128xf32, #tpu.memory_space<vmem>>, vector<32x128xf32>
    tpu.vector_store %arg4[%c16_263, %c0_264], %276 {strides = array<i32>} : memref<64x128xf32, #tpu.memory_space<vmem>>, vector<32x128xf32>,
    %cst_265 = arith.constant 0.000000e+00 : f32
    %278 = vector.broadcast %cst_265 : f32 to vector<32x128xf32>
    %c4_266 = arith.constant 4 : index
    %c0_267 = arith.constant 0 : index
    %279 = vector.load %arg4[%c4_266, %c0_267] : memref<64x128xf32, #tpu.memory_space<vmem>>, vector<32x64xf32>
    %c2928 = arith.constant 2928 : index
    %c0_268 = arith.constant 0 : index
    %280 = vector.load %arg1[%c2928, %c0_268] : memref<4760x128xf32, #tpu.memory_space<vmem>>, vector<64x128xf32>
    %cst_269 = arith.constant dense<0.000000e+00> : vector<32x128xf32>
    %281 = tpu.matmul %279, %280, %cst_269 {dimension_numbers = #tpu.dot_dimension_numbers<[1], [0], [0], [1], [0, 0, 1, 1], [], []>} : vector<32x64xf32>, vector<64x128xf32>, vector<32x128xf32> -> vector<32x128xf32>
    %282 = arith.addf %278, %281 : vector<32x128xf32>
    %c6_270 = arith.constant 6 : index
    %c0_271 = arith.constant 0 : index
    %283 = vector.load %arg4[%c6_270, %c0_271] : memref<64x128xf32, #tpu.memory_space<vmem>>, vector<32x64xf32>
    %c2992 = arith.constant 2992 : index
    %c0_272 = arith.constant 0 : index
    %284 = vector.load %arg1[%c2992, %c0_272] : memref<4760x128xf32, #tpu.memory_space<vmem>>, vector<64x128xf32>
    %cst_273 = arith.constant dense<0.000000e+00> : vector<32x128xf32>
    %285 = tpu.matmul %283, %284, %cst_273 {dimension_numbers = #tpu.dot_dimension_numbers<[1], [0], [0], [1], [0, 0, 1, 1], [], []>} : vector<32x64xf32>, vector<64x128xf32>, vector<32x128xf32> -> vector<32x128xf32>
    %286 = arith.addf %282, %285 : vector<32x128xf32>
    %c8_274 = arith.constant 8 : index
    %c0_275 = arith.constant 0 : index
    %287 = vector.load %arg4[%c8_274, %c0_275] : memref<64x128xf32, #tpu.memory_space<vmem>>, vector<32x64xf32>
    %c3056 = arith.constant 3056 : index
    %c0_276 = arith.constant 0 : index
    %288 = vector.load %arg1[%c3056, %c0_276] : memref<4760x128xf32, #tpu.memory_space<vmem>>, vector<64x128xf32>
    %cst_277 = arith.constant dense<0.000000e+00> : vector<32x128xf32>
    %289 = tpu.matmul %287, %288, %cst_277 {dimension_numbers = #tpu.dot_dimension_numbers<[1], [0], [0], [1], [0, 0, 1, 1], [], []>} : vector<32x64xf32>, vector<64x128xf32>, vector<32x128xf32> -> vector<32x128xf32>
    %290 = arith.addf %286, %289 : vector<32x128xf32>
    %c10_278 = arith.constant 10 : index
    %c0_279 = arith.constant 0 : index
    %291 = vector.load %arg4[%c10_278, %c0_279] : memref<64x128xf32, #tpu.memory_space<vmem>>, vector<32x64xf32>
    %c3120 = arith.constant 3120 : index
    %c0_280 = arith.constant 0 : index
    %292 = vector.load %arg1[%c3120, %c0_280] : memref<4760x128xf32, #tpu.memory_space<vmem>>, vector<64x128xf32>
    %cst_281 = arith.constant dense<0.000000e+00> : vector<32x128xf32>
    %293 = tpu.matmul %291, %292, %cst_281 {dimension_numbers = #tpu.dot_dimension_numbers<[1], [0], [0], [1], [0, 0, 1, 1], [], []>} : vector<32x64xf32>, vector<64x128xf32>, vector<32x128xf32> -> vector<32x128xf32>
    %294 = arith.addf %290, %293 : vector<32x128xf32>
    %c12_282 = arith.constant 12 : index
    %c0_283 = arith.constant 0 : index
    %295 = vector.load %arg4[%c12_282, %c0_283] : memref<64x128xf32, #tpu.memory_space<vmem>>, vector<32x64xf32>
    %c3184 = arith.constant 3184 : index
    %c0_284 = arith.constant 0 : index
    %296 = vector.load %arg1[%c3184, %c0_284] : memref<4760x128xf32, #tpu.memory_space<vmem>>, vector<64x128xf32>
    %cst_285 = arith.constant dense<0.000000e+00> : vector<32x128xf32>
    %297 = tpu.matmul %295, %296, %cst_285 {dimension_numbers = #tpu.dot_dimension_numbers<[1], [0], [0], [1], [0, 0, 1, 1], [], []>} : vector<32x64xf32>, vector<64x128xf32>, vector<32x128xf32> -> vector<32x128xf32>
    %298 = arith.addf %294, %297 : vector<32x128xf32>
    %c14_286 = arith.constant 14 : index
    %c0_287 = arith.constant 0 : index
    %299 = vector.load %arg4[%c14_286, %c0_287] : memref<64x128xf32, #tpu.memory_space<vmem>>, vector<32x64xf32>
    %c3248 = arith.constant 3248 : index
    %c0_288 = arith.constant 0 : index
    %300 = vector.load %arg1[%c3248, %c0_288] : memref<4760x128xf32, #tpu.memory_space<vmem>>, vector<64x128xf32>
    %cst_289 = arith.constant dense<0.000000e+00> : vector<32x128xf32>
    %301 = tpu.matmul %299, %300, %cst_289 {dimension_numbers = #tpu.dot_dimension_numbers<[1], [0], [0], [1], [0, 0, 1, 1], [], []>} : vector<32x64xf32>, vector<64x128xf32>, vector<32x128xf32> -> vector<32x128xf32>
    %302 = arith.addf %298, %301 : vector<32x128xf32>
    %c16_290 = arith.constant 16 : index
    %c0_291 = arith.constant 0 : index
    %303 = vector.load %arg4[%c16_290, %c0_291] : memref<64x128xf32, #tpu.memory_space<vmem>>, vector<32x64xf32>
    %c3312 = arith.constant 3312 : index
    %c0_292 = arith.constant 0 : index
    %304 = vector.load %arg1[%c3312, %c0_292] : memref<4760x128xf32, #tpu.memory_space<vmem>>, vector<64x128xf32>
    %cst_293 = arith.constant dense<0.000000e+00> : vector<32x128xf32>
    %305 = tpu.matmul %303, %304, %cst_293 {dimension_numbers = #tpu.dot_dimension_numbers<[1], [0], [0], [1], [0, 0, 1, 1], [], []>} : vector<32x64xf32>, vector<64x128xf32>, vector<32x128xf32> -> vector<32x128xf32>
    %306 = arith.addf %302, %305 : vector<32x128xf32>
    %c18_294 = arith.constant 18 : index
    %c0_295 = arith.constant 0 : index
    %307 = vector.load %arg4[%c18_294, %c0_295] : memref<64x128xf32, #tpu.memory_space<vmem>>, vector<32x64xf32>
    %c3376 = arith.constant 3376 : index
    %c0_296 = arith.constant 0 : index
    %308 = vector.load %arg1[%c3376, %c0_296] : memref<4760x128xf32, #tpu.memory_space<vmem>>, vector<64x128xf32>
    %cst_297 = arith.constant dense<0.000000e+00> : vector<32x128xf32>
    %309 = tpu.matmul %307, %308, %cst_297 {dimension_numbers = #tpu.dot_dimension_numbers<[1], [0], [0], [1], [0, 0, 1, 1], [], []>} : vector<32x64xf32>, vector<64x128xf32>, vector<32x128xf32> -> vector<32x128xf32>
    %310 = arith.addf %306, %309 : vector<32x128xf32>
    %c20_298 = arith.constant 20 : index
    %c0_299 = arith.constant 0 : index
    %311 = vector.load %arg4[%c20_298, %c0_299] : memref<64x128xf32, #tpu.memory_space<vmem>>, vector<32x64xf32>
    %c3440 = arith.constant 3440 : index
    %c0_300 = arith.constant 0 : index
    %312 = vector.load %arg1[%c3440, %c0_300] : memref<4760x128xf32, #tpu.memory_space<vmem>>, vector<64x128xf32>
    %cst_301 = arith.constant dense<0.000000e+00> : vector<32x128xf32>
    %313 = tpu.matmul %311, %312, %cst_301 {dimension_numbers = #tpu.dot_dimension_numbers<[1], [0], [0], [1], [0, 0, 1, 1], [], []>} : vector<32x64xf32>, vector<64x128xf32>, vector<32x128xf32> -> vector<32x128xf32>
    %314 = arith.addf %310, %313 : vector<32x128xf32>
    %c22_302 = arith.constant 22 : index
    %c0_303 = arith.constant 0 : index
    %315 = vector.load %arg4[%c22_302, %c0_303] : memref<64x128xf32, #tpu.memory_space<vmem>>, vector<32x64xf32>
    %c3504 = arith.constant 3504 : index
    %c0_304 = arith.constant 0 : index
    %316 = vector.load %arg1[%c3504, %c0_304] : memref<4760x128xf32, #tpu.memory_space<vmem>>, vector<64x128xf32>
    %cst_305 = arith.constant dense<0.000000e+00> : vector<32x128xf32>
    %317 = tpu.matmul %315, %316, %cst_305 {dimension_numbers = #tpu.dot_dimension_numbers<[1], [0], [0], [1], [0, 0, 1, 1], [], []>} : vector<32x64xf32>, vector<64x128xf32>, vector<32x128xf32> -> vector<32x128xf32>
    %318 = arith.addf %314, %317 : vector<32x128xf32>
    %c24_306 = arith.constant 24 : index
    %c0_307 = arith.constant 0 : index
    %319 = vector.load %arg4[%c24_306, %c0_307] : memref<64x128xf32, #tpu.memory_space<vmem>>, vector<32x64xf32>
    %c3568 = arith.constant 3568 : index
    %c0_308 = arith.constant 0 : index
    %320 = vector.load %arg1[%c3568, %c0_308] : memref<4760x128xf32, #tpu.memory_space<vmem>>, vector<64x128xf32>
    %cst_309 = arith.constant dense<0.000000e+00> : vector<32x128xf32>
    %321 = tpu.matmul %319, %320, %cst_309 {dimension_numbers = #tpu.dot_dimension_numbers<[1], [0], [0], [1], [0, 0, 1, 1], [], []>} : vector<32x64xf32>, vector<64x128xf32>, vector<32x128xf32> -> vector<32x128xf32>
    %322 = arith.addf %318, %321 : vector<32x128xf32>
    %c26_310 = arith.constant 26 : index
    %c0_311 = arith.constant 0 : index
    %323 = vector.load %arg4[%c26_310, %c0_311] : memref<64x128xf32, #tpu.memory_space<vmem>>, vector<32x64xf32>
    %c3632 = arith.constant 3632 : index
    %c0_312 = arith.constant 0 : index
    %324 = vector.load %arg1[%c3632, %c0_312] : memref<4760x128xf32, #tpu.memory_space<vmem>>, vector<64x128xf32>
    %cst_313 = arith.constant dense<0.000000e+00> : vector<32x128xf32>
    %325 = tpu.matmul %323, %324, %cst_313 {dimension_numbers = #tpu.dot_dimension_numbers<[1], [0], [0], [1], [0, 0, 1, 1], [], []>} : vector<32x64xf32>, vector<64x128xf32>, vector<32x128xf32> -> vector<32x128xf32>
    %326 = arith.addf %322, %325 : vector<32x128xf32>
    %c28_314 = arith.constant 28 : index
    %c0_315 = arith.constant 0 : index
    %327 = vector.load %arg4[%c28_314, %c0_315] : memref<64x128xf32, #tpu.memory_space<vmem>>, vector<32x64xf32>
    %c3696 = arith.constant 3696 : index
    %c0_316 = arith.constant 0 : index
    %328 = vector.load %arg1[%c3696, %c0_316] : memref<4760x128xf32, #tpu.memory_space<vmem>>, vector<64x128xf32>
    %cst_317 = arith.constant dense<0.000000e+00> : vector<32x128xf32>
    %329 = tpu.matmul %327, %328, %cst_317 {dimension_numbers = #tpu.dot_dimension_numbers<[1], [0], [0], [1], [0, 0, 1, 1], [], []>} : vector<32x64xf32>, vector<64x128xf32>, vector<32x128xf32> -> vector<32x128xf32>
    %330 = arith.addf %326, %329 : vector<32x128xf32>
    %c8_318 = arith.constant 8 : index
    %c0_319 = arith.constant 0 : index
    %331 = vector.load %arg2[%c8_318, %c0_319] : memref<16x128xf32, #tpu.memory_space<vmem>>, vector<1x128xf32>
    %332 = vector.broadcast %331 : vector<1x128xf32> to vector<32x128xf32>
    %333 = arith.addf %330, %332 : vector<32x128xf32>
    %c16_320 = arith.constant 16 : index
    %c0_321 = arith.constant 0 : index
    %334 = vector.load %arg5[%c16_320, %c0_321] : memref<64x128xf32, #tpu.memory_space<vmem>>, vector<32x128xf32>
    tpu.vector_store %arg5[%c16_320, %c0_321], %333 {strides = array<i32>} : memref<64x128xf32, #tpu.memory_space<vmem>>, vector<32x128xf32>,
    %cst_322 = arith.constant 0.000000e+00 : f32
    %335 = vector.broadcast %cst_322 : f32 to vector<32x128xf32>
    %c8_323 = arith.constant 8 : index
    %c0_324 = arith.constant 0 : index
    %336 = vector.load %arg5[%c8_323, %c0_324] : memref<64x128xf32, #tpu.memory_space<vmem>>, vector<32x48xf32>
    %c3760 = arith.constant 3760 : index
    %c0_325 = arith.constant 0 : index
    %337 = vector.load %arg1[%c3760, %c0_325] : memref<4760x128xf32, #tpu.memory_space<vmem>>, vector<48x128xf32>
    %cst_326 = arith.constant dense<0.000000e+00> : vector<32x128xf32>
    %338 = tpu.matmul %336, %337, %cst_326 {dimension_numbers = #tpu.dot_dimension_numbers<[1], [0], [0], [1], [0, 0, 1, 1], [], []>} : vector<32x48xf32>, vector<48x128xf32>, vector<32x128xf32> -> vector<32x128xf32>
    %339 = arith.addf %335, %338 : vector<32x128xf32>
    %c10_327 = arith.constant 10 : index
    %c0_328 = arith.constant 0 : index
    %340 = vector.load %arg5[%c10_327, %c0_328] : memref<64x128xf32, #tpu.memory_space<vmem>>, vector<32x48xf32>
    %c3808 = arith.constant 3808 : index
    %c0_329 = arith.constant 0 : index
    %341 = vector.load %arg1[%c3808, %c0_329] : memref<4760x128xf32, #tpu.memory_space<vmem>>, vector<48x128xf32>
    %cst_330 = arith.constant dense<0.000000e+00> : vector<32x128xf32>
    %342 = tpu.matmul %340, %341, %cst_330 {dimension_numbers = #tpu.dot_dimension_numbers<[1], [0], [0], [1], [0, 0, 1, 1], [], []>} : vector<32x48xf32>, vector<48x128xf32>, vector<32x128xf32> -> vector<32x128xf32>
    %343 = arith.addf %339, %342 : vector<32x128xf32>
    %c12_331 = arith.constant 12 : index
    %c0_332 = arith.constant 0 : index
    %344 = vector.load %arg5[%c12_331, %c0_332] : memref<64x128xf32, #tpu.memory_space<vmem>>, vector<32x48xf32>
    %c3856 = arith.constant 3856 : index
    %c0_333 = arith.constant 0 : index
    %345 = vector.load %arg1[%c3856, %c0_333] : memref<4760x128xf32, #tpu.memory_space<vmem>>, vector<48x128xf32>
    %cst_334 = arith.constant dense<0.000000e+00> : vector<32x128xf32>
    %346 = tpu.matmul %344, %345, %cst_334 {dimension_numbers = #tpu.dot_dimension_numbers<[1], [0], [0], [1], [0, 0, 1, 1], [], []>} : vector<32x48xf32>, vector<48x128xf32>, vector<32x128xf32> -> vector<32x128xf32>
    %347 = arith.addf %343, %346 : vector<32x128xf32>
    %c14_335 = arith.constant 14 : index
    %c0_336 = arith.constant 0 : index
    %348 = vector.load %arg5[%c14_335, %c0_336] : memref<64x128xf32, #tpu.memory_space<vmem>>, vector<32x48xf32>
    %c3904 = arith.constant 3904 : index
    %c0_337 = arith.constant 0 : index
    %349 = vector.load %arg1[%c3904, %c0_337] : memref<4760x128xf32, #tpu.memory_space<vmem>>, vector<48x128xf32>
    %cst_338 = arith.constant dense<0.000000e+00> : vector<32x128xf32>
    %350 = tpu.matmul %348, %349, %cst_338 {dimension_numbers = #tpu.dot_dimension_numbers<[1], [0], [0], [1], [0, 0, 1, 1], [], []>} : vector<32x48xf32>, vector<48x128xf32>, vector<32x128xf32> -> vector<32x128xf32>
    %351 = arith.addf %347, %350 : vector<32x128xf32>
    %c16_339 = arith.constant 16 : index
    %c0_340 = arith.constant 0 : index
    %352 = vector.load %arg5[%c16_339, %c0_340] : memref<64x128xf32, #tpu.memory_space<vmem>>, vector<32x48xf32>
    %c3952 = arith.constant 3952 : index
    %c0_341 = arith.constant 0 : index
    %353 = vector.load %arg1[%c3952, %c0_341] : memref<4760x128xf32, #tpu.memory_space<vmem>>, vector<48x128xf32>
    %cst_342 = arith.constant dense<0.000000e+00> : vector<32x128xf32>
    %354 = tpu.matmul %352, %353, %cst_342 {dimension_numbers = #tpu.dot_dimension_numbers<[1], [0], [0], [1], [0, 0, 1, 1], [], []>} : vector<32x48xf32>, vector<48x128xf32>, vector<32x128xf32> -> vector<32x128xf32>
    %355 = arith.addf %351, %354 : vector<32x128xf32>
    %c18_343 = arith.constant 18 : index
    %c0_344 = arith.constant 0 : index
    %356 = vector.load %arg5[%c18_343, %c0_344] : memref<64x128xf32, #tpu.memory_space<vmem>>, vector<32x48xf32>
    %c4000 = arith.constant 4000 : index
    %c0_345 = arith.constant 0 : index
    %357 = vector.load %arg1[%c4000, %c0_345] : memref<4760x128xf32, #tpu.memory_space<vmem>>, vector<48x128xf32>
    %cst_346 = arith.constant dense<0.000000e+00> : vector<32x128xf32>
    %358 = tpu.matmul %356, %357, %cst_346 {dimension_numbers = #tpu.dot_dimension_numbers<[1], [0], [0], [1], [0, 0, 1, 1], [], []>} : vector<32x48xf32>, vector<48x128xf32>, vector<32x128xf32> -> vector<32x128xf32>
    %359 = arith.addf %355, %358 : vector<32x128xf32>
    %c20_347 = arith.constant 20 : index
    %c0_348 = arith.constant 0 : index
    %360 = vector.load %arg5[%c20_347, %c0_348] : memref<64x128xf32, #tpu.memory_space<vmem>>, vector<32x48xf32>
    %c4048 = arith.constant 4048 : index
    %c0_349 = arith.constant 0 : index
    %361 = vector.load %arg1[%c4048, %c0_349] : memref<4760x128xf32, #tpu.memory_space<vmem>>, vector<48x128xf32>
    %cst_350 = arith.constant dense<0.000000e+00> : vector<32x128xf32>
    %362 = tpu.matmul %360, %361, %cst_350 {dimension_numbers = #tpu.dot_dimension_numbers<[1], [0], [0], [1], [0, 0, 1, 1], [], []>} : vector<32x48xf32>, vector<48x128xf32>, vector<32x128xf32> -> vector<32x128xf32>
    %363 = arith.addf %359, %362 : vector<32x128xf32>
    %c22_351 = arith.constant 22 : index
    %c0_352 = arith.constant 0 : index
    %364 = vector.load %arg5[%c22_351, %c0_352] : memref<64x128xf32, #tpu.memory_space<vmem>>, vector<32x48xf32>
    %c4096 = arith.constant 4096 : index
    %c0_353 = arith.constant 0 : index
    %365 = vector.load %arg1[%c4096, %c0_353] : memref<4760x128xf32, #tpu.memory_space<vmem>>, vector<48x128xf32>
    %cst_354 = arith.constant dense<0.000000e+00> : vector<32x128xf32>
    %366 = tpu.matmul %364, %365, %cst_354 {dimension_numbers = #tpu.dot_dimension_numbers<[1], [0], [0], [1], [0, 0, 1, 1], [], []>} : vector<32x48xf32>, vector<48x128xf32>, vector<32x128xf32> -> vector<32x128xf32>
    %367 = arith.addf %363, %366 : vector<32x128xf32>
    %c24_355 = arith.constant 24 : index
    %c0_356 = arith.constant 0 : index
    %368 = vector.load %arg5[%c24_355, %c0_356] : memref<64x128xf32, #tpu.memory_space<vmem>>, vector<32x48xf32>
    %c4144 = arith.constant 4144 : index
    %c0_357 = arith.constant 0 : index
    %369 = vector.load %arg1[%c4144, %c0_357] : memref<4760x128xf32, #tpu.memory_space<vmem>>, vector<48x128xf32>
    %cst_358 = arith.constant dense<0.000000e+00> : vector<32x128xf32>
    %370 = tpu.matmul %368, %369, %cst_358 {dimension_numbers = #tpu.dot_dimension_numbers<[1], [0], [0], [1], [0, 0, 1, 1], [], []>} : vector<32x48xf32>, vector<48x128xf32>, vector<32x128xf32> -> vector<32x128xf32>
    %371 = arith.addf %367, %370 : vector<32x128xf32>
    %c9 = arith.constant 9 : index
    %c0_359 = arith.constant 0 : index
    %372 = vector.load %arg2[%c9, %c0_359] : memref<16x128xf32, #tpu.memory_space<vmem>>, vector<1x128xf32>
    %373 = vector.broadcast %372 : vector<1x128xf32> to vector<32x128xf32>
    %374 = arith.addf %371, %373 : vector<32x128xf32>
    %c16_360 = arith.constant 16 : index
    %c0_361 = arith.constant 0 : index
    %375 = vector.load %arg4[%c16_360, %c0_361] : memref<64x128xf32, #tpu.memory_space<vmem>>, vector<32x128xf32>
    tpu.vector_store %arg4[%c16_360, %c0_361], %374 {strides = array<i32>} : memref<64x128xf32, #tpu.memory_space<vmem>>, vector<32x128xf32>,
    %cst_362 = arith.constant 0.000000e+00 : f32
    %376 = vector.broadcast %cst_362 : f32 to vector<32x128xf32>
    %c8_363 = arith.constant 8 : index
    %c0_364 = arith.constant 0 : index
    %377 = vector.load %arg4[%c8_363, %c0_364] : memref<64x128xf32, #tpu.memory_space<vmem>>, vector<32x32xf32>
    %c4192 = arith.constant 4192 : index
    %c0_365 = arith.constant 0 : index
    %378 = vector.load %arg1[%c4192, %c0_365] : memref<4760x128xf32, #tpu.memory_space<vmem>>, vector<32x128xf32>
    %cst_366 = arith.constant dense<0.000000e+00> : vector<32x128xf32>
    %379 = tpu.matmul %377, %378, %cst_366 {dimension_numbers = #tpu.dot_dimension_numbers<[1], [0], [0], [1], [0, 0, 1, 1], [], []>} : vector<32x32xf32>, vector<32x128xf32>, vector<32x128xf32> -> vector<32x128xf32>
    %380 = arith.addf %376, %379 : vector<32x128xf32>
    %c10_367 = arith.constant 10 : index
    %c0_368 = arith.constant 0 : index
    %381 = vector.load %arg4[%c10_367, %c0_368] : memref<64x128xf32, #tpu.memory_space<vmem>>, vector<32x32xf32>
    %c4224 = arith.constant 4224 : index
    %c0_369 = arith.constant 0 : index
    %382 = vector.load %arg1[%c4224, %c0_369] : memref<4760x128xf32, #tpu.memory_space<vmem>>, vector<32x128xf32>
    %cst_370 = arith.constant dense<0.000000e+00> : vector<32x128xf32>
    %383 = tpu.matmul %381, %382, %cst_370 {dimension_numbers = #tpu.dot_dimension_numbers<[1], [0], [0], [1], [0, 0, 1, 1], [], []>} : vector<32x32xf32>, vector<32x128xf32>, vector<32x128xf32> -> vector<32x128xf32>
    %384 = arith.addf %380, %383 : vector<32x128xf32>
    %c12_371 = arith.constant 12 : index
    %c0_372 = arith.constant 0 : index
    %385 = vector.load %arg4[%c12_371, %c0_372] : memref<64x128xf32, #tpu.memory_space<vmem>>, vector<32x32xf32>
    %c4256 = arith.constant 4256 : index
    %c0_373 = arith.constant 0 : index
    %386 = vector.load %arg1[%c4256, %c0_373] : memref<4760x128xf32, #tpu.memory_space<vmem>>, vector<32x128xf32>
    %cst_374 = arith.constant dense<0.000000e+00> : vector<32x128xf32>
    %387 = tpu.matmul %385, %386, %cst_374 {dimension_numbers = #tpu.dot_dimension_numbers<[1], [0], [0], [1], [0, 0, 1, 1], [], []>} : vector<32x32xf32>, vector<32x128xf32>, vector<32x128xf32> -> vector<32x128xf32>
    %388 = arith.addf %384, %387 : vector<32x128xf32>
    %c14_375 = arith.constant 14 : index
    %c0_376 = arith.constant 0 : index
    %389 = vector.load %arg4[%c14_375, %c0_376] : memref<64x128xf32, #tpu.memory_space<vmem>>, vector<32x32xf32>
    %c4288 = arith.constant 4288 : index
    %c0_377 = arith.constant 0 : index
    %390 = vector.load %arg1[%c4288, %c0_377] : memref<4760x128xf32, #tpu.memory_space<vmem>>, vector<32x128xf32>
    %cst_378 = arith.constant dense<0.000000e+00> : vector<32x128xf32>
    %391 = tpu.matmul %389, %390, %cst_378 {dimension_numbers = #tpu.dot_dimension_numbers<[1], [0], [0], [1], [0, 0, 1, 1], [], []>} : vector<32x32xf32>, vector<32x128xf32>, vector<32x128xf32> -> vector<32x128xf32>
    %392 = arith.addf %388, %391 : vector<32x128xf32>
    %c16_379 = arith.constant 16 : index
    %c0_380 = arith.constant 0 : index
    %393 = vector.load %arg4[%c16_379, %c0_380] : memref<64x128xf32, #tpu.memory_space<vmem>>, vector<32x32xf32>
    %c4320 = arith.constant 4320 : index
    %c0_381 = arith.constant 0 : index
    %394 = vector.load %arg1[%c4320, %c0_381] : memref<4760x128xf32, #tpu.memory_space<vmem>>, vector<32x128xf32>
    %cst_382 = arith.constant dense<0.000000e+00> : vector<32x128xf32>
    %395 = tpu.matmul %393, %394, %cst_382 {dimension_numbers = #tpu.dot_dimension_numbers<[1], [0], [0], [1], [0, 0, 1, 1], [], []>} : vector<32x32xf32>, vector<32x128xf32>, vector<32x128xf32> -> vector<32x128xf32>
    %396 = arith.addf %392, %395 : vector<32x128xf32>
    %c18_383 = arith.constant 18 : index
    %c0_384 = arith.constant 0 : index
    %397 = vector.load %arg4[%c18_383, %c0_384] : memref<64x128xf32, #tpu.memory_space<vmem>>, vector<32x32xf32>
    %c4352 = arith.constant 4352 : index
    %c0_385 = arith.constant 0 : index
    %398 = vector.load %arg1[%c4352, %c0_385] : memref<4760x128xf32, #tpu.memory_space<vmem>>, vector<32x128xf32>
    %cst_386 = arith.constant dense<0.000000e+00> : vector<32x128xf32>
    %399 = tpu.matmul %397, %398, %cst_386 {dimension_numbers = #tpu.dot_dimension_numbers<[1], [0], [0], [1], [0, 0, 1, 1], [], []>} : vector<32x32xf32>, vector<32x128xf32>, vector<32x128xf32> -> vector<32x128xf32>
    %400 = arith.addf %396, %399 : vector<32x128xf32>
    %c20_387 = arith.constant 20 : index
    %c0_388 = arith.constant 0 : index
    %401 = vector.load %arg4[%c20_387, %c0_388] : memref<64x128xf32, #tpu.memory_space<vmem>>, vector<32x32xf32>
    %c4384 = arith.constant 4384 : index
    %c0_389 = arith.constant 0 : index
    %402 = vector.load %arg1[%c4384, %c0_389] : memref<4760x128xf32, #tpu.memory_space<vmem>>, vector<32x128xf32>
    %cst_390 = arith.constant dense<0.000000e+00> : vector<32x128xf32>
    %403 = tpu.matmul %401, %402, %cst_390 {dimension_numbers = #tpu.dot_dimension_numbers<[1], [0], [0], [1], [0, 0, 1, 1], [], []>} : vector<32x32xf32>, vector<32x128xf32>, vector<32x128xf32> -> vector<32x128xf32>
    %404 = arith.addf %400, %403 : vector<32x128xf32>
    %c22_391 = arith.constant 22 : index
    %c0_392 = arith.constant 0 : index
    %405 = vector.load %arg4[%c22_391, %c0_392] : memref<64x128xf32, #tpu.memory_space<vmem>>, vector<32x32xf32>
    %c4416 = arith.constant 4416 : index
    %c0_393 = arith.constant 0 : index
    %406 = vector.load %arg1[%c4416, %c0_393] : memref<4760x128xf32, #tpu.memory_space<vmem>>, vector<32x128xf32>
    %cst_394 = arith.constant dense<0.000000e+00> : vector<32x128xf32>
    %407 = tpu.matmul %405, %406, %cst_394 {dimension_numbers = #tpu.dot_dimension_numbers<[1], [0], [0], [1], [0, 0, 1, 1], [], []>} : vector<32x32xf32>, vector<32x128xf32>, vector<32x128xf32> -> vector<32x128xf32>
    %408 = arith.addf %404, %407 : vector<32x128xf32>
    %c24_395 = arith.constant 24 : index
    %c0_396 = arith.constant 0 : index
    %409 = vector.load %arg4[%c24_395, %c0_396] : memref<64x128xf32, #tpu.memory_space<vmem>>, vector<32x32xf32>
    %c4448 = arith.constant 4448 : index
    %c0_397 = arith.constant 0 : index
    %410 = vector.load %arg1[%c4448, %c0_397] : memref<4760x128xf32, #tpu.memory_space<vmem>>, vector<32x128xf32>
    %cst_398 = arith.constant dense<0.000000e+00> : vector<32x128xf32>
    %411 = tpu.matmul %409, %410, %cst_398 {dimension_numbers = #tpu.dot_dimension_numbers<[1], [0], [0], [1], [0, 0, 1, 1], [], []>} : vector<32x32xf32>, vector<32x128xf32>, vector<32x128xf32> -> vector<32x128xf32>
    %412 = arith.addf %408, %411 : vector<32x128xf32>
    %c10_399 = arith.constant 10 : index
    %c0_400 = arith.constant 0 : index
    %413 = vector.load %arg2[%c10_399, %c0_400] : memref<16x128xf32, #tpu.memory_space<vmem>>, vector<1x128xf32>
    %414 = vector.broadcast %413 : vector<1x128xf32> to vector<32x128xf32>
    %415 = arith.addf %412, %414 : vector<32x128xf32>
    %c16_401 = arith.constant 16 : index
    %c0_402 = arith.constant 0 : index
    %416 = vector.load %arg5[%c16_401, %c0_402] : memref<64x128xf32, #tpu.memory_space<vmem>>, vector<32x128xf32>
    tpu.vector_store %arg5[%c16_401, %c0_402], %415 {strides = array<i32>} : memref<64x128xf32, #tpu.memory_space<vmem>>, vector<32x128xf32>,
    %cst_403 = arith.constant 0.000000e+00 : f32
    %417 = vector.broadcast %cst_403 : f32 to vector<32x128xf32>
    %c10_404 = arith.constant 10 : index
    %c0_405 = arith.constant 0 : index
    %418 = vector.load %arg5[%c10_404, %c0_405] : memref<64x128xf32, #tpu.memory_space<vmem>>, vector<32x24xf32>
    %c4480 = arith.constant 4480 : index
    %c0_406 = arith.constant 0 : index
    %419 = vector.load %arg1[%c4480, %c0_406] : memref<4760x128xf32, #tpu.memory_space<vmem>>, vector<24x128xf32>
    %cst_407 = arith.constant dense<0.000000e+00> : vector<32x128xf32>
    %420 = tpu.matmul %418, %419, %cst_407 {dimension_numbers = #tpu.dot_dimension_numbers<[1], [0], [0], [1], [0, 0, 1, 1], [], []>} : vector<32x24xf32>, vector<24x128xf32>, vector<32x128xf32> -> vector<32x128xf32>
    %421 = arith.addf %417, %420 : vector<32x128xf32>
    %c12_408 = arith.constant 12 : index
    %c0_409 = arith.constant 0 : index
    %422 = vector.load %arg5[%c12_408, %c0_409] : memref<64x128xf32, #tpu.memory_space<vmem>>, vector<32x24xf32>
    %c4504 = arith.constant 4504 : index
    %c0_410 = arith.constant 0 : index
    %423 = vector.load %arg1[%c4504, %c0_410] : memref<4760x128xf32, #tpu.memory_space<vmem>>, vector<24x128xf32>
    %cst_411 = arith.constant dense<0.000000e+00> : vector<32x128xf32>
    %424 = tpu.matmul %422, %423, %cst_411 {dimension_numbers = #tpu.dot_dimension_numbers<[1], [0], [0], [1], [0, 0, 1, 1], [], []>} : vector<32x24xf32>, vector<24x128xf32>, vector<32x128xf32> -> vector<32x128xf32>
    %425 = arith.addf %421, %424 : vector<32x128xf32>
    %c14_412 = arith.constant 14 : index
    %c0_413 = arith.constant 0 : index
    %426 = vector.load %arg5[%c14_412, %c0_413] : memref<64x128xf32, #tpu.memory_space<vmem>>, vector<32x24xf32>
    %c4528 = arith.constant 4528 : index
    %c0_414 = arith.constant 0 : index
    %427 = vector.load %arg1[%c4528, %c0_414] : memref<4760x128xf32, #tpu.memory_space<vmem>>, vector<24x128xf32>
    %cst_415 = arith.constant dense<0.000000e+00> : vector<32x128xf32>
    %428 = tpu.matmul %426, %427, %cst_415 {dimension_numbers = #tpu.dot_dimension_numbers<[1], [0], [0], [1], [0, 0, 1, 1], [], []>} : vector<32x24xf32>, vector<24x128xf32>, vector<32x128xf32> -> vector<32x128xf32>
    %429 = arith.addf %425, %428 : vector<32x128xf32>
    %c16_416 = arith.constant 16 : index
    %c0_417 = arith.constant 0 : index
    %430 = vector.load %arg5[%c16_416, %c0_417] : memref<64x128xf32, #tpu.memory_space<vmem>>, vector<32x24xf32>
    %c4552 = arith.constant 4552 : index
    %c0_418 = arith.constant 0 : index
    %431 = vector.load %arg1[%c4552, %c0_418] : memref<4760x128xf32, #tpu.memory_space<vmem>>, vector<24x128xf32>
    %cst_419 = arith.constant dense<0.000000e+00> : vector<32x128xf32>
    %432 = tpu.matmul %430, %431, %cst_419 {dimension_numbers = #tpu.dot_dimension_numbers<[1], [0], [0], [1], [0, 0, 1, 1], [], []>} : vector<32x24xf32>, vector<24x128xf32>, vector<32x128xf32> -> vector<32x128xf32>
    %433 = arith.addf %429, %432 : vector<32x128xf32>
    %c18_420 = arith.constant 18 : index
    %c0_421 = arith.constant 0 : index
    %434 = vector.load %arg5[%c18_420, %c0_421] : memref<64x128xf32, #tpu.memory_space<vmem>>, vector<32x24xf32>
    %c4576 = arith.constant 4576 : index
    %c0_422 = arith.constant 0 : index
    %435 = vector.load %arg1[%c4576, %c0_422] : memref<4760x128xf32, #tpu.memory_space<vmem>>, vector<24x128xf32>
    %cst_423 = arith.constant dense<0.000000e+00> : vector<32x128xf32>
    %436 = tpu.matmul %434, %435, %cst_423 {dimension_numbers = #tpu.dot_dimension_numbers<[1], [0], [0], [1], [0, 0, 1, 1], [], []>} : vector<32x24xf32>, vector<24x128xf32>, vector<32x128xf32> -> vector<32x128xf32>
    %437 = arith.addf %433, %436 : vector<32x128xf32>
    %c20_424 = arith.constant 20 : index
    %c0_425 = arith.constant 0 : index
    %438 = vector.load %arg5[%c20_424, %c0_425] : memref<64x128xf32, #tpu.memory_space<vmem>>, vector<32x24xf32>
    %c4600 = arith.constant 4600 : index
    %c0_426 = arith.constant 0 : index
    %439 = vector.load %arg1[%c4600, %c0_426] : memref<4760x128xf32, #tpu.memory_space<vmem>>, vector<24x128xf32>
    %cst_427 = arith.constant dense<0.000000e+00> : vector<32x128xf32>
    %440 = tpu.matmul %438, %439, %cst_427 {dimension_numbers = #tpu.dot_dimension_numbers<[1], [0], [0], [1], [0, 0, 1, 1], [], []>} : vector<32x24xf32>, vector<24x128xf32>, vector<32x128xf32> -> vector<32x128xf32>
    %441 = arith.addf %437, %440 : vector<32x128xf32>
    %c22_428 = arith.constant 22 : index
    %c0_429 = arith.constant 0 : index
    %442 = vector.load %arg5[%c22_428, %c0_429] : memref<64x128xf32, #tpu.memory_space<vmem>>, vector<32x24xf32>
    %c4624 = arith.constant 4624 : index
    %c0_430 = arith.constant 0 : index
    %443 = vector.load %arg1[%c4624, %c0_430] : memref<4760x128xf32, #tpu.memory_space<vmem>>, vector<24x128xf32>
    %cst_431 = arith.constant dense<0.000000e+00> : vector<32x128xf32>
    %444 = tpu.matmul %442, %443, %cst_431 {dimension_numbers = #tpu.dot_dimension_numbers<[1], [0], [0], [1], [0, 0, 1, 1], [], []>} : vector<32x24xf32>, vector<24x128xf32>, vector<32x128xf32> -> vector<32x128xf32>
    %445 = arith.addf %441, %444 : vector<32x128xf32>
    %c11 = arith.constant 11 : index
    %c0_432 = arith.constant 0 : index
    %446 = vector.load %arg2[%c11, %c0_432] : memref<16x128xf32, #tpu.memory_space<vmem>>, vector<1x128xf32>
    %447 = vector.broadcast %446 : vector<1x128xf32> to vector<32x128xf32>
    %448 = arith.addf %445, %447 : vector<32x128xf32>
    %c16_433 = arith.constant 16 : index
    %c0_434 = arith.constant 0 : index
    %449 = vector.load %arg4[%c16_433, %c0_434] : memref<64x128xf32, #tpu.memory_space<vmem>>, vector<32x128xf32>
    tpu.vector_store %arg4[%c16_433, %c0_434], %448 {strides = array<i32>} : memref<64x128xf32, #tpu.memory_space<vmem>>, vector<32x128xf32>,
    %cst_435 = arith.constant 0.000000e+00 : f32
    %450 = vector.broadcast %cst_435 : f32 to vector<32x128xf32>
    %c10_436 = arith.constant 10 : index
    %c0_437 = arith.constant 0 : index
    %451 = vector.load %arg4[%c10_436, %c0_437] : memref<64x128xf32, #tpu.memory_space<vmem>>, vector<32x16xf32>
    %c4648 = arith.constant 4648 : index
    %c0_438 = arith.constant 0 : index
    %452 = vector.load %arg1[%c4648, %c0_438] : memref<4760x128xf32, #tpu.memory_space<vmem>>, vector<16x128xf32>
    %cst_439 = arith.constant dense<0.000000e+00> : vector<32x128xf32>
    %453 = tpu.matmul %451, %452, %cst_439 {dimension_numbers = #tpu.dot_dimension_numbers<[1], [0], [0], [1], [0, 0, 1, 1], [], []>} : vector<32x16xf32>, vector<16x128xf32>, vector<32x128xf32> -> vector<32x128xf32>
    %454 = arith.addf %450, %453 : vector<32x128xf32>
    %c12_440 = arith.constant 12 : index
    %c0_441 = arith.constant 0 : index
    %455 = vector.load %arg4[%c12_440, %c0_441] : memref<64x128xf32, #tpu.memory_space<vmem>>, vector<32x16xf32>
    %c4664 = arith.constant 4664 : index
    %c0_442 = arith.constant 0 : index
    %456 = vector.load %arg1[%c4664, %c0_442] : memref<4760x128xf32, #tpu.memory_space<vmem>>, vector<16x128xf32>
    %cst_443 = arith.constant dense<0.000000e+00> : vector<32x128xf32>
    %457 = tpu.matmul %455, %456, %cst_443 {dimension_numbers = #tpu.dot_dimension_numbers<[1], [0], [0], [1], [0, 0, 1, 1], [], []>} : vector<32x16xf32>, vector<16x128xf32>, vector<32x128xf32> -> vector<32x128xf32>
    %458 = arith.addf %454, %457 : vector<32x128xf32>
    %c14_444 = arith.constant 14 : index
    %c0_445 = arith.constant 0 : index
    %459 = vector.load %arg4[%c14_444, %c0_445] : memref<64x128xf32, #tpu.memory_space<vmem>>, vector<32x16xf32>
    %c4680 = arith.constant 4680 : index
    %c0_446 = arith.constant 0 : index
    %460 = vector.load %arg1[%c4680, %c0_446] : memref<4760x128xf32, #tpu.memory_space<vmem>>, vector<16x128xf32>
    %cst_447 = arith.constant dense<0.000000e+00> : vector<32x128xf32>
    %461 = tpu.matmul %459, %460, %cst_447 {dimension_numbers = #tpu.dot_dimension_numbers<[1], [0], [0], [1], [0, 0, 1, 1], [], []>} : vector<32x16xf32>, vector<16x128xf32>, vector<32x128xf32> -> vector<32x128xf32>
    %462 = arith.addf %458, %461 : vector<32x128xf32>
    %c16_448 = arith.constant 16 : index
    %c0_449 = arith.constant 0 : index
    %463 = vector.load %arg4[%c16_448, %c0_449] : memref<64x128xf32, #tpu.memory_space<vmem>>, vector<32x16xf32>
    %c4696 = arith.constant 4696 : index
    %c0_450 = arith.constant 0 : index
    %464 = vector.load %arg1[%c4696, %c0_450] : memref<4760x128xf32, #tpu.memory_space<vmem>>, vector<16x128xf32>
    %cst_451 = arith.constant dense<0.000000e+00> : vector<32x128xf32>
    %465 = tpu.matmul %463, %464, %cst_451 {dimension_numbers = #tpu.dot_dimension_numbers<[1], [0], [0], [1], [0, 0, 1, 1], [], []>} : vector<32x16xf32>, vector<16x128xf32>, vector<32x128xf32> -> vector<32x128xf32>
    %466 = arith.addf %462, %465 : vector<32x128xf32>
    %c18_452 = arith.constant 18 : index
    %c0_453 = arith.constant 0 : index
    %467 = vector.load %arg4[%c18_452, %c0_453] : memref<64x128xf32, #tpu.memory_space<vmem>>, vector<32x16xf32>
    %c4712 = arith.constant 4712 : index
    %c0_454 = arith.constant 0 : index
    %468 = vector.load %arg1[%c4712, %c0_454] : memref<4760x128xf32, #tpu.memory_space<vmem>>, vector<16x128xf32>
    %cst_455 = arith.constant dense<0.000000e+00> : vector<32x128xf32>
    %469 = tpu.matmul %467, %468, %cst_455 {dimension_numbers = #tpu.dot_dimension_numbers<[1], [0], [0], [1], [0, 0, 1, 1], [], []>} : vector<32x16xf32>, vector<16x128xf32>, vector<32x128xf32> -> vector<32x128xf32>
    %470 = arith.addf %466, %469 : vector<32x128xf32>
    %c20_456 = arith.constant 20 : index
    %c0_457 = arith.constant 0 : index
    %471 = vector.load %arg4[%c20_456, %c0_457] : memref<64x128xf32, #tpu.memory_space<vmem>>, vector<32x16xf32>
    %c4728 = arith.constant 4728 : index
    %c0_458 = arith.constant 0 : index
    %472 = vector.load %arg1[%c4728, %c0_458] : memref<4760x128xf32, #tpu.memory_space<vmem>>, vector<16x128xf32>
    %cst_459 = arith.constant dense<0.000000e+00> : vector<32x128xf32>
    %473 = tpu.matmul %471, %472, %cst_459 {dimension_numbers = #tpu.dot_dimension_numbers<[1], [0], [0], [1], [0, 0, 1, 1], [], []>} : vector<32x16xf32>, vector<16x128xf32>, vector<32x128xf32> -> vector<32x128xf32>
    %474 = arith.addf %470, %473 : vector<32x128xf32>
    %c22_460 = arith.constant 22 : index
    %c0_461 = arith.constant 0 : index
    %475 = vector.load %arg4[%c22_460, %c0_461] : memref<64x128xf32, #tpu.memory_space<vmem>>, vector<32x16xf32>
    %c4744 = arith.constant 4744 : index
    %c0_462 = arith.constant 0 : index
    %476 = vector.load %arg1[%c4744, %c0_462] : memref<4760x128xf32, #tpu.memory_space<vmem>>, vector<16x128xf32>
    %cst_463 = arith.constant dense<0.000000e+00> : vector<32x128xf32>
    %477 = tpu.matmul %475, %476, %cst_463 {dimension_numbers = #tpu.dot_dimension_numbers<[1], [0], [0], [1], [0, 0, 1, 1], [], []>} : vector<32x16xf32>, vector<16x128xf32>, vector<32x128xf32> -> vector<32x128xf32>
    %478 = arith.addf %474, %477 : vector<32x128xf32>
    %c12_464 = arith.constant 12 : index
    %c0_465 = arith.constant 0 : index
    %479 = vector.load %arg2[%c12_464, %c0_465] : memref<16x128xf32, #tpu.memory_space<vmem>>, vector<1x128xf32>
    %480 = vector.broadcast %479 : vector<1x128xf32> to vector<32x128xf32>
    %481 = arith.addf %478, %480 : vector<32x128xf32>
    %c0_466 = arith.constant 0 : index
    %c0_467 = arith.constant 0 : index
    %482 = vector.load %arg3[%c0_466, %c0_467] : memref<32x128xf32, #tpu.memory_space<vmem>>, vector<32x128xf32>
    tpu.vector_store %arg3[%c0_466, %c0_467], %481 {strides = array<i32>} : memref<32x128xf32, #tpu.memory_space<vmem>>, vector<32x128xf32>,
    return
  }
}

</mosaic_0001>

<bundles_post_ra>
// kernel: audio_model_forward.1
= control target key start
LH: loop header
LB: loop body
LE: loop exit
PB: predicated region body
PF: predicated region fallthrough
CT: control target
= control target key end

     0   :  { %8 = vsyncpa [#allocation5], 0  ;;  %s17349_s0 = inlined_call_operand.vmem [shape: f32[32,128], index: 0, kind: input, shape index: {}]   ;;  %s17350_s1 = inlined_call_operand.hbm [shape: f32[4760,128], index: 1, kind: input, shape index: {}]   ;;  %s17351_s2 = inlined_call_operand.hbm [shape: f32[16,128], index: 2, kind: input, shape index: {}]   ;;  %s17352_s3 = inlined_call_operand.vmem [shape: f32[32,128], index: 3, kind: output, shape index: {}]  }
   0x1   :  { %9 = vsyncpa [#allocation7], 0  ;;  %s16374_s12 = smov [#allocation4]   ;;  %s16326_s16 = scalar_lea.hbm %s17350_s1, 76160 }
   0x2   :  { %s17_s13 = sshll.u32 %s16374_s12, 4  ;;  %p16327_p0 = scmp.ne.s32.totalorder %s17350_s1, %s16326_s16  ;;  %s18_s13 = int_to_ptr.vmem [resolvable:$true] %s17_s13 }
   0x3   :  { %p16330_p1 = scmp.lt.u32.totalorder %s16326_s16, %s17350_s1 }
   0x5   :  { %p16332_p2 = pnand %p16330_p1, %p16327_p0 }
   0x7   :  { %16335 = shalt.err (!%p16332_p2)
}
   0x8   :  { %s16336_s21 = scalar_lea.vmem %s18_s13, 76160  ;;  %p16341_p4 = scmp.lt.s32.totalorder %s18_s13, %s18_s13 }
   0x9   :  { %p16337_p3 = scmp.ne.s32.totalorder %s18_s13, %s16336_s21  ;;  %p16342_p5 = scmp.lt.s32.totalorder %s16336_s21, %s16336_s21 }
   0xb   :  { %p16343_p6 = por %p16342_p5, %p16341_p4 }
   0xd   :  { %p16344_p7 = pnand %p16343_p6, %p16337_p3 }
   0xf   :  { %16347 = shalt.err (!%p16344_p7)
}
  0x10   :  { %s16375_s22 = smov 128   ;;  %s16376_s23 = smov 8  }
  0x11   :  { %23 = dma.hbm_to_vmem [thread:$0]  %s17350_s1, 76160, %s18_s13, [#allocation5], %s16375_s22, %s16375_s22, %s16376_s23  }
  0x12   :  { %s16377_s26 = smov [#allocation6]   ;;  %s16348_s30 = scalar_lea.hbm %s17351_s2, 256 }
  0x13   :  { %s29_s27 = sshll.u32 %s16377_s26, 4  ;;  %p16349_p8 = scmp.ne.s32.totalorder %s17351_s2, %s16348_s30  ;;  %s30_s27 = int_to_ptr.vmem [resolvable:$true] %s29_s27 }
  0x14   :  { %p16352_p9 = scmp.lt.u32.totalorder %s16348_s30, %s17351_s2 }
  0x16   :  { %p16354_p10 = pnand %p16352_p9, %p16349_p8 }
  0x18   :  { %16357 = shalt.err (!%p16354_p10)
}
  0x19   :  { %s16358_s8 = scalar_lea.vmem %s30_s27, 256  ;;  %p16363_p12 = scmp.lt.s32.totalorder %s30_s27, %s30_s27 }
  0x1a   :  { %p16359_p11 = scmp.ne.s32.totalorder %s30_s27, %s16358_s8  ;;  %p16364_p13 = scmp.lt.s32.totalorder %s16358_s8, %s16358_s8 }
  0x1c   :  { %p16365_p0 = por %p16364_p13, %p16363_p12 }
  0x1e   :  { %p16366_p1 = pnand %p16365_p0, %p16359_p11 }
  0x20   :  { %16369 = shalt.err (!%p16366_p1)
}
  0x21   :  { %35 = dma.hbm_to_vmem [thread:$0]  %s17351_s2, 256, %s30_s27, [#allocation7], %s16375_s22, %s16375_s22, %s16376_s23  }
  0x22   :  { %16370 = dma.done.wait [#allocation5], 76160  }
  0x23   :  { %16371 = vsyncadd [#allocation5], 4294891136 }
  0x24   :  { %16372 = dma.done.wait [#allocation7], 256  }
  0x25   :  { %16373 = vsyncadd [#allocation7], 4294967040  ;;  %v16378_v0 = vmov 0.0   ;;  %vm76_vm0 = vcmask 64512   ;;  %v70_v1 = vld [vmem:[#allocation4] sm:$0xff]  ;;  %v59_v3 = vld [vmem:[%s17349_s0 + $0x8] sm:$0xff] }
  0x26   :  { %42 = vst [vmem:[#allocation2] sm:$0xff] %v16378_v0  ;;  %43 = vst [vmem:[#allocation2 + $0x8] sm:$0xff] %v16378_v0  ;;  %v58_v2 = vld [vmem:[%s17349_s0] sm:$0xff]  ;;  %12986 = vmatprep.subr.mxu0 %v70_v1  ;;  %v60_v4 = vld [vmem:[%s17349_s0 + $0x10] sm:$0xff]  ;;  %vm190_vm1 = vcmask 130048   ;;  %vm519_vm2 = vcmask 195584  }
  0x27   :  { %48 = vst [vmem:[#allocation2 + $0x30] sm:$0xff] %v16378_v0  ;;  %49 = vst [vmem:[#allocation2 + $0x38] sm:$0xff] %v16378_v0  ;;  %12988 = vmatprep.mubr.msk.f32.mxu0 %vm76_vm0, %v58_v2  ;;  %12987 = vmatpush3.msra.mxu0 %v70_v1  ;;  %v61_v5 = vld [vmem:[%s17349_s0 + $0x18] sm:$0xff]  ;;  %v189_v7 = vld [vmem:[#allocation4 + $0x20] sm:$0xff]  ;;  %vm1067_vm3 = vcmask 261120   ;;  %vm2608_vm4 = vcmask 392192  }
  0x28   :  { %50 = vst [vmem:[#allocation3] sm:$0xff] %v16378_v0  ;;  %51 = vst [vmem:[#allocation3 + $0x8] sm:$0xff] %v16378_v0  ;;  %12989 = vmatmul.mubr.msk.f32.vlgmr.msra.gmra.mrb[0].mxu0 %vm76_vm0, %v59_v3  ;;  %v188_v6 = vld [vmem:[#allocation4 + $0x18] sm:$0xff]  ;;  %v182_v9 = vld [vmem:[#allocation4 + $0x8] sm:$0xff]  ;;  %vm3617_vm5 = vcmask 523264   ;;  %vm5096_vm6 = vcmask 654336  }
  0x29   :  { %56 = vst [vmem:[#allocation3 + $0x30] sm:$0xff] %v16378_v0  ;;  %57 = vst [vmem:[#allocation3 + $0x38] sm:$0xff] %v16378_v0  ;;  %12991 = vmatprep.mubr.msk.f32.mxu0 %vm76_vm0, %v60_v4  ;;  %v14794_v8 = vpack.c.bf16 %v189_v7, %v188_v6  ;;  %v183_v10 = vld [vmem:[#allocation4 + $0x10] sm:$0xff]  ;;  %v11554_v12 = vld [vmem:[#allocation6] ss:$0 sm:$0xff] }
  0x2a   :  { %v14798_v11 = vpack.c.bf16 %v183_v10, %v182_v9  ;;  %v389_v14 = vld [vmem:[#allocation4 + $0x28] sm:$0xff]  ;;  %v390_v15 = vld [vmem:[#allocation4 + $0x30] sm:$0xff]  ;;  %v517_v33 = vld [vmem:[#allocation4 + $0x58] sm:$0xff] }
  0x2b   :  { %14795 = vmatprep.subr.bf16.mxu1 %v14794_v8  ;;  %v14802_v19 = vpack.c.bf16 %v390_v15, %v389_v14  ;;  %v516_v32 = vld [vmem:[#allocation4 + $0x50] sm:$0xff]  ;;  %v518_v35 = vld [vmem:[#allocation4 + $0x60] sm:$0xff]  ;;  %v509_v36 = vld [vmem:[#allocation4 + $0x38] sm:$0xff] }
  0x2c   :  { %12992 = vmatmul.mubr.msk.f32.gmra.mrb[2].mxu0 %vm76_vm0, %v61_v5  ;;  %14797 = vmatpush3.bf16.msra.mxu1 %v14794_v8  ;;  %v14806_v34 = vpack.c.bf16 %v517_v33, %v516_v32  ;;  %v510_v37 = vld [vmem:[#allocation4 + $0x40] sm:$0xff]  ;;  %v11571_v39 = vld [vmem:[#allocation6 + $0x1] ss:$0 sm:$0xff]  ;;  %v511_v50 = vld [vmem:[#allocation4 + $0x48] sm:$0xff] }
  0x2d   :  { %14799 = vmatprep.subr.bf16.mxu1 %v14798_v11  ;;  %v14810_v38 = vpack.c.bf16 %v510_v37, %v509_v36  ;;  %v718_v51 = vld [vmem:[#allocation4 + $0x68] sm:$0xff]  ;;  %v719_v52 = vld [vmem:[#allocation4 + $0x70] sm:$0xff]  ;;  %v720_v57 = vld [vmem:[#allocation4 + $0x78] sm:$0xff] }
  0x2e   :  { %14807 = vmatprep.subr.bf16.mxu0 %v14806_v34  ;;  %v14814_v55 = vpack.c.bf16 %v719_v52, %v718_v51  ;;  %v826_v59 = vld [vmem:[#allocation4 + $0x80] sm:$0xff]  ;;  %v827_v60 = vld [vmem:[#allocation4 + $0x88] sm:$0xff]  ;;  %v828_v1 = vld [vmem:[#allocation4 + $0x90] sm:$0xff] }
  0x2f   :  { %14809 = vmatpush3.bf16.msra.mxu0 %v14806_v34  ;;  %v14818_v62 = vpack.c.bf16 %v827_v60, %v826_v59  ;;  %v934_v2 = vld [vmem:[#allocation4 + $0x98] sm:$0xff]  ;;  %v935_v3 = vld [vmem:[#allocation4 + $0xa0] sm:$0xff]  ;;  %v936_v7 = vld [vmem:[#allocation4 + $0xa8] sm:$0xff] }
  0x30   :  { %13028 = vmatprep.subr.mxu0 %v518_v35  ;;  %v14822_v4 = vpack.c.bf16 %v935_v3, %v934_v2  ;;  %v1065_v14 = vld [vmem:[#allocation4 + $0xe0] sm:$0xff]  ;;  %v1066_v15 = vld [vmem:[#allocation4 + $0xe8] sm:$0xff]  ;;  %v1266_v34 = vld [vmem:[#allocation4 + $0xf0] sm:$0xff] }
  0x31   :  { %v1486_v59 = vld [vmem:[#allocation4 + $0x140] sm:$0xff]  ;;  %v1487_v60 = vld [vmem:[#allocation4 + $0x148] sm:$0xff] }
  0x32   :  { %v1595_v2 = vld [vmem:[#allocation4 + $0x160] sm:$0xff]  ;;  %v1596_v3 = vld [vmem:[#allocation4 + $0x168] sm:$0xff] }
  0x33   :  { %13029 = vmatpush3.msra.mxu0 %v518_v35  ;;  %v1267_v35 = vld [vmem:[#allocation4 + $0xf8] sm:$0xff] }
  0x34   :  { %14811 = vmatprep.subr.bf16.mxu0 %v14810_v38 }
  0xfb   :  { %v12990_v13 = vpop.f32.mrb[0].mxu0 }
  0xfc   :  { %v161_v16 = vadd.f32 %v12990_v13, %v11554_v12  ;;  %v155_v17 = vpop.f32.mrb[1].mxu0 }
  0xfd   :  { %v156_v18 = vadd.f32 %v11554_v12, %v155_v17  ;;  %v1055_v17 = vld [vmem:[#allocation4 + $0xb0] sm:$0xff] }
  0xfe   :  { %175 = vst [vmem:[#allocation3 + $0x18] sm:$0xff] %v161_v16 }
  0xff   :  { %174 = vst [vmem:[#allocation3 + $0x10] sm:$0xff] %v156_v18  ;;  %v12993_v20 = vpop.f32.mrb[2].mxu0  ;;  %12998 = vmatprep.mubr.msk.f32.mxu1 %vm190_vm1, %v156_v18  ;;  %v1056_v18 = vld [vmem:[#allocation4 + $0xb8] sm:$0xff] }
 0x100   :  { %v171_v21 = vadd.f32 %v12993_v20, %v11554_v12  ;;  %v165_v22 = vpop.f32.mrb[3].mxu0  ;;  %12999 = vmatmul.mubr.msk.f32.vlgmr.msra.gmra.mrb[0].mxu1 %vm190_vm1, %v161_v16  ;;  %v14830_v16 = vpack.c.bf16 %v1066_v15, %v1065_v14  ;;  %v11592_v20 = vld [vmem:[#allocation6 + $0x2] ss:$0 sm:$0xff]  ;;  %v1832_v14 = vld [vmem:[#allocation4 + $0x1b0] sm:$0xff] }
 0x101   :  { %v166_v23 = vadd.f32 %v11554_v12, %v165_v22  ;;  %14801 = vmatpush3.bf16.msra.mxu1 %v14798_v11  ;;  %v1063_v11 = vld [vmem:[#allocation4 + $0xd0] sm:$0xff]  ;;  %v1064_v12 = vld [vmem:[#allocation4 + $0xd8] sm:$0xff] }
 0x102   :  { %177 = vst [vmem:[#allocation3 + $0x28] sm:$0xff] %v171_v21  ;;  %14803 = vmatprep.subr.bf16.mxu1 %v14802_v19  ;;  %v14826_v13 = vpack.c.bf16 %v1064_v12, %v1063_v11  ;;  %v1833_v15 = vld [vmem:[#allocation4 + $0x1b8] sm:$0xff] }
 0x103   :  { %176 = vst [vmem:[#allocation3 + $0x20] sm:$0xff] %v166_v23  ;;  %13001 = vmatprep.mubr.msk.f32.mxu1 %vm190_vm1, %v166_v23 }
 0x104   :  { %13002 = vmatmul.mubr.msk.f32.gmra.mrb[2].mxu1 %vm190_vm1, %v171_v21 }
 0x106   :  { %v178_v24 = vld [vmem:[#allocation3 + $0xe] sm:$0xff]  ;;  %v179_v25 = vld [vmem:[#allocation3 + $0x16] sm:$0xff] }
 0x107   :  { %13008 = vmatprep.mubr.msk.f32.mxu1 %vm190_vm1, %v178_v24  ;;  %v385_v28 = vld [vmem:[#allocation3 + $0x12] sm:$0xff] }
 0x108   :  { %13009 = vmatmul.mubr.msk.f32.vlgmr.msra.gmra.mrb[0].mxu1 %vm190_vm1, %v179_v25 }
 0x109   :  { %14805 = vmatpush3.bf16.msra.mxu1 %v14802_v19  ;;  %v388_v31 = vld [vmem:[#allocation3 + $0x2a] sm:$0xff]  ;;  %v14834_v19 = vpack.c.bf16 %v1056_v18, %v1055_v17  ;;  %v1834_v17 = vld [vmem:[#allocation4 + $0x1c0] sm:$0xff] }
 0x10a   :  { %v180_v26 = vld [vmem:[#allocation3 + $0x1e] sm:$0xff]  ;;  %v181_v27 = vld [vmem:[#allocation3 + $0x26] sm:$0xff]  ;;  %14827 = vmatprep.subr.bf16.mxu1 %v14826_v13 }
 0x10b   :  { %13011 = vmatprep.mubr.msk.f32.mxu1 %vm190_vm1, %v180_v26  ;;  %v386_v29 = vld [vmem:[#allocation3 + $0x1a] sm:$0xff]  ;;  %v387_v30 = vld [vmem:[#allocation3 + $0x22] sm:$0xff] }
 0x10c   :  { %13012 = vmatmul.mubr.msk.f32.gmra.mrb[2].mxu1 %vm190_vm1, %v181_v27  ;;  %v1835_v18 = vld [vmem:[#allocation4 + $0x1c8] sm:$0xff] }
 0x10d   :  { %13018 = vmatprep.mubr.msk.f32.mxu1 %vm190_vm1, %v385_v28 }
 0x110   :  { %13019 = vmatmul.mubr.msk.f32.vlgmr.msra.gmra.mrb[0].mxu1 %vm190_vm1, %v386_v29  ;;  %v1057_v29 = vld [vmem:[#allocation4 + $0xc0] sm:$0xff] }
 0x111   :  { %13021 = vmatprep.mubr.msk.f32.mxu1 %vm190_vm1, %v387_v30  ;;  %14829 = vmatpush3.bf16.msra.mxu1 %v14826_v13  ;;  %v1058_v30 = vld [vmem:[#allocation4 + $0xc8] sm:$0xff] }
 0x112   :  { %14831 = vmatprep.subr.bf16.mxu1 %v14830_v16  ;;  %v14838_v33 = vpack.c.bf16 %v1058_v30, %v1057_v29 }
 0x114   :  { %13022 = vmatmul.mubr.msk.f32.gmra.mrb[2].mxu1 %vm190_vm1, %v388_v31 }
 0x115   :  { %14833 = vmatpush3.bf16.msra.mxu1 %v14830_v16  ;;  %v14882_v16 = vpack.c.bf16 %v1833_v15, %v1832_v14 }
 0x116   :  { %14835 = vmatprep.subr.bf16.mxu1 %v14834_v19 }
 0x1e3   :  { %v13020_v40 = vpop.f32.mrb[0].mxu1 }
 0x1e4   :  { %v498_v41 = vadd.f32 %v13020_v40, %v11571_v39  ;;  %v469_v42 = vpop.f32.mrb[1].mxu1  ;;  %v1269_v40 = vld [vmem:[#allocation4 + $0x108] sm:$0xff] }
 0x1e5   :  { %v497_v43 = vadd.f32 %v11571_v39, %v469_v42 }
 0x1e6   :  { %502 = vst [vmem:[#allocation2 + $0x18] sm:$0xff] %v498_v41 }
 0x1e7   :  { %501 = vst [vmem:[#allocation2 + $0x10] sm:$0xff] %v497_v43  ;;  %v13023_v44 = vpop.f32.mrb[2].mxu1 }
 0x1e8   :  { %v500_v45 = vadd.f32 %v13023_v44, %v11571_v39  ;;  %v479_v46 = vpop.f32.mrb[3].mxu1  ;;  %v1375_v44 = vld [vmem:[#allocation4 + $0x110] sm:$0xff] }
 0x1e9   :  { %v499_v47 = vadd.f32 %v11571_v39, %v479_v46  ;;  %v1268_v39 = vld [vmem:[#allocation4 + $0x100] sm:$0xff] }
 0x1ea   :  { %504 = vst [vmem:[#allocation2 + $0x28] sm:$0xff] %v500_v45  ;;  %v14846_v42 = vpack.c.bf16 %v1269_v40, %v1268_v39 }
 0x1eb   :  { %503 = vst [vmem:[#allocation2 + $0x20] sm:$0xff] %v499_v47 }
 0x1ee   :  { %v512_v48 = vld [vmem:[#allocation2 + $0xe] sm:$0xff]  ;;  %v513_v49 = vld [vmem:[#allocation2 + $0x16] sm:$0xff] }
 0x1ef   :  { %13030 = vmatprep.mubr.msk.f32.mxu0 %vm519_vm2, %v512_v48  ;;  %v505_v56 = vld [vmem:[#allocation2 + $0xc] sm:$0xff]  ;;  %v506_v58 = vld [vmem:[#allocation2 + $0x14] sm:$0xff] }
 0x1f0   :  { %13031 = vmatmul.mubr.msk.f32.vlgmr.msra.gmra.mrb[4].mxu0 %vm519_vm2, %v513_v49  ;;  %v822_v5 = vld [vmem:[#allocation2 + $0x12] sm:$0xff]  ;;  %v1377_v49 = vld [vmem:[#allocation4 + $0x120] sm:$0xff] }
 0x1f1   :  { %14813 = vmatpush3.bf16.msra.mxu0 %v14810_v38  ;;  %v825_v9 = vld [vmem:[#allocation2 + $0x2a] sm:$0xff]  ;;  %v14842_v38 = vpack.c.bf16 %v1267_v35, %v1266_v34 }
 0x1f2   :  { %v514_v53 = vld [vmem:[#allocation2 + $0x1e] sm:$0xff]  ;;  %13040 = vmatprep.subr.mxu0 %v511_v50  ;;  %v515_v54 = vld [vmem:[#allocation2 + $0x26] sm:$0xff] }
 0x1f3   :  { %13033 = vmatprep.mubr.msk.f32.mxu0 %vm519_vm2, %v514_v53  ;;  %v507_v61 = vld [vmem:[#allocation2 + $0x1c] sm:$0xff]  ;;  %v508_v63 = vld [vmem:[#allocation2 + $0x24] sm:$0xff]  ;;  %v933_v10 = vld [vmem:[#allocation2 + $0x2c] sm:$0xff] }
 0x1f4   :  { %13034 = vmatmul.mubr.msk.f32.gmra.mrb[6].mxu0 %vm519_vm2, %v515_v54  ;;  %v823_v6 = vld [vmem:[#allocation2 + $0x1a] sm:$0xff]  ;;  %v824_v8 = vld [vmem:[#allocation2 + $0x22] sm:$0xff]  ;;  %v1484_v54 = vld [vmem:[#allocation4 + $0x130] sm:$0xff] }
 0x1f5   :  { %13041 = vmatpush3.msra.mxu0 %v511_v50  ;;  %13042 = vmatprep.mubr.msk.f32.mxu0 %vm519_vm2, %v505_v56  ;;  %v1378_v50 = vld [vmem:[#allocation4 + $0x128] sm:$0xff] }
 0x1f6   :  { %14815 = vmatprep.subr.bf16.mxu0 %v14814_v55  ;;  %v14854_v52 = vpack.c.bf16 %v1378_v50, %v1377_v49 }
 0x1f8   :  { %13043 = vmatmul.mubr.msk.f32.vlgmr.msra.gmra.mrb[4].mxu0 %vm519_vm2, %v506_v58 }
 0x1f9   :  { %14817 = vmatpush3.bf16.msra.mxu0 %v14814_v55  ;;  %13045 = vmatprep.mubr.msk.f32.mxu0 %vm519_vm2, %v507_v61  ;;  %v1485_v55 = vld [vmem:[#allocation4 + $0x138] sm:$0xff] }
 0x1fa   :  { %13052 = vmatprep.subr.mxu0 %v720_v57 }
 0x1fc   :  { %13046 = vmatmul.mubr.msk.f32.gmra.mrb[6].mxu0 %vm519_vm2, %v508_v63 }
 0x1fd   :  { %13053 = vmatpush3.msra.mxu0 %v720_v57  ;;  %13054 = vmatprep.mubr.msk.f32.mxu0 %vm519_vm2, %v497_v43  ;;  %v14858_v57 = vpack.c.bf16 %v1485_v55, %v1484_v54 }
 0x1fe   :  { %14819 = vmatprep.subr.bf16.mxu0 %v14818_v62 }
 0x200   :  { %13055 = vmatmul.mubr.msk.f32.vlgmr.msra.gmra.mrb[4].mxu0 %vm519_vm2, %v498_v41 }
 0x201   :  { %14821 = vmatpush3.bf16.msra.mxu0 %v14818_v62  ;;  %13057 = vmatprep.mubr.msk.f32.mxu0 %vm519_vm2, %v499_v47  ;;  %v1593_v62 = vld [vmem:[#allocation4 + $0x150] sm:$0xff] }
 0x202   :  { %13064 = vmatprep.subr.mxu0 %v828_v1 }
 0x204   :  { %13058 = vmatmul.mubr.msk.f32.gmra.mrb[6].mxu0 %vm519_vm2, %v500_v45  ;;  %v1376_v45 = vld [vmem:[#allocation4 + $0x118] sm:$0xff] }
 0x205   :  { %13065 = vmatpush3.msra.mxu0 %v828_v1  ;;  %13066 = vmatprep.mubr.msk.f32.mxu0 %vm519_vm2, %v822_v5  ;;  %v14850_v47 = vpack.c.bf16 %v1376_v45, %v1375_v44  ;;  %v1702_v5 = vld [vmem:[#allocation4 + $0x170] sm:$0xff] }
 0x206   :  { %14823 = vmatprep.subr.bf16.mxu0 %v14822_v4 }
 0x208   :  { %13067 = vmatmul.mubr.msk.f32.vlgmr.msra.gmra.mrb[4].mxu0 %vm519_vm2, %v823_v6  ;;  %v1703_v6 = vld [vmem:[#allocation4 + $0x178] sm:$0xff] }
 0x209   :  { %14825 = vmatpush3.bf16.msra.mxu0 %v14822_v4  ;;  %13069 = vmatprep.mubr.msk.f32.mxu0 %vm519_vm2, %v824_v8  ;;  %v14870_v4 = vpack.c.bf16 %v1596_v3, %v1595_v2  ;;  %v2361_v2 = vld [vmem:[#allocation4 + $0x230] sm:$0xff]  ;;  %v2362_v3 = vld [vmem:[#allocation4 + $0x238] sm:$0xff] }
 0x20a   :  { %13076 = vmatprep.subr.mxu0 %v936_v7 }
 0x20c   :  { %13070 = vmatmul.mubr.msk.f32.gmra.mrb[6].mxu0 %vm519_vm2, %v825_v9  ;;  %v1704_v9 = vld [vmem:[#allocation4 + $0x180] sm:$0xff] }
 0x20d   :  { %13077 = vmatpush3.msra.mxu0 %v936_v7  ;;  %13078 = vmatprep.mubr.msk.f32.mxu0 %vm519_vm2, %v506_v58  ;;  %v14874_v7 = vpack.c.bf16 %v1703_v6, %v1702_v5  ;;  %v2363_v5 = vld [vmem:[#allocation4 + $0x240] sm:$0xff]  ;;  %v2364_v6 = vld [vmem:[#allocation4 + $0x248] sm:$0xff] }
 0x20e   :  { %14883 = vmatprep.subr.bf16.mxu0 %v14882_v16 }
 0x210   :  { %13079 = vmatmul.mubr.msk.f32.vlgmr.msra.gmra.mrb[4].mxu0 %vm519_vm2, %v507_v61  ;;  %v14862_v61 = vpack.c.bf16 %v1487_v60, %v1486_v59 }
 0x211   :  { %13081 = vmatprep.mubr.msk.f32.mxu0 %vm519_vm2, %v508_v63  ;;  %v1594_v63 = vld [vmem:[#allocation4 + $0x158] sm:$0xff]  ;;  %14885 = vmatpush3.bf16.msra.mxu0 %v14882_v16 }
 0x212   :  { %v14866_v1 = vpack.c.bf16 %v1594_v63, %v1593_v62  ;;  %v2254_v62 = vld [vmem:[#allocation4 + $0x220] sm:$0xff]  ;;  %v2255_v63 = vld [vmem:[#allocation4 + $0x228] sm:$0xff] }
 0x214   :  { %13082 = vmatmul.mubr.msk.f32.gmra.mrb[6].mxu0 %vm519_vm2, %v933_v10  ;;  %v1705_v10 = vld [vmem:[#allocation4 + $0x188] sm:$0xff] }
 0x215   :  { %v14878_v11 = vpack.c.bf16 %v1705_v10, %v1704_v9  ;;  %v2471_v9 = vld [vmem:[#allocation4 + $0x258] sm:$0xff] }
 0x2e3   :  { %v13080_v21 = vpop.f32.mrb[4].mxu0 }
 0x2e4   :  { %v16475_v22 = vadd.f32 %v13080_v21, %v11592_v20  ;;  %v1015_v23 = vpop.f32.mrb[5].mxu0  ;;  %v1825_v21 = vld [vmem:[#allocation4 + $0x198] sm:$0xff] }
 0x2e5   :  { %v16477_v24 = vadd.f32 %v11592_v20, %v1015_v23  ;;  %v11621_v23 = vld [vmem:[#allocation6 + $0x3] ss:$0 sm:$0xff] }
 0x2e6   :  { %1048 = vst [vmem:[#allocation3 + $0x18] sm:$0xff] %v16475_v22 }
 0x2e7   :  { %1047 = vst [vmem:[#allocation3 + $0x10] sm:$0xff] %v16477_v24  ;;  %v13083_v25 = vpop.f32.mrb[6].mxu0 }
 0x2e8   :  { %v16481_v26 = vadd.f32 %v13083_v25, %v11592_v20  ;;  %v1025_v27 = vpop.f32.mrb[7].mxu0 }
 0x2e9   :  { %v16483_v28 = vadd.f32 %v11592_v20, %v1025_v27  ;;  %v1824_v20 = vld [vmem:[#allocation4 + $0x190] sm:$0xff] }
 0x2ea   :  { %1050 = vst [vmem:[#allocation3 + $0x28] sm:$0xff] %v16481_v26 }
 0x2eb   :  { %1049 = vst [vmem:[#allocation3 + $0x20] sm:$0xff] %v16483_v28 }
 0x2ee   :  { %v1059_v31 = vld [vmem:[#allocation3 + $0xc] sm:$0xff]  ;;  %v16487_v32 = vld [vmem:[#allocation3 + $0x14] sm:$0xff] }
 0x2ef   :  { %13092 = vmatprep.mubr.msk.f32.mxu1 %vm1067_vm3, %v1059_v31  ;;  %v1051_v41 = vld [vmem:[#allocation3 + $0xa] sm:$0xff]  ;;  %v1052_v43 = vld [vmem:[#allocation3 + $0x12] sm:$0xff] }
 0x2f0   :  { %13093 = vmatmul.mubr.msk.f32.vlgmr.msra.gmra.mrb[4].mxu1 %vm1067_vm3, %v16487_v32  ;;  %v1262_v51 = vld [vmem:[#allocation3 + $0xe] sm:$0xff]  ;;  %v1263_v53 = vld [vmem:[#allocation3 + $0x16] sm:$0xff] }
 0x2f1   :  { %14837 = vmatpush3.bf16.msra.mxu1 %v14834_v19  ;;  %v1483_v8 = vld [vmem:[#allocation3 + $0x2a] sm:$0xff]  ;;  %v14886_v19 = vpack.c.bf16 %v1835_v18, %v1834_v17  ;;  %v2602_v17 = vld [vmem:[#allocation4 + $0x2a0] sm:$0xff] }
 0x2f2   :  { %v16492_v36 = vld [vmem:[#allocation3 + $0x1c] sm:$0xff]  ;;  %14839 = vmatprep.subr.bf16.mxu1 %v14838_v33  ;;  %v16494_v37 = vld [vmem:[#allocation3 + $0x24] sm:$0xff]  ;;  %v1592_v12 = vld [vmem:[#allocation3 + $0x2c] sm:$0xff] }
 0x2f3   :  { %13095 = vmatprep.mubr.msk.f32.mxu1 %vm1067_vm3, %v16492_v36  ;;  %v1053_v46 = vld [vmem:[#allocation3 + $0x1a] sm:$0xff]  ;;  %v1054_v48 = vld [vmem:[#allocation3 + $0x22] sm:$0xff]  ;;  %v1701_v13 = vld [vmem:[#allocation3 + $0x2e] sm:$0xff]  ;;  %14887 = vmatprep.subr.bf16.mxu0 %v14886_v19 }
 0x2f4   :  { %13096 = vmatmul.mubr.msk.f32.gmra.mrb[6].mxu1 %vm1067_vm3, %v16494_v37  ;;  %v1264_v56 = vld [vmem:[#allocation3 + $0x1e] sm:$0xff]  ;;  %v1265_v58 = vld [vmem:[#allocation3 + $0x26] sm:$0xff]  ;;  %14889 = vmatpush3.bf16.msra.mxu0 %v14886_v19 }
 0x2f5   :  { %14841 = vmatpush3.bf16.msra.mxu1 %v14838_v33  ;;  %13106 = vmatprep.mubr.msk.f32.mxu1 %vm1067_vm3, %v1051_v41  ;;  %v1827_v33 = vld [vmem:[#allocation4 + $0x1a8] sm:$0xff] }
 0x2f6   :  { %14843 = vmatprep.subr.bf16.mxu1 %v14842_v38  ;;  %v2603_v18 = vld [vmem:[#allocation4 + $0x2a8] sm:$0xff] }
 0x2f7   :  { %v14938_v19 = vpack.c.bf16 %v2603_v18, %v2602_v17  ;;  %v3032_v17 = vld [vmem:[#allocation4 + $0x348] sm:$0xff] }
 0x2f8   :  { %13107 = vmatmul.mubr.msk.f32.vlgmr.msra.gmra.mrb[4].mxu1 %vm1067_vm3, %v1052_v43 }
 0x2f9   :  { %14845 = vmatpush3.bf16.msra.mxu1 %v14842_v38  ;;  %13109 = vmatprep.mubr.msk.f32.mxu1 %vm1067_vm3, %v1053_v46  ;;  %v2035_v38 = vld [vmem:[#allocation4 + $0x1d8] sm:$0xff] }
 0x2fa   :  { %14847 = vmatprep.subr.bf16.mxu1 %v14846_v42 }
 0x2fc   :  { %13110 = vmatmul.mubr.msk.f32.gmra.mrb[6].mxu1 %vm1067_vm3, %v1054_v48 }
 0x2fd   :  { %14849 = vmatpush3.bf16.msra.mxu1 %v14846_v42  ;;  %13120 = vmatprep.mubr.msk.f32.mxu1 %vm1067_vm3, %v1262_v51  ;;  %v2036_v42 = vld [vmem:[#allocation4 + $0x1e0] sm:$0xff] }
 0x2fe   :  { %14851 = vmatprep.subr.bf16.mxu1 %v14850_v47 }
 0x300   :  { %13121 = vmatmul.mubr.msk.f32.vlgmr.msra.gmra.mrb[4].mxu1 %vm1067_vm3, %v1263_v53 }
 0x301   :  { %14853 = vmatpush3.bf16.msra.mxu1 %v14850_v47  ;;  %13123 = vmatprep.mubr.msk.f32.mxu1 %vm1067_vm3, %v1264_v56  ;;  %v2143_v47 = vld [vmem:[#allocation4 + $0x1f0] sm:$0xff] }
 0x302   :  { %14855 = vmatprep.subr.bf16.mxu1 %v14854_v52 }
 0x304   :  { %13124 = vmatmul.mubr.msk.f32.gmra.mrb[6].mxu1 %vm1067_vm3, %v1265_v58 }
 0x305   :  { %14857 = vmatpush3.bf16.msra.mxu1 %v14854_v52  ;;  %13134 = vmatprep.mubr.msk.f32.mxu1 %vm1067_vm3, %v16477_v24  ;;  %v2145_v52 = vld [vmem:[#allocation4 + $0x200] sm:$0xff] }
 0x306   :  { %14859 = vmatprep.subr.bf16.mxu1 %v14858_v57 }
 0x308   :  { %13135 = vmatmul.mubr.msk.f32.vlgmr.msra.gmra.mrb[4].mxu1 %vm1067_vm3, %v16475_v22  ;;  %v14890_v22 = vpack.c.bf16 %v1825_v21, %v1824_v20  ;;  %v2604_v20 = vld [vmem:[#allocation4 + $0x2b0] sm:$0xff]  ;;  %v2605_v21 = vld [vmem:[#allocation4 + $0x2b8] sm:$0xff] }
 0x309   :  { %14861 = vmatpush3.bf16.msra.mxu1 %v14858_v57  ;;  %13137 = vmatprep.mubr.msk.f32.mxu1 %vm1067_vm3, %v16483_v28  ;;  %v2252_v57 = vld [vmem:[#allocation4 + $0x210] sm:$0xff] }
 0x30a   :  { %14863 = vmatprep.subr.bf16.mxu1 %v14862_v61  ;;  %14891 = vmatprep.subr.bf16.mxu0 %v14890_v22 }
 0x30c   :  { %13138 = vmatmul.mubr.msk.f32.gmra.mrb[6].mxu1 %vm1067_vm3, %v16481_v26 }
 0x30d   :  { %14865 = vmatpush3.bf16.msra.mxu1 %v14862_v61  ;;  %13148 = vmatprep.mubr.msk.f32.mxu1 %vm1067_vm3, %v1052_v43  ;;  %v2037_v43 = vld [vmem:[#allocation4 + $0x1e8] sm:$0xff] }
 0x30e   :  { %14867 = vmatprep.subr.bf16.mxu1 %v14866_v1  ;;  %v14902_v45 = vpack.c.bf16 %v2037_v43, %v2036_v42 }
 0x310   :  { %13149 = vmatmul.mubr.msk.f32.vlgmr.msra.gmra.mrb[4].mxu1 %vm1067_vm3, %v1053_v46 }
 0x311   :  { %14869 = vmatpush3.bf16.msra.mxu1 %v14866_v1  ;;  %13151 = vmatprep.mubr.msk.f32.mxu1 %vm1067_vm3, %v1054_v48  ;;  %v2144_v48 = vld [vmem:[#allocation4 + $0x1f8] sm:$0xff]  ;;  %v14918_v1 = vpack.c.bf16 %v2255_v63, %v2254_v62  ;;  %v2918_v63 = vld [vmem:[#allocation4 + $0x300] sm:$0xff] }
 0x312   :  { %14871 = vmatprep.subr.bf16.mxu1 %v14870_v4  ;;  %v14906_v50 = vpack.c.bf16 %v2144_v48, %v2143_v47 }
 0x314   :  { %13152 = vmatmul.mubr.msk.f32.gmra.mrb[6].mxu1 %vm1067_vm3, %v1483_v8  ;;  %v2470_v8 = vld [vmem:[#allocation4 + $0x250] sm:$0xff] }
 0x315   :  { %14873 = vmatpush3.bf16.msra.mxu1 %v14870_v4  ;;  %13162 = vmatprep.mubr.msk.f32.mxu1 %vm1067_vm3, %v16487_v32  ;;  %v1826_v32 = vld [vmem:[#allocation4 + $0x1a0] sm:$0xff]  ;;  %v14922_v4 = vpack.c.bf16 %v2362_v3, %v2361_v2  ;;  %v14930_v10 = vpack.c.bf16 %v2471_v9, %v2470_v8  ;;  %v2920_v3 = vld [vmem:[#allocation4 + $0x310] sm:$0xff]  ;;  %v2923_v8 = vld [vmem:[#allocation4 + $0x328] sm:$0xff] }
 0x316   :  { %14875 = vmatprep.subr.bf16.mxu1 %v14874_v7 }
 0x318   :  { %13163 = vmatmul.mubr.msk.f32.vlgmr.msra.gmra.mrb[4].mxu1 %vm1067_vm3, %v16492_v36  ;;  %v14894_v36 = vpack.c.bf16 %v1827_v33, %v1826_v32  ;;  %v3599_v32 = vld [vmem:[#allocation4 + $0x430] sm:$0xff]  ;;  %v3600_v33 = vld [vmem:[#allocation4 + $0x438] sm:$0xff] }
 0x319   :  { %14877 = vmatpush3.bf16.msra.mxu1 %v14874_v7  ;;  %13165 = vmatprep.mubr.msk.f32.mxu1 %vm1067_vm3, %v16494_v37  ;;  %v2034_v37 = vld [vmem:[#allocation4 + $0x1d0] sm:$0xff]  ;;  %v14926_v7 = vpack.c.bf16 %v2364_v6, %v2363_v5 }
 0x31a   :  { %14879 = vmatprep.subr.bf16.mxu1 %v14878_v11  ;;  %v14898_v41 = vpack.c.bf16 %v2035_v38, %v2034_v37 }
 0x31c   :  { %13166 = vmatmul.mubr.msk.f32.gmra.mrb[6].mxu1 %vm1067_vm3, %v1592_v12  ;;  %v2472_v12 = vld [vmem:[#allocation4 + $0x260] sm:$0xff] }
 0x31d   :  { %14881 = vmatpush3.bf16.msra.mxu1 %v14878_v11  ;;  %13176 = vmatprep.mubr.msk.f32.mxu1 %vm1067_vm3, %v1263_v53  ;;  %v2146_v53 = vld [vmem:[#allocation4 + $0x208] sm:$0xff] }
 0x31e   :  { %v14910_v55 = vpack.c.bf16 %v2146_v53, %v2145_v52  ;;  %14939 = vmatprep.subr.bf16.mxu1 %v14938_v19 }
 0x320   :  { %13177 = vmatmul.mubr.msk.f32.vlgmr.msra.gmra.mrb[4].mxu1 %vm1067_vm3, %v1264_v56 }
 0x321   :  { %13179 = vmatprep.mubr.msk.f32.mxu1 %vm1067_vm3, %v1265_v58  ;;  %v2253_v58 = vld [vmem:[#allocation4 + $0x218] sm:$0xff]  ;;  %14941 = vmatpush3.bf16.msra.mxu1 %v14938_v19 }
 0x322   :  { %v14914_v60 = vpack.c.bf16 %v2253_v58, %v2252_v57  ;;  %v2809_v57 = vld [vmem:[#allocation4 + $0x2e0] sm:$0xff]  ;;  %v2810_v58 = vld [vmem:[#allocation4 + $0x2e8] sm:$0xff] }
 0x324   :  { %13180 = vmatmul.mubr.msk.f32.gmra.mrb[6].mxu1 %vm1067_vm3, %v1701_v13  ;;  %v2473_v13 = vld [vmem:[#allocation4 + $0x268] sm:$0xff] }
 0x325   :  { %v14934_v14 = vpack.c.bf16 %v2473_v13, %v2472_v12  ;;  %v3029_v12 = vld [vmem:[#allocation4 + $0x330] sm:$0xff]  ;;  %v3030_v13 = vld [vmem:[#allocation4 + $0x338] sm:$0xff] }
 0x3f3   :  { %v13178_v24 = vpop.f32.mrb[4].mxu1 }
 0x3f4   :  { %v16531_v25 = vadd.f32 %v13178_v24, %v11621_v23  ;;  %v1784_v26 = vpop.f32.mrb[5].mxu1  ;;  %v2607_v24 = vld [vmem:[#allocation4 + $0x2c8] sm:$0xff] }
 0x3f5   :  { %v16533_v27 = vadd.f32 %v11621_v23, %v1784_v26  ;;  %v2592_v26 = vld [vmem:[#allocation4 + $0x270] sm:$0xff] }
 0x3f6   :  { %1817 = vst [vmem:[#allocation2 + $0x18] sm:$0xff] %v16531_v25 }
 0x3f7   :  { %1816 = vst [vmem:[#allocation2 + $0x10] sm:$0xff] %v16533_v27  ;;  %v13181_v28 = vpop.f32.mrb[6].mxu1 }
 0x3f8   :  { %v16537_v29 = vadd.f32 %v13181_v28, %v11621_v23  ;;  %v1794_v30 = vpop.f32.mrb[7].mxu1 }
 0x3f9   :  { %v16539_v31 = vadd.f32 %v11621_v23, %v1794_v30  ;;  %v2606_v23 = vld [vmem:[#allocation4 + $0x2c0] sm:$0xff]  ;;  %v3598_v30 = vld [vmem:[#allocation4 + $0x428] sm:$0xff] }
 0x3fa   :  { %1819 = vst [vmem:[#allocation2 + $0x28] sm:$0xff] %v16537_v29 }
 0x3fb   :  { %1818 = vst [vmem:[#allocation2 + $0x20] sm:$0xff] %v16539_v31 }
 0x3fe   :  { %v1828_v34 = vld [vmem:[#allocation2 + $0xc] sm:$0xff]  ;;  %v16543_v35 = vld [vmem:[#allocation2 + $0x14] sm:$0xff] }
 0x3ff   :  { %13190 = vmatprep.mubr.msk.f32.mxu0 %vm1067_vm3, %v1828_v34  ;;  %v1820_v44 = vld [vmem:[#allocation2 + $0xa] sm:$0xff]  ;;  %v1821_v46 = vld [vmem:[#allocation2 + $0x12] sm:$0xff]  ;;  %v15066_v34 = vpack.c.bf16 %v3600_v33, %v3599_v32 }
 0x400   :  { %13191 = vmatmul.mubr.msk.f32.vlgmr.msra.gmra.mrb[8].mxu0 %vm1067_vm3, %v16543_v35  ;;  %v2030_v54 = vld [vmem:[#allocation2 + $0xe] sm:$0xff]  ;;  %v2031_v56 = vld [vmem:[#allocation2 + $0x16] sm:$0xff] }
 0x401   :  { %14893 = vmatpush3.bf16.msra.mxu0 %v14890_v22  ;;  %v2251_v11 = vld [vmem:[#allocation2 + $0x2a] sm:$0xff]  ;;  %v14942_v22 = vpack.c.bf16 %v2605_v21, %v2604_v20  ;;  %v3034_v21 = vld [vmem:[#allocation4 + $0x358] sm:$0xff] }
 0x402   :  { %v16548_v39 = vld [vmem:[#allocation2 + $0x1c] sm:$0xff]  ;;  %14895 = vmatprep.subr.bf16.mxu0 %v14894_v36  ;;  %v16550_v40 = vld [vmem:[#allocation2 + $0x24] sm:$0xff]  ;;  %v2360_v15 = vld [vmem:[#allocation2 + $0x2c] sm:$0xff] }
 0x403   :  { %13193 = vmatprep.mubr.msk.f32.mxu0 %vm1067_vm3, %v16548_v39  ;;  %v1822_v49 = vld [vmem:[#allocation2 + $0x1a] sm:$0xff]  ;;  %v1823_v51 = vld [vmem:[#allocation2 + $0x22] sm:$0xff]  ;;  %v2469_v16 = vld [vmem:[#allocation2 + $0x2e] sm:$0xff]  ;;  %14943 = vmatprep.subr.bf16.mxu1 %v14942_v22 }
 0x404   :  { %13194 = vmatmul.mubr.msk.f32.gmra.mrb[10].mxu0 %vm1067_vm3, %v16550_v40  ;;  %v2032_v59 = vld [vmem:[#allocation2 + $0x1e] sm:$0xff]  ;;  %v2033_v61 = vld [vmem:[#allocation2 + $0x26] sm:$0xff]  ;;  %14945 = vmatpush3.bf16.msra.mxu1 %v14942_v22  ;;  %v3033_v20 = vld [vmem:[#allocation4 + $0x350] sm:$0xff] }
 0x405   :  { %14897 = vmatpush3.bf16.msra.mxu0 %v14894_v36  ;;  %13204 = vmatprep.mubr.msk.f32.mxu0 %vm1067_vm3, %v1820_v44  ;;  %v2594_v44 = vld [vmem:[#allocation4 + $0x280] sm:$0xff]  ;;  %v3145_v32 = vld [vmem:[#allocation4 + $0x388] sm:$0xff] }
 0x406   :  { %14899 = vmatprep.subr.bf16.mxu0 %v14898_v41 }
 0x408   :  { %13205 = vmatmul.mubr.msk.f32.vlgmr.msra.gmra.mrb[8].mxu0 %vm1067_vm3, %v1821_v46 }
 0x409   :  { %14901 = vmatpush3.bf16.msra.mxu0 %v14898_v41  ;;  %13207 = vmatprep.mubr.msk.f32.mxu0 %vm1067_vm3, %v1822_v49 }
 0x40a   :  { %14903 = vmatprep.subr.bf16.mxu0 %v14902_v45 }
 0x40c   :  { %13208 = vmatmul.mubr.msk.f32.gmra.mrb[10].mxu0 %vm1067_vm3, %v1823_v51 }
 0x40d   :  { %14905 = vmatpush3.bf16.msra.mxu0 %v14902_v45  ;;  %13218 = vmatprep.mubr.msk.f32.mxu0 %vm1067_vm3, %v2030_v54  ;;  %v2595_v45 = vld [vmem:[#allocation4 + $0x288] sm:$0xff]  ;;  %v2807_v54 = vld [vmem:[#allocation4 + $0x2d0] sm:$0xff] }
 0x40e   :  { %14907 = vmatprep.subr.bf16.mxu0 %v14906_v50  ;;  %v14954_v48 = vpack.c.bf16 %v2595_v45, %v2594_v44  ;;  %v3256_v44 = vld [vmem:[#allocation4 + $0x3b8] sm:$0xff] }
 0x410   :  { %13219 = vmatmul.mubr.msk.f32.vlgmr.msra.gmra.mrb[8].mxu0 %vm1067_vm3, %v2031_v56 }
 0x411   :  { %14909 = vmatpush3.bf16.msra.mxu0 %v14906_v50  ;;  %13221 = vmatprep.mubr.msk.f32.mxu0 %vm1067_vm3, %v2032_v59  ;;  %v2597_v50 = vld [vmem:[#allocation4 + $0x298] sm:$0xff] }
 0x412   :  { %14911 = vmatprep.subr.bf16.mxu0 %v14910_v55 }
 0x414   :  { %13222 = vmatmul.mubr.msk.f32.gmra.mrb[10].mxu0 %vm1067_vm3, %v2033_v61 }
 0x415   :  { %14913 = vmatpush3.bf16.msra.mxu0 %v14910_v55  ;;  %13232 = vmatprep.mubr.msk.f32.mxu0 %vm1067_vm3, %v16533_v27  ;;  %v2593_v27 = vld [vmem:[#allocation4 + $0x278] sm:$0xff] }
 0x416   :  { %14915 = vmatprep.subr.bf16.mxu0 %v14914_v60  ;;  %v14950_v28 = vpack.c.bf16 %v2593_v27, %v2592_v26  ;;  %v2808_v55 = vld [vmem:[#allocation4 + $0x2d8] sm:$0xff]  ;;  %v3141_v26 = vld [vmem:[#allocation4 + $0x368] sm:$0xff] }
 0x418   :  { %13233 = vmatmul.mubr.msk.f32.vlgmr.msra.gmra.mrb[8].mxu0 %vm1067_vm3, %v16531_v25  ;;  %v14946_v25 = vpack.c.bf16 %v2607_v24, %v2606_v23  ;;  %v14994_v23 = vpack.c.bf16 %v3034_v21, %v3033_v20  ;;  %v3593_v20 = vld [vmem:[#allocation2 + $0x4] sm:$0xff] }
 0x419   :  { %14917 = vmatpush3.bf16.msra.mxu0 %v14914_v60  ;;  %13235 = vmatprep.mubr.msk.f32.mxu0 %vm1067_vm3, %v16539_v31  ;;  %v2811_v60 = vld [vmem:[#allocation4 + $0x2f0] sm:$0xff]  ;;  %v3816_v21 = vld [vmem:[#allocation4 + $0x4a0] sm:$0xff] }
 0x41a   :  { %14919 = vmatprep.subr.bf16.mxu0 %v14918_v1  ;;  %14947 = vmatprep.subr.bf16.mxu1 %v14946_v25 }
 0x41b   :  { %14949 = vmatpush3.bf16.msra.mxu1 %v14946_v25  ;;  %v3140_v25 = vld [vmem:[#allocation4 + $0x360] sm:$0xff] }
 0x41c   :  { %13236 = vmatmul.mubr.msk.f32.gmra.mrb[10].mxu0 %vm1067_vm3, %v16537_v29  ;;  %14951 = vmatprep.subr.bf16.mxu1 %v14950_v28  ;;  %v3597_v29 = vld [vmem:[#allocation4 + $0x420] sm:$0xff]  ;;  %v14998_v27 = vpack.c.bf16 %v3141_v26, %v3140_v25 }
 0x41d   :  { %14921 = vmatpush3.bf16.msra.mxu0 %v14918_v1  ;;  %13246 = vmatprep.mubr.msk.f32.mxu0 %vm1067_vm3, %v1821_v46  ;;  %v15062_v31 = vpack.c.bf16 %v3598_v30, %v3597_v29  ;;  %v3143_v29 = vld [vmem:[#allocation4 + $0x378] sm:$0xff] }
 0x41e   :  { %14923 = vmatprep.subr.bf16.mxu0 %v14922_v4 }
 0x420   :  { %13247 = vmatmul.mubr.msk.f32.vlgmr.msra.gmra.mrb[8].mxu0 %vm1067_vm3, %v1822_v49  ;;  %v2596_v49 = vld [vmem:[#allocation4 + $0x290] sm:$0xff] }
 0x421   :  { %14925 = vmatpush3.bf16.msra.mxu0 %v14922_v4  ;;  %13249 = vmatprep.mubr.msk.f32.mxu0 %vm1067_vm3, %v1823_v51  ;;  %v14958_v53 = vpack.c.bf16 %v2597_v50, %v2596_v49  ;;  %v2921_v4 = vld [vmem:[#allocation4 + $0x318] sm:$0xff]  ;;  %v3364_v50 = vld [vmem:[#allocation4 + $0x3d0] sm:$0xff] }
 0x422   :  { %14927 = vmatprep.subr.bf16.mxu0 %v14926_v7  ;;  %v14978_v5 = vpack.c.bf16 %v2921_v4, %v2920_v3  ;;  %v3609_v3 = vld [vmem:[#allocation4 + $0x460] sm:$0xff]  ;;  %v3610_v4 = vld [vmem:[#allocation4 + $0x468] sm:$0xff] }
 0x424   :  { %13250 = vmatmul.mubr.msk.f32.gmra.mrb[10].mxu0 %vm1067_vm3, %v2251_v11 }
 0x425   :  { %14929 = vmatpush3.bf16.msra.mxu0 %v14926_v7  ;;  %13260 = vmatprep.mubr.msk.f32.mxu0 %vm1067_vm3, %v16543_v35  ;;  %v11650_v35 = vld [vmem:[#allocation6 + $0x4] ss:$0 sm:$0xff]  ;;  %v2922_v7 = vld [vmem:[#allocation4 + $0x320] sm:$0xff] }
 0x426   :  { %14931 = vmatprep.subr.bf16.mxu0 %v14930_v10 }
 0x428   :  { %13261 = vmatmul.mubr.msk.f32.vlgmr.msra.gmra.mrb[8].mxu0 %vm1067_vm3, %v16548_v39 }
 0x429   :  { %14933 = vmatpush3.bf16.msra.mxu0 %v14930_v10  ;;  %13263 = vmatprep.mubr.msk.f32.mxu0 %vm1067_vm3, %v16550_v40  ;;  %v14982_v10 = vpack.c.bf16 %v2923_v8, %v2922_v7  ;;  %v3611_v7 = vld [vmem:[#allocation4 + $0x470] sm:$0xff]  ;;  %v3612_v8 = vld [vmem:[#allocation4 + $0x478] sm:$0xff] }
 0x42a   :  { %14935 = vmatprep.subr.bf16.mxu0 %v14934_v14 }
 0x42c   :  { %13264 = vmatmul.mubr.msk.f32.gmra.mrb[10].mxu0 %vm1067_vm3, %v2360_v15  ;;  %v14986_v15 = vpack.c.bf16 %v3030_v13, %v3029_v12  ;;  %v3613_v12 = vld [vmem:[#allocation4 + $0x480] sm:$0xff]  ;;  %v3614_v13 = vld [vmem:[#allocation4 + $0x488] sm:$0xff] }
 0x42d   :  { %14937 = vmatpush3.bf16.msra.mxu0 %v14934_v14  ;;  %13274 = vmatprep.mubr.msk.f32.mxu0 %vm1067_vm3, %v2031_v56  ;;  %v14962_v56 = vpack.c.bf16 %v2808_v55, %v2807_v54  ;;  %v3367_v54 = vld [vmem:[#allocation4 + $0x3e8] sm:$0xff] }
 0x42e   :  { %15063 = vmatprep.subr.bf16.mxu0 %v15062_v31 }
 0x430   :  { %13275 = vmatmul.mubr.msk.f32.vlgmr.msra.gmra.mrb[8].mxu0 %vm1067_vm3, %v2032_v59  ;;  %v14966_v59 = vpack.c.bf16 %v2810_v58, %v2809_v57  ;;  %v3473_v57 = vld [vmem:[#allocation4 + $0x3f0] sm:$0xff]  ;;  %v3474_v58 = vld [vmem:[#allocation4 + $0x3f8] sm:$0xff] }
 0x431   :  { %13277 = vmatprep.mubr.msk.f32.mxu0 %vm1067_vm3, %v2033_v61  ;;  %15065 = vmatpush3.bf16.msra.mxu0 %v15062_v31  ;;  %v2812_v61 = vld [vmem:[#allocation4 + $0x2f8] sm:$0xff]  ;;  %v3144_v31 = vld [vmem:[#allocation4 + $0x380] sm:$0xff] }
 0x432   :  { %15067 = vmatprep.subr.bf16.mxu0 %v15066_v34  ;;  %v14970_v62 = vpack.c.bf16 %v2812_v61, %v2811_v60  ;;  %v15006_v33 = vpack.c.bf16 %v3145_v32, %v3144_v31  ;;  %v3475_v60 = vld [vmem:[#allocation4 + $0x400] sm:$0xff]  ;;  %v3476_v61 = vld [vmem:[#allocation4 + $0x408] sm:$0xff] }
 0x434   :  { %13278 = vmatmul.mubr.msk.f32.gmra.mrb[10].mxu0 %vm1067_vm3, %v2469_v16  ;;  %v3031_v16 = vld [vmem:[#allocation4 + $0x340] sm:$0xff] }
 0x435   :  { %15069 = vmatpush3.bf16.msra.mxu0 %v15066_v34  ;;  %v14990_v18 = vpack.c.bf16 %v3032_v17, %v3031_v16  ;;  %v3251_v34 = vld [vmem:[#allocation4 + $0x390] sm:$0xff]  ;;  %v3616_v17 = vld [vmem:[#allocation4 + $0x498] sm:$0xff]  ;;  %13480 = vmatprep.mubr.msk.f32.mxu0 %vm3617_vm5, %v3593_v20  ;;  %v4160_v20 = vld [vmem:[#allocation4 + $0x588] sm:$0xff] }
 0x436   :  { %v3615_v16 = vld [vmem:[#allocation4 + $0x490] sm:$0xff] }
 0x503   :  { %v13276_v36 = vpop.f32.mrb[8].mxu0 }
 0x504   :  { %v16587_v37 = vadd.f32 %v13276_v36, %v11650_v35  ;;  %v2552_v38 = vpop.f32.mrb[9].mxu0 }
 0x505   :  { %v16589_v39 = vadd.f32 %v11650_v35, %v2552_v38  ;;  %v3253_v38 = vld [vmem:[#allocation4 + $0x3a0] sm:$0xff] }
 0x506   :  { %2585 = vst [vmem:[#allocation3 + $0x18] sm:$0xff] %v16587_v37 }
 0x507   :  { %2584 = vst [vmem:[#allocation3 + $0x10] sm:$0xff] %v16589_v39  ;;  %v13279_v40 = vpop.f32.mrb[10].mxu0 }
 0x508   :  { %v16593_v41 = vadd.f32 %v13279_v40, %v11650_v35  ;;  %v2562_v42 = vpop.f32.mrb[11].mxu0 }
 0x509   :  { %v16595_v43 = vadd.f32 %v11650_v35, %v2562_v42  ;;  %v3252_v35 = vld [vmem:[#allocation4 + $0x398] sm:$0xff]  ;;  %v3255_v42 = vld [vmem:[#allocation4 + $0x3b0] sm:$0xff] }
 0x50a   :  { %2587 = vst [vmem:[#allocation3 + $0x28] sm:$0xff] %v16593_v41  ;;  %v15010_v36 = vpack.c.bf16 %v3252_v35, %v3251_v34  ;;  %v15018_v45 = vpack.c.bf16 %v3256_v44, %v3255_v42  ;;  %v3819_v34 = vld [vmem:[#allocation4 + $0x4b8] sm:$0xff] }
 0x50b   :  { %2586 = vst [vmem:[#allocation3 + $0x20] sm:$0xff] %v16595_v43 }
 0x50e   :  { %v2598_v46 = vld [vmem:[#allocation3 + $0xa] sm:$0xff]  ;;  %v16599_v47 = vld [vmem:[#allocation3 + $0x12] sm:$0xff] }
 0x50f   :  { %13292 = vmatprep.mubr.msk.f32.mxu1 %vm2608_vm4, %v2598_v46  ;;  %v2803_v1 = vld [vmem:[#allocation3 + $0xc] sm:$0xff]  ;;  %v16621_v6 = vld [vmem:[#allocation3 + $0x14] sm:$0xff] }
 0x510   :  { %13293 = vmatmul.mubr.msk.f32.vlgmr.msra.gmra.mrb[8].mxu1 %vm2608_vm4, %v16599_v47  ;;  %v2914_v14 = vld [vmem:[#allocation3 + $0xe] sm:$0xff]  ;;  %v16634_v19 = vld [vmem:[#allocation3 + $0x16] sm:$0xff] }
 0x511   :  { %14953 = vmatpush3.bf16.msra.mxu1 %v14950_v28  ;;  %v3142_v28 = vld [vmem:[#allocation4 + $0x370] sm:$0xff] }
 0x512   :  { %v16604_v51 = vld [vmem:[#allocation3 + $0x1a] sm:$0xff]  ;;  %14955 = vmatprep.subr.bf16.mxu1 %v14954_v48  ;;  %v16606_v52 = vld [vmem:[#allocation3 + $0x22] sm:$0xff]  ;;  %v15002_v30 = vpack.c.bf16 %v3143_v29, %v3142_v28  ;;  %v3139_v46 = vld [vmem:[#allocation3 + $0x2a] sm:$0xff] }
 0x513   :  { %13295 = vmatprep.mubr.msk.f32.mxu1 %vm2608_vm4, %v16604_v51  ;;  %v16625_v9 = vld [vmem:[#allocation3 + $0x1c] sm:$0xff]  ;;  %v16629_v11 = vld [vmem:[#allocation3 + $0x24] sm:$0xff] }
 0x514   :  { %13296 = vmatmul.mubr.msk.f32.gmra.mrb[10].mxu1 %vm2608_vm4, %v16606_v52  ;;  %v16638_v22 = vld [vmem:[#allocation3 + $0x1e] sm:$0xff]  ;;  %v16642_v24 = vld [vmem:[#allocation3 + $0x26] sm:$0xff] }
 0x515   :  { %14957 = vmatpush3.bf16.msra.mxu1 %v14954_v48  ;;  %13310 = vmatprep.mubr.msk.f32.mxu1 %vm2608_vm4, %v16378_v0  ;;  %v2919_v0 = vld [vmem:[#allocation4 + $0x308] sm:$0xff] }
 0x516   :  { %14959 = vmatprep.subr.bf16.mxu1 %v14958_v53  ;;  %v14974_v2 = vpack.c.bf16 %v2919_v0, %v2918_v63  ;;  %v3363_v48 = vld [vmem:[#allocation4 + $0x3c8] sm:$0xff]  ;;  %v3477_v63 = vld [vmem:[#allocation4 + $0x410] sm:$0xff]  ;;  %v3478_v0 = vld [vmem:[#allocation4 + $0x418] sm:$0xff] }
 0x519   :  { %14961 = vmatpush3.bf16.msra.mxu1 %v14958_v53  ;;  %v3365_v53 = vld [vmem:[#allocation4 + $0x3d8] sm:$0xff] }
 0x51a   :  { %14963 = vmatprep.subr.bf16.mxu1 %v14962_v56 }
 0x51c   :  { %13311 = vmatmul.mubr.msk.f32.vlgmr.msra.gmra.mrb[8].mxu1 %vm2608_vm4, %v16589_v39 }
 0x51d   :  { %13313 = vmatprep.mubr.msk.f32.mxu1 %vm2608_vm4, %v16587_v37  ;;  %14965 = vmatpush3.bf16.msra.mxu1 %v14962_v56  ;;  %v3250_v56 = vld [vmem:[#allocation3 + $0x2c] sm:$0xff] }
 0x51e   :  { %14967 = vmatprep.subr.bf16.mxu1 %v14966_v59 }
 0x520   :  { %13314 = vmatmul.mubr.msk.f32.gmra.mrb[10].mxu1 %vm2608_vm4, %v16595_v43 }
 0x521   :  { %14969 = vmatpush3.bf16.msra.mxu1 %v14966_v59  ;;  %13328 = vmatprep.mubr.msk.f32.mxu1 %vm2608_vm4, %v2803_v1  ;;  %v15034_v59 = vpack.c.bf16 %v3474_v58, %v3473_v57  ;;  %v15042_v1 = vpack.c.bf16 %v3478_v0, %v3477_v63  ;;  %v3933_v57 = vld [vmem:[#allocation4 + $0x500] sm:$0xff]  ;;  %v3934_v58 = vld [vmem:[#allocation4 + $0x508] sm:$0xff] }
 0x522   :  { %14971 = vmatprep.subr.bf16.mxu1 %v14970_v62  ;;  %v4042_v0 = vld [vmem:[#allocation4 + $0x520] sm:$0xff] }
 0x525   :  { %14973 = vmatpush3.bf16.msra.mxu1 %v14970_v62  ;;  %v15038_v62 = vpack.c.bf16 %v3476_v61, %v3475_v60  ;;  %v3935_v60 = vld [vmem:[#allocation4 + $0x510] sm:$0xff]  ;;  %v3936_v61 = vld [vmem:[#allocation4 + $0x518] sm:$0xff] }
 0x526   :  { %14975 = vmatprep.subr.bf16.mxu1 %v14974_v2  ;;  %v15106_v63 = vpack.c.bf16 %v3936_v61, %v3935_v60  ;;  %v4494_v61 = vld [vmem:[#allocation4 + $0x620] sm:$0xff] }
 0x528   :  { %13329 = vmatmul.mubr.msk.f32.vlgmr.msra.gmra.mrb[8].mxu1 %vm2608_vm4, %v16621_v6 }
 0x529   :  { %13331 = vmatprep.mubr.msk.f32.mxu1 %vm2608_vm4, %v16625_v9  ;;  %14977 = vmatpush3.bf16.msra.mxu1 %v14974_v2  ;;  %v3361_v2 = vld [vmem:[#allocation3 + $0x2e] sm:$0xff] }
 0x52a   :  { %14979 = vmatprep.subr.bf16.mxu1 %v14978_v5 }
 0x52c   :  { %13332 = vmatmul.mubr.msk.f32.gmra.mrb[10].mxu1 %vm2608_vm4, %v16629_v11 }
 0x52d   :  { %14981 = vmatpush3.bf16.msra.mxu1 %v14978_v5  ;;  %13346 = vmatprep.mubr.msk.f32.mxu1 %vm2608_vm4, %v2914_v14  ;;  %v15046_v5 = vpack.c.bf16 %v3610_v4, %v3609_v3  ;;  %v3604_v14 = vld [vmem:[#allocation4 + $0x458] sm:$0xff]  ;;  %v4044_v3 = vld [vmem:[#allocation4 + $0x530] sm:$0xff] }
 0x52e   :  { %14983 = vmatprep.subr.bf16.mxu1 %v14982_v10  ;;  %v4045_v4 = vld [vmem:[#allocation4 + $0x538] sm:$0xff] }
 0x531   :  { %14985 = vmatpush3.bf16.msra.mxu1 %v14982_v10  ;;  %v3602_v10 = vld [vmem:[#allocation4 + $0x448] sm:$0xff] }
 0x532   :  { %14987 = vmatprep.subr.bf16.mxu1 %v14986_v15 }
 0x534   :  { %13347 = vmatmul.mubr.msk.f32.vlgmr.msra.gmra.mrb[8].mxu1 %vm2608_vm4, %v16634_v19 }
 0x535   :  { %13349 = vmatprep.mubr.msk.f32.mxu1 %vm2608_vm4, %v16638_v22  ;;  %14989 = vmatpush3.bf16.msra.mxu1 %v14986_v15 }
 0x536   :  { %14991 = vmatprep.subr.bf16.mxu1 %v14990_v18 }
 0x538   :  { %13350 = vmatmul.mubr.msk.f32.gmra.mrb[10].mxu1 %vm2608_vm4, %v16642_v24 }
 0x539   :  { %14993 = vmatpush3.bf16.msra.mxu1 %v14990_v18  ;;  %13364 = vmatprep.mubr.msk.f32.mxu1 %vm2608_vm4, %v16589_v39  ;;  %v3254_v39 = vld [vmem:[#allocation4 + $0x3a8] sm:$0xff]  ;;  %v15058_v18 = vpack.c.bf16 %v3616_v17, %v3615_v16  ;;  %v4157_v16 = vld [vmem:[#allocation4 + $0x570] sm:$0xff]  ;;  %v4158_v17 = vld [vmem:[#allocation4 + $0x578] sm:$0xff] }
 0x53a   :  { %14995 = vmatprep.subr.bf16.mxu1 %v14994_v23  ;;  %v15014_v40 = vpack.c.bf16 %v3254_v39, %v3253_v38  ;;  %v3821_v38 = vld [vmem:[#allocation4 + $0x4c8] sm:$0xff] }
 0x53d   :  { %14997 = vmatpush3.bf16.msra.mxu1 %v14994_v23 }
 0x53e   :  { %14999 = vmatprep.subr.bf16.mxu1 %v14998_v27 }
 0x540   :  { %13365 = vmatmul.mubr.msk.f32.vlgmr.msra.gmra.mrb[8].mxu1 %vm2608_vm4, %v16587_v37 }
 0x541   :  { %13367 = vmatprep.mubr.msk.f32.mxu1 %vm2608_vm4, %v16595_v43  ;;  %15001 = vmatpush3.bf16.msra.mxu1 %v14998_v27 }
 0x542   :  { %15003 = vmatprep.subr.bf16.mxu1 %v15002_v30 }
 0x544   :  { %13368 = vmatmul.mubr.msk.f32.gmra.mrb[10].mxu1 %vm2608_vm4, %v16593_v41 }
 0x545   :  { %15005 = vmatpush3.bf16.msra.mxu1 %v15002_v30  ;;  %13382 = vmatprep.mubr.msk.f32.mxu1 %vm2608_vm4, %v16599_v47  ;;  %v3362_v47 = vld [vmem:[#allocation4 + $0x3c0] sm:$0xff] }
 0x546   :  { %15007 = vmatprep.subr.bf16.mxu1 %v15006_v33  ;;  %v15022_v49 = vpack.c.bf16 %v3363_v48, %v3362_v47 }
 0x549   :  { %15009 = vmatpush3.bf16.msra.mxu1 %v15006_v33  ;;  %v3818_v33 = vld [vmem:[#allocation4 + $0x4b0] sm:$0xff] }
 0x54a   :  { %15011 = vmatprep.subr.bf16.mxu1 %v15010_v36  ;;  %v15082_v35 = vpack.c.bf16 %v3819_v34, %v3818_v33  ;;  %v4270_v33 = vld [vmem:[#allocation4 + $0x5b0] sm:$0xff]  ;;  %v4271_v34 = vld [vmem:[#allocation4 + $0x5b8] sm:$0xff] }
 0x54c   :  { %13383 = vmatmul.mubr.msk.f32.vlgmr.msra.gmra.mrb[8].mxu1 %vm2608_vm4, %v16604_v51  ;;  %v15026_v51 = vpack.c.bf16 %v3365_v53, %v3364_v50  ;;  %v3929_v53 = vld [vmem:[#allocation4 + $0x4e0] sm:$0xff] }
 0x54d   :  { %13385 = vmatprep.mubr.msk.f32.mxu1 %vm2608_vm4, %v16606_v52  ;;  %15013 = vmatpush3.bf16.msra.mxu1 %v15010_v36  ;;  %v3366_v52 = vld [vmem:[#allocation4 + $0x3e0] sm:$0xff] }
 0x54e   :  { %15015 = vmatprep.subr.bf16.mxu1 %v15014_v40  ;;  %v15030_v55 = vpack.c.bf16 %v3367_v54, %v3366_v52  ;;  %v3820_v36 = vld [vmem:[#allocation4 + $0x4c0] sm:$0xff]  ;;  %v3931_v54 = vld [vmem:[#allocation4 + $0x4f0] sm:$0xff] }
 0x550   :  { %13386 = vmatmul.mubr.msk.f32.gmra.mrb[10].mxu1 %vm2608_vm4, %v3139_v46  ;;  %v3822_v46 = vld [vmem:[#allocation4 + $0x4d0] sm:$0xff] }
 0x551   :  { %15017 = vmatpush3.bf16.msra.mxu1 %v15014_v40  ;;  %13400 = vmatprep.mubr.msk.f32.mxu1 %vm2608_vm4, %v16621_v6  ;;  %v16681_v6 = vld [vmem:[#allocation2] sm:$0xff] }
 0x552   :  { %15019 = vmatprep.subr.bf16.mxu1 %v15018_v45 }
 0x555   :  { %15021 = vmatpush3.bf16.msra.mxu1 %v15018_v45  ;;  %v15086_v45 = vpack.c.bf16 %v3821_v38, %v3820_v36  ;;  %v4272_v36 = vld [vmem:[#allocation4 + $0x5c0] sm:$0xff]  ;;  %v4273_v38 = vld [vmem:[#allocation4 + $0x5c8] sm:$0xff] }
 0x556   :  { %15023 = vmatprep.subr.bf16.mxu1 %v15022_v49 }
 0x558   :  { %13401 = vmatmul.mubr.msk.f32.vlgmr.msra.gmra.mrb[8].mxu1 %vm2608_vm4, %v16625_v9  ;;  %v15050_v9 = vpack.c.bf16 %v3612_v8, %v3611_v7  ;;  %v4046_v8 = vld [vmem:[#allocation4 + $0x540] sm:$0xff] }
 0x559   :  { %13403 = vmatprep.mubr.msk.f32.mxu1 %vm2608_vm4, %v16629_v11  ;;  %15025 = vmatpush3.bf16.msra.mxu1 %v15022_v49  ;;  %v3823_v49 = vld [vmem:[#allocation4 + $0x4d8] sm:$0xff] }
 0x55a   :  { %15027 = vmatprep.subr.bf16.mxu1 %v15026_v51  ;;  %v15090_v50 = vpack.c.bf16 %v3823_v49, %v3822_v46  ;;  %v4275_v46 = vld [vmem:[#allocation4 + $0x5d8] sm:$0xff] }
 0x55c   :  { %13404 = vmatmul.mubr.msk.f32.gmra.mrb[10].mxu1 %vm2608_vm4, %v3250_v56 }
 0x55d   :  { %15029 = vmatpush3.bf16.msra.mxu1 %v15026_v51  ;;  %13418 = vmatprep.mubr.msk.f32.mxu1 %vm2608_vm4, %v16634_v19  ;;  %v3605_v19 = vld [vmem:[#allocation2 + $0x6] sm:$0xff] }
 0x55e   :  { %15031 = vmatprep.subr.bf16.mxu1 %v15030_v55  ;;  %v3930_v51 = vld [vmem:[#allocation4 + $0x4e8] sm:$0xff] }
 0x55f   :  { %v15094_v52 = vpack.c.bf16 %v3930_v51, %v3929_v53  ;;  %v4382_v53 = vld [vmem:[#allocation4 + $0x5e8] sm:$0xff] }
 0x561   :  { %15033 = vmatpush3.bf16.msra.mxu1 %v15030_v55  ;;  %v3932_v55 = vld [vmem:[#allocation4 + $0x4f8] sm:$0xff] }
 0x562   :  { %15035 = vmatprep.subr.bf16.mxu1 %v15034_v59  ;;  %v15098_v56 = vpack.c.bf16 %v3932_v55, %v3931_v54  ;;  %v4384_v54 = vld [vmem:[#allocation4 + $0x5f8] sm:$0xff] }
 0x564   :  { %13419 = vmatmul.mubr.msk.f32.vlgmr.msra.gmra.mrb[8].mxu1 %vm2608_vm4, %v16638_v22  ;;  %v3817_v22 = vld [vmem:[#allocation4 + $0x4a8] sm:$0xff] }
 0x565   :  { %13421 = vmatprep.mubr.msk.f32.mxu1 %vm2608_vm4, %v16642_v24  ;;  %15037 = vmatpush3.bf16.msra.mxu1 %v15034_v59  ;;  %v15078_v23 = vpack.c.bf16 %v3817_v22, %v3816_v21  ;;  %v11687_v24 = vld [vmem:[#allocation6 + $0x5] ss:$0 sm:$0xff]  ;;  %v15102_v59 = vpack.c.bf16 %v3934_v58, %v3933_v57  ;;  %v4386_v57 = vld [vmem:[#allocation4 + $0x608] sm:$0xff]  ;;  %v4387_v58 = vld [vmem:[#allocation4 + $0x610] sm:$0xff] }
 0x566   :  { %15039 = vmatprep.subr.bf16.mxu1 %v15038_v62 }
 0x568   :  { %13422 = vmatmul.mubr.msk.f32.gmra.mrb[10].mxu1 %vm2608_vm4, %v3361_v2 }
 0x569   :  { %15041 = vmatpush3.bf16.msra.mxu1 %v15038_v62  ;;  %13436 = vmatprep.mubr.msk.f32.mxu1 %vm2608_vm4, %v16587_v37  ;;  %v3601_v37 = vld [vmem:[#allocation4 + $0x440] sm:$0xff] }
 0x56a   :  { %15043 = vmatprep.subr.bf16.mxu1 %v15042_v1  ;;  %v15070_v11 = vpack.c.bf16 %v3602_v10, %v3601_v37 }
 0x56c   :  { %15071 = vmatprep.subr.bf16.mxu0 %v15070_v11 }
 0x56d   :  { %15045 = vmatpush3.bf16.msra.mxu1 %v15042_v1  ;;  %15073 = vmatpush3.bf16.msra.mxu0 %v15070_v11  ;;  %v4043_v1 = vld [vmem:[#allocation4 + $0x528] sm:$0xff] }
 0x56e   :  { %15047 = vmatprep.subr.bf16.mxu1 %v15046_v5  ;;  %v15110_v2 = vpack.c.bf16 %v4043_v1, %v4042_v0  ;;  %v5087_v0 = vld [vmem:[#allocation4 + $0x7b8] sm:$0xff]  ;;  %v5088_v1 = vld [vmem:[#allocation4 + $0x7c0] sm:$0xff] }
 0x570   :  { %13437 = vmatmul.mubr.msk.f32.vlgmr.msra.gmra.mrb[8].mxu1 %vm2608_vm4, %v16595_v43  ;;  %v15054_v43 = vpack.c.bf16 %v3614_v13, %v3613_v12  ;;  %v4048_v12 = vld [vmem:[#allocation4 + $0x550] sm:$0xff]  ;;  %v4049_v13 = vld [vmem:[#allocation4 + $0x558] sm:$0xff] }
 0x571   :  { %13439 = vmatprep.mubr.msk.f32.mxu1 %vm2608_vm4, %v16593_v41  ;;  %15049 = vmatpush3.bf16.msra.mxu1 %v15046_v5  ;;  %v3603_v41 = vld [vmem:[#allocation4 + $0x450] sm:$0xff]  ;;  %v15114_v5 = vpack.c.bf16 %v4045_v4, %v4044_v3  ;;  %v5089_v3 = vld [vmem:[#allocation4 + $0x7c8] sm:$0xff] }
 0x572   :  { %15051 = vmatprep.subr.bf16.mxu1 %v15050_v9  ;;  %v15074_v15 = vpack.c.bf16 %v3604_v14, %v3603_v41  ;;  %v4155_v41 = vld [vmem:[#allocation4 + $0x560] sm:$0xff]  ;;  %v4156_v14 = vld [vmem:[#allocation4 + $0x568] sm:$0xff] }
 0x574   :  { %13440 = vmatmul.mubr.msk.f32.gmra.mrb[10].mxu1 %vm2608_vm4, %v16681_v6  ;;  %15075 = vmatprep.subr.bf16.mxu0 %v15074_v15 }
 0x575   :  { %15053 = vmatpush3.bf16.msra.mxu1 %v15050_v9  ;;  %15077 = vmatpush3.bf16.msra.mxu0 %v15074_v15  ;;  %v4047_v9 = vld [vmem:[#allocation4 + $0x548] sm:$0xff]  ;;  %v15126_v15 = vpack.c.bf16 %v4156_v14, %v4155_v41  ;;  %v4500_v41 = vld [vmem:[#allocation4 + $0x650] sm:$0xff]  ;;  %v4501_v14 = vld [vmem:[#allocation4 + $0x658] sm:$0xff] }
 0x576   :  { %15055 = vmatprep.subr.bf16.mxu1 %v15054_v43  ;;  %13458 = vmatprep.mubr.msk.f32.mxu1 %vm3617_vm5, %v3605_v19  ;;  %v15118_v10 = vpack.c.bf16 %v4047_v9, %v4046_v8  ;;  %v4159_v19 = vld [vmem:[#allocation4 + $0x580] sm:$0xff]  ;;  %v4496_v8 = vld [vmem:[#allocation4 + $0x630] sm:$0xff]  ;;  %v4497_v9 = vld [vmem:[#allocation4 + $0x638] sm:$0xff] }
 0x577   :  { %15079 = vmatprep.subr.bf16.mxu0 %v15078_v23  ;;  %v15134_v21 = vpack.c.bf16 %v4160_v20, %v4159_v19  ;;  %v4609_v19 = vld [vmem:[#allocation4 + $0x670] sm:$0xff]  ;;  %v4610_v20 = vld [vmem:[#allocation4 + $0x678] sm:$0xff] }
 0x579   :  { %15057 = vmatpush3.bf16.msra.mxu1 %v15054_v43  ;;  %v15122_v43 = vpack.c.bf16 %v4049_v13, %v4048_v12  ;;  %v4499_v12 = vld [vmem:[#allocation4 + $0x648] sm:$0xff] }
 0x57a   :  { %15059 = vmatprep.subr.bf16.mxu1 %v15058_v18 }
 0x57d   :  { %15061 = vmatpush3.bf16.msra.mxu1 %v15058_v18  ;;  %v15130_v18 = vpack.c.bf16 %v4158_v17, %v4157_v16  ;;  %v4607_v16 = vld [vmem:[#allocation4 + $0x660] sm:$0xff]  ;;  %v4608_v17 = vld [vmem:[#allocation4 + $0x668] sm:$0xff] }
 0x643   :  { %v13438_v25 = vpop.f32.mrb[8].mxu1 }
 0x644   :  { %v16687_v26 = vadd.f32 %v13438_v25, %v11687_v24  ;;  %v3557_v27 = vpop.f32.mrb[9].mxu1 }
 0x645   :  { %v16689_v28 = vadd.f32 %v11687_v24, %v3557_v27  ;;  %v4268_v27 = vld [vmem:[#allocation4 + $0x5a0] sm:$0xff] }
 0x646   :  { %3590 = vst [vmem:[#allocation2 + $0x18] sm:$0xff] %v16687_v26 }
 0x647   :  { %3589 = vst [vmem:[#allocation2 + $0x10] sm:$0xff] %v16689_v28  ;;  %v13441_v29 = vpop.f32.mrb[10].mxu1 }
 0x648   :  { %v16693_v30 = vadd.f32 %v13441_v29, %v11687_v24  ;;  %v3567_v31 = vpop.f32.mrb[11].mxu1  ;;  %v4269_v29 = vld [vmem:[#allocation4 + $0x5a8] sm:$0xff] }
 0x649   :  { %v16695_v32 = vadd.f32 %v11687_v24, %v3567_v31  ;;  %v4162_v24 = vld [vmem:[#allocation4 + $0x598] sm:$0xff]  ;;  %v15142_v31 = vpack.c.bf16 %v4269_v29, %v4268_v27  ;;  %v4613_v27 = vld [vmem:[#allocation4 + $0x690] sm:$0xff] }
 0x64a   :  { %3592 = vst [vmem:[#allocation2 + $0x28] sm:$0xff] %v16693_v30  ;;  %v4614_v29 = vld [vmem:[#allocation4 + $0x698] sm:$0xff] }
 0x64b   :  { %3591 = vst [vmem:[#allocation2 + $0x20] sm:$0xff] %v16695_v32 }
 0x64e   :  { %v16699_v39 = vld [vmem:[#allocation2 + $0xe] sm:$0xff]  ;;  %v16703_v42 = vld [vmem:[#allocation2 + $0x16] sm:$0xff] }
 0x64f   :  { %v16701_v40 = vld [vmem:[#allocation2 + $0xc] sm:$0xff]  ;;  %13459 = vmatmul.mubr.msk.f32.vlgmr.msra.gmra.mrb[12].mxu1 %vm3617_vm5, %v16699_v39  ;;  %v16709_v44 = vld [vmem:[#allocation2 + $0x14] sm:$0xff] }
 0x650   :  { %13481 = vmatmul.mubr.msk.f32.vlgmr.msra.gmra.mrb[12].mxu0 %vm3617_vm5, %v16701_v40  ;;  %13461 = vmatprep.mubr.msk.f32.mxu1 %vm3617_vm5, %v16703_v42  ;;  %v3925_v62 = vld [vmem:[#allocation2 + $0xa] sm:$0xff]  ;;  %v16732_v7 = vld [vmem:[#allocation2 + $0x12] sm:$0xff] }
 0x651   :  { %15081 = vmatpush3.bf16.msra.mxu0 %v15078_v23  ;;  %13483 = vmatprep.mubr.msk.f32.mxu0 %vm3617_vm5, %v16709_v44  ;;  %v4161_v23 = vld [vmem:[#allocation4 + $0x590] sm:$0xff] }
 0x652   :  { %15083 = vmatprep.subr.bf16.mxu0 %v15082_v35  ;;  %v16715_v47 = vld [vmem:[#allocation2 + $0x1e] sm:$0xff]  ;;  %v15138_v25 = vpack.c.bf16 %v4162_v24, %v4161_v23  ;;  %v4612_v24 = vld [vmem:[#allocation4 + $0x688] sm:$0xff] }
 0x653   :  { %v16717_v48 = vld [vmem:[#allocation2 + $0x1c] sm:$0xff]  ;;  %13462 = vmatmul.mubr.msk.f32.gmra.mrb[14].mxu1 %vm3617_vm5, %v16715_v47  ;;  %v16750_v22 = vld [vmem:[#allocation2 + $0x24] sm:$0xff] }
 0x654   :  { %13484 = vmatmul.mubr.msk.f32.gmra.mrb[14].mxu0 %vm3617_vm5, %v16717_v48  ;;  %v16736_v37 = vld [vmem:[#allocation2 + $0x1a] sm:$0xff]  ;;  %v16740_v11 = vld [vmem:[#allocation2 + $0x22] sm:$0xff] }
 0x655   :  { %15085 = vmatpush3.bf16.msra.mxu0 %v15082_v35  ;;  %13502 = vmatprep.mubr.msk.f32.mxu0 %vm3617_vm5, %v16681_v6  ;;  %v15146_v35 = vpack.c.bf16 %v4271_v34, %v4270_v33  ;;  %v4611_v23 = vld [vmem:[#allocation4 + $0x680] sm:$0xff]  ;;  %v4721_v34 = vld [vmem:[#allocation4 + $0x6a8] sm:$0xff] }
 0x656   :  { %15087 = vmatprep.subr.bf16.mxu0 %v15086_v45  ;;  %v4720_v33 = vld [vmem:[#allocation4 + $0x6a0] sm:$0xff] }
 0x659   :  { %15089 = vmatpush3.bf16.msra.mxu0 %v15086_v45  ;;  %v4274_v45 = vld [vmem:[#allocation4 + $0x5d0] sm:$0xff] }
 0x65a   :  { %15091 = vmatprep.subr.bf16.mxu0 %v15090_v50  ;;  %v15154_v49 = vpack.c.bf16 %v4275_v46, %v4274_v45  ;;  %v4724_v45 = vld [vmem:[#allocation4 + $0x6c0] sm:$0xff]  ;;  %v4725_v46 = vld [vmem:[#allocation4 + $0x6c8] sm:$0xff] }
 0x65d   :  { %15093 = vmatpush3.bf16.msra.mxu0 %v15090_v50  ;;  %v4381_v50 = vld [vmem:[#allocation4 + $0x5e0] sm:$0xff] }
 0x65e   :  { %15095 = vmatprep.subr.bf16.mxu0 %v15094_v52  ;;  %v15158_v51 = vpack.c.bf16 %v4382_v53, %v4381_v50  ;;  %v4726_v50 = vld [vmem:[#allocation4 + $0x6d0] sm:$0xff]  ;;  %v4727_v53 = vld [vmem:[#allocation4 + $0x6d8] sm:$0xff] }
 0x660   :  { %13503 = vmatmul.mubr.msk.f32.vlgmr.msra.gmra.mrb[12].mxu0 %vm3617_vm5, %v16689_v28 }
 0x661   :  { %13505 = vmatprep.mubr.msk.f32.mxu0 %vm3617_vm5, %v16687_v26  ;;  %15097 = vmatpush3.bf16.msra.mxu0 %v15094_v52  ;;  %v4383_v52 = vld [vmem:[#allocation4 + $0x5f0] sm:$0xff] }
 0x662   :  { %15099 = vmatprep.subr.bf16.mxu0 %v15098_v56  ;;  %v15162_v55 = vpack.c.bf16 %v4384_v54, %v4383_v52  ;;  %v4833_v52 = vld [vmem:[#allocation4 + $0x6e0] sm:$0xff]  ;;  %v4834_v54 = vld [vmem:[#allocation4 + $0x6e8] sm:$0xff] }
 0x664   :  { %13506 = vmatmul.mubr.msk.f32.gmra.mrb[14].mxu0 %vm3617_vm5, %v16695_v32 }
 0x665   :  { %15101 = vmatpush3.bf16.msra.mxu0 %v15098_v56  ;;  %13524 = vmatprep.mubr.msk.f32.mxu0 %vm3617_vm5, %v3925_v62  ;;  %v4385_v56 = vld [vmem:[#allocation4 + $0x600] sm:$0xff]  ;;  %v4495_v62 = vld [vmem:[#allocation4 + $0x628] sm:$0xff] }
 0x666   :  { %15103 = vmatprep.subr.bf16.mxu0 %v15102_v59  ;;  %v15174_v4 = vpack.c.bf16 %v4495_v62, %v4494_v61  ;;  %v4946_v61 = vld [vmem:[#allocation4 + $0x720] sm:$0xff]  ;;  %v4947_v62 = vld [vmem:[#allocation4 + $0x728] sm:$0xff] }
 0x669   :  { %15105 = vmatpush3.bf16.msra.mxu0 %v15102_v59  ;;  %v4388_v59 = vld [vmem:[#allocation4 + $0x618] sm:$0xff] }
 0x66a   :  { %15107 = vmatprep.subr.bf16.mxu0 %v15106_v63  ;;  %v15170_v60 = vpack.c.bf16 %v4388_v59, %v4387_v58  ;;  %v4839_v58 = vld [vmem:[#allocation4 + $0x710] sm:$0xff]  ;;  %v4840_v59 = vld [vmem:[#allocation4 + $0x718] sm:$0xff] }
 0x66d   :  { %15109 = vmatpush3.bf16.msra.mxu0 %v15106_v63  ;;  %v5086_v63 = vld [vmem:[#allocation4 + $0x7b0] sm:$0xff] }
 0x66e   :  { %15111 = vmatprep.subr.bf16.mxu0 %v15110_v2 }
 0x670   :  { %13525 = vmatmul.mubr.msk.f32.vlgmr.msra.gmra.mrb[12].mxu0 %vm3617_vm5, %v16732_v7 }
 0x671   :  { %13527 = vmatprep.mubr.msk.f32.mxu0 %vm3617_vm5, %v16736_v37  ;;  %15113 = vmatpush3.bf16.msra.mxu0 %v15110_v2  ;;  %v15254_v2 = vpack.c.bf16 %v5087_v0, %v5086_v63  ;;  %v4949_v63 = vld [vmem:[#allocation4 + $0x738] sm:$0xff] }
 0x672   :  { %15115 = vmatprep.subr.bf16.mxu0 %v15114_v5 }
 0x673   :  { %15255 = vmatprep.subr.bf16.mxu1 %v15254_v2 }
 0x674   :  { %13528 = vmatmul.mubr.msk.f32.gmra.mrb[14].mxu0 %vm3617_vm5, %v16740_v11  ;;  %15257 = vmatpush3.bf16.msra.mxu1 %v15254_v2  ;;  %v4951_v2 = vld [vmem:[#allocation4 + $0x748] sm:$0xff] }
 0x675   :  { %15117 = vmatpush3.bf16.msra.mxu0 %v15114_v5  ;;  %13546 = vmatprep.mubr.msk.f32.mxu0 %vm3617_vm5, %v16701_v40  ;;  %v16760_v40 = vld [vmem:[#allocation2 + $0x26] sm:$0xff]  ;;  %v15258_v5 = vpack.c.bf16 %v5089_v3, %v5088_v1 }
 0x676   :  { %15119 = vmatprep.subr.bf16.mxu0 %v15118_v10  ;;  %v4950_v1 = vld [vmem:[#allocation4 + $0x740] sm:$0xff] }
 0x677   :  { %15259 = vmatprep.subr.bf16.mxu1 %v15258_v5  ;;  %v15246_v3 = vpack.c.bf16 %v4951_v2, %v4950_v1 }
 0x678   :  { %15261 = vmatpush3.bf16.msra.mxu1 %v15258_v5  ;;  %v4953_v5 = vld [vmem:[#allocation4 + $0x758] sm:$0xff] }
 0x679   :  { %15121 = vmatpush3.bf16.msra.mxu0 %v15118_v10  ;;  %v4498_v10 = vld [vmem:[#allocation4 + $0x640] sm:$0xff] }
 0x67a   :  { %15123 = vmatprep.subr.bf16.mxu0 %v15122_v43  ;;  %v15182_v13 = vpack.c.bf16 %v4499_v12, %v4498_v10 }
 0x67d   :  { %15125 = vmatpush3.bf16.msra.mxu0 %v15122_v43  ;;  %v16778_v43 = vld [vmem:[#allocation2 + $0x2a] sm:$0xff] }
 0x67e   :  { %15127 = vmatprep.subr.bf16.mxu0 %v15126_v15 }
 0x680   :  { %13547 = vmatmul.mubr.msk.f32.vlgmr.msra.gmra.mrb[12].mxu0 %vm3617_vm5, %v16709_v44 }
 0x681   :  { %13549 = vmatprep.mubr.msk.f32.mxu0 %vm3617_vm5, %v16717_v48  ;;  %15129 = vmatpush3.bf16.msra.mxu0 %v15126_v15  ;;  %v15186_v15 = vpack.c.bf16 %v4501_v14, %v4500_v41  ;;  %v5092_v41 = vld [vmem:[#allocation4 + $0x7e0] sm:$0xff]  ;;  %v5093_v14 = vld [vmem:[#allocation4 + $0x7e8] sm:$0xff] }
 0x682   :  { %15131 = vmatprep.subr.bf16.mxu0 %v15130_v18 }
 0x684   :  { %13550 = vmatmul.mubr.msk.f32.gmra.mrb[14].mxu0 %vm3617_vm5, %v16750_v22 }
 0x685   :  { %15133 = vmatpush3.bf16.msra.mxu0 %v15130_v18  ;;  %13568 = vmatprep.mubr.msk.f32.mxu0 %vm3617_vm5, %v16699_v39  ;;  %v15150_v39 = vpack.c.bf16 %v4273_v38, %v4272_v36  ;;  %v15190_v18 = vpack.c.bf16 %v4608_v17, %v4607_v16  ;;  %v4722_v36 = vld [vmem:[#allocation4 + $0x6b0] sm:$0xff]  ;;  %v4723_v38 = vld [vmem:[#allocation4 + $0x6b8] sm:$0xff] }
 0x686   :  { %15135 = vmatprep.subr.bf16.mxu0 %v15134_v21  ;;  %v5095_v16 = vld [vmem:[#allocation4 + $0x7f8] sm:$0xff] }
 0x689   :  { %15137 = vmatpush3.bf16.msra.mxu0 %v15134_v21  ;;  %v15194_v21 = vpack.c.bf16 %v4610_v20, %v4609_v19  ;;  %v5072_v19 = vld [vmem:[#allocation4 + $0x760] sm:$0xff]  ;;  %v5073_v20 = vld [vmem:[#allocation4 + $0x768] sm:$0xff] }
 0x68a   :  { %15139 = vmatprep.subr.bf16.mxu0 %v15138_v25 }
 0x68d   :  { %15141 = vmatpush3.bf16.msra.mxu0 %v15138_v25  ;;  %v16788_v25 = vld [vmem:[#allocation2 + $0x2c] sm:$0xff] }
 0x68e   :  { %15143 = vmatprep.subr.bf16.mxu0 %v15142_v31 }
 0x690   :  { %13569 = vmatmul.mubr.msk.f32.vlgmr.msra.gmra.mrb[12].mxu0 %vm3617_vm5, %v16703_v42 }
 0x691   :  { %13571 = vmatprep.mubr.msk.f32.mxu0 %vm3617_vm5, %v16715_v47  ;;  %15145 = vmatpush3.bf16.msra.mxu0 %v15142_v31  ;;  %v15202_v31 = vpack.c.bf16 %v4614_v29, %v4613_v27 }
 0x692   :  { %15147 = vmatprep.subr.bf16.mxu0 %v15146_v35 }
 0x694   :  { %13572 = vmatmul.mubr.msk.f32.gmra.mrb[14].mxu0 %vm3617_vm5, %v16760_v40 }
 0x695   :  { %15149 = vmatpush3.bf16.msra.mxu0 %v15146_v35  ;;  %13590 = vmatprep.mubr.msk.f32.mxu0 %vm3617_vm5, %v16689_v28  ;;  %v15166_v28 = vpack.c.bf16 %v4386_v57, %v4385_v56  ;;  %v15206_v35 = vpack.c.bf16 %v4721_v34, %v4720_v33  ;;  %v4837_v57 = vld [vmem:[#allocation4 + $0x700] sm:$0xff] }
 0x696   :  { %15151 = vmatprep.subr.bf16.mxu0 %v15150_v39 }
 0x699   :  { %15153 = vmatpush3.bf16.msra.mxu0 %v15150_v39  ;;  %v15210_v39 = vpack.c.bf16 %v4723_v38, %v4722_v36 }
 0x69a   :  { %15155 = vmatprep.subr.bf16.mxu0 %v15154_v49 }
 0x69d   :  { %15157 = vmatpush3.bf16.msra.mxu0 %v15154_v49  ;;  %v4606_v49 = vld [vmem:[#allocation2 + $0x2e] sm:$0xff] }
 0x69e   :  { %15159 = vmatprep.subr.bf16.mxu0 %v15158_v51 }
 0x6a0   :  { %13591 = vmatmul.mubr.msk.f32.vlgmr.msra.gmra.mrb[12].mxu0 %vm3617_vm5, %v16687_v26 }
 0x6a1   :  { %13593 = vmatprep.mubr.msk.f32.mxu0 %vm3617_vm5, %v16695_v32  ;;  %15161 = vmatpush3.bf16.msra.mxu0 %v15158_v51  ;;  %v15218_v51 = vpack.c.bf16 %v4727_v53, %v4726_v50 }
 0x6a2   :  { %15163 = vmatprep.subr.bf16.mxu0 %v15162_v55 }
 0x6a4   :  { %13594 = vmatmul.mubr.msk.f32.gmra.mrb[14].mxu0 %vm3617_vm5, %v16693_v30 }
 0x6a5   :  { %15165 = vmatpush3.bf16.msra.mxu0 %v15162_v55  ;;  %13612 = vmatprep.mubr.msk.f32.mxu0 %vm3617_vm5, %v16732_v7  ;;  %v15178_v7 = vpack.c.bf16 %v4497_v9, %v4496_v8  ;;  %v4836_v55 = vld [vmem:[#allocation4 + $0x6f8] sm:$0xff] }
 0x6a6   :  { %15167 = vmatprep.subr.bf16.mxu0 %v15166_v28 }
 0x6a9   :  { %15169 = vmatpush3.bf16.msra.mxu0 %v15166_v28  ;;  %v4838_v28 = vld [vmem:[#allocation4 + $0x708] sm:$0xff] }
 0x6aa   :  { %15171 = vmatprep.subr.bf16.mxu0 %v15170_v60 }
 0x6ad   :  { %15173 = vmatpush3.bf16.msra.mxu0 %v15170_v60  ;;  %v15234_v60 = vpack.c.bf16 %v4840_v59, %v4839_v58  ;;  %v5295_v58 = vld [vmem:[#allocation4 + $0x800] sm:$0xff]  ;;  %v5296_v59 = vld [vmem:[#allocation4 + $0x808] sm:$0xff] }
 0x6ae   :  { %15175 = vmatprep.subr.bf16.mxu0 %v15174_v4 }
 0x6b0   :  { %13613 = vmatmul.mubr.msk.f32.vlgmr.msra.gmra.mrb[12].mxu0 %vm3617_vm5, %v16736_v37 }
 0x6b1   :  { %13615 = vmatprep.mubr.msk.f32.mxu0 %vm3617_vm5, %v16740_v11  ;;  %15177 = vmatpush3.bf16.msra.mxu0 %v15174_v4  ;;  %v4952_v4 = vld [vmem:[#allocation4 + $0x750] sm:$0xff] }
 0x6b2   :  { %15179 = vmatprep.subr.bf16.mxu0 %v15178_v7  ;;  %v15250_v8 = vpack.c.bf16 %v4953_v5, %v4952_v4  ;;  %v5302_v4 = vld [vmem:[#allocation4 + $0x838] sm:$0xff] }
 0x6b4   :  { %13616 = vmatmul.mubr.msk.f32.gmra.mrb[14].mxu0 %vm3617_vm5, %v16778_v43 }
 0x6b5   :  { %15181 = vmatpush3.bf16.msra.mxu0 %v15178_v7  ;;  %13634 = vmatprep.mubr.msk.f32.mxu0 %vm3617_vm5, %v16709_v44  ;;  %v15198_v44 = vpack.c.bf16 %v4612_v24, %v4611_v23  ;;  %v11740_v24 = vld [vmem:[#allocation6 + $0x6] ss:$0 sm:$0xff] }
 0x6b6   :  { %15183 = vmatprep.subr.bf16.mxu0 %v15182_v13 }
 0x6b9   :  { %15185 = vmatpush3.bf16.msra.mxu0 %v15182_v13  ;;  %v5090_v13 = vld [vmem:[#allocation4 + $0x7d0] sm:$0xff] }
 0x6ba   :  { %15187 = vmatprep.subr.bf16.mxu0 %v15186_v15 }
 0x6bd   :  { %15189 = vmatpush3.bf16.msra.mxu0 %v15186_v15  ;;  %v15266_v15 = vpack.c.bf16 %v5093_v14, %v5092_v41  ;;  %v5414_v41 = vld [vmem:[#allocation4 + $0x870] sm:$0xff]  ;;  %v5415_v14 = vld [vmem:[#allocation4 + $0x878] sm:$0xff] }
 0x6be   :  { %15191 = vmatprep.subr.bf16.mxu0 %v15190_v18 }
 0x6c0   :  { %13635 = vmatmul.mubr.msk.f32.vlgmr.msra.gmra.mrb[12].mxu0 %vm3617_vm5, %v16717_v48 }
 0x6c1   :  { %13637 = vmatprep.mubr.msk.f32.mxu0 %vm3617_vm5, %v16750_v22  ;;  %15193 = vmatpush3.bf16.msra.mxu0 %v15190_v18  ;;  %v5082_v18 = vld [vmem:[#allocation3 + $0x6] sm:$0xff] }
 0x6c2   :  { %15195 = vmatprep.subr.bf16.mxu0 %v15194_v21  ;;  %13748 = vmatprep.mubr.msk.f32.mxu1 %vm5096_vm6, %v5082_v18  ;;  %v5418_v18 = vld [vmem:[#allocation4 + $0x890] sm:$0xff] }
 0x6c4   :  { %13638 = vmatmul.mubr.msk.f32.gmra.mrb[14].mxu0 %vm3617_vm5, %v16788_v25 }
 0x6c5   :  { %15197 = vmatpush3.bf16.msra.mxu0 %v15194_v21  ;;  %13656 = vmatprep.mubr.msk.f32.mxu0 %vm3617_vm5, %v16703_v42  ;;  %v15214_v42 = vpack.c.bf16 %v4725_v46, %v4724_v45  ;;  %v15274_v21 = vpack.c.bf16 %v5073_v20, %v5072_v19  ;;  %v5074_v45 = vld [vmem:[#allocation4 + $0x770] sm:$0xff]  ;;  %v5075_v46 = vld [vmem:[#allocation4 + $0x778] sm:$0xff] }
 0x6c6   :  { %15199 = vmatprep.subr.bf16.mxu0 %v15198_v44  ;;  %v5419_v19 = vld [vmem:[#allocation4 + $0x898] sm:$0xff] }
 0x6c7   :  { %v15330_v20 = vpack.c.bf16 %v5419_v19, %v5418_v18  ;;  %v5872_v18 = vld [vmem:[#allocation4 + $0x9a0] sm:$0xff]  ;;  %v5873_v19 = vld [vmem:[#allocation4 + $0x9a8] sm:$0xff] }
 0x6c9   :  { %15201 = vmatpush3.bf16.msra.mxu0 %v15198_v44 }
 0x6ca   :  { %15203 = vmatprep.subr.bf16.mxu0 %v15202_v31 }
 0x6cd   :  { %15205 = vmatpush3.bf16.msra.mxu0 %v15202_v31 }
 0x6ce   :  { %15207 = vmatprep.subr.bf16.mxu0 %v15206_v35 }
 0x6d0   :  { %13657 = vmatmul.mubr.msk.f32.vlgmr.msra.gmra.mrb[12].mxu0 %vm3617_vm5, %v16715_v47  ;;  %v15222_v47 = vpack.c.bf16 %v4834_v54, %v4833_v52  ;;  %v5068_v54 = vld [vmem:[#allocation3 + $0x4] sm:$0xff] }
 0x6d1   :  { %13659 = vmatprep.mubr.msk.f32.mxu0 %vm3617_vm5, %v16760_v40  ;;  %15209 = vmatpush3.bf16.msra.mxu0 %v15206_v35  ;;  %v4835_v40 = vld [vmem:[#allocation4 + $0x6f0] sm:$0xff] }
 0x6d2   :  { %15211 = vmatprep.subr.bf16.mxu0 %v15210_v39  ;;  %v15226_v56 = vpack.c.bf16 %v4836_v55, %v4835_v40  ;;  %v5078_v40 = vld [vmem:[#allocation4 + $0x790] sm:$0xff]  ;;  %v5079_v55 = vld [vmem:[#allocation4 + $0x798] sm:$0xff] }
 0x6d4   :  { %13660 = vmatmul.mubr.msk.f32.gmra.mrb[14].mxu0 %vm3617_vm5, %v4606_v49  ;;  %v5076_v49 = vld [vmem:[#allocation4 + $0x780] sm:$0xff] }
 0x6d5   :  { %15213 = vmatpush3.bf16.msra.mxu0 %v15210_v39  ;;  %13678 = vmatprep.mubr.msk.f32.mxu0 %vm3617_vm5, %v16687_v26  ;;  %v15230_v26 = vpack.c.bf16 %v4838_v28, %v4837_v57  ;;  %v5080_v57 = vld [vmem:[#allocation4 + $0x7a0] sm:$0xff]  ;;  %v5081_v28 = vld [vmem:[#allocation4 + $0x7a8] sm:$0xff] }
 0x6d6   :  { %15215 = vmatprep.subr.bf16.mxu0 %v15214_v42 }
 0x6d9   :  { %15217 = vmatpush3.bf16.msra.mxu0 %v15214_v42  ;;  %v15278_v42 = vpack.c.bf16 %v5075_v46, %v5074_v45 }
 0x6da   :  { %15219 = vmatprep.subr.bf16.mxu0 %v15218_v51 }
 0x6dd   :  { %15221 = vmatpush3.bf16.msra.mxu0 %v15218_v51  ;;  %v5077_v51 = vld [vmem:[#allocation4 + $0x788] sm:$0xff] }
 0x6de   :  { %15223 = vmatprep.subr.bf16.mxu0 %v15222_v47  ;;  %v15282_v52 = vpack.c.bf16 %v5077_v51, %v5076_v49  ;;  %v5532_v49 = vld [vmem:[#allocation4 + $0x8d8] sm:$0xff] }
 0x6e0   :  { %13679 = vmatmul.mubr.msk.f32.vlgmr.msra.gmra.mrb[12].mxu0 %vm3617_vm5, %v16695_v32  ;;  %v15238_v32 = vpack.c.bf16 %v4947_v62, %v4946_v61  ;;  %v5297_v61 = vld [vmem:[#allocation4 + $0x810] sm:$0xff]  ;;  %v5298_v62 = vld [vmem:[#allocation4 + $0x818] sm:$0xff] }
 0x6e1   :  { %13681 = vmatprep.mubr.msk.f32.mxu0 %vm3617_vm5, %v16693_v30  ;;  %15225 = vmatpush3.bf16.msra.mxu0 %v15222_v47  ;;  %v4948_v30 = vld [vmem:[#allocation4 + $0x730] sm:$0xff] }
 0x6e2   :  { %15227 = vmatprep.subr.bf16.mxu0 %v15226_v56  ;;  %v15242_v0 = vpack.c.bf16 %v4949_v63, %v4948_v30  ;;  %v5299_v63 = vld [vmem:[#allocation4 + $0x820] sm:$0xff] }
 0x6e4   :  { %13682 = vmatmul.mubr.msk.f32.gmra.mrb[14].mxu0 %vm3617_vm5, %v16681_v6 }
 0x6e5   :  { %15229 = vmatpush3.bf16.msra.mxu0 %v15226_v56  ;;  %13700 = vmatprep.mubr.msk.f32.mxu0 %vm3617_vm5, %v16736_v37  ;;  %v4832_v37 = vld [vmem:[#allocation2 + $0x32] sm:$0xff]  ;;  %v15286_v56 = vpack.c.bf16 %v5079_v55, %v5078_v40 }
 0x6e6   :  { %15231 = vmatprep.subr.bf16.mxu0 %v15230_v26  ;;  %v5640_v55 = vld [vmem:[#allocation4 + $0x8f0] sm:$0xff] }
 0x6e9   :  { %15233 = vmatpush3.bf16.msra.mxu0 %v15230_v26  ;;  %v15290_v26 = vpack.c.bf16 %v5081_v28, %v5080_v57  ;;  %v5642_v28 = vld [vmem:[#allocation4 + $0x900] sm:$0xff] }
 0x6ea   :  { %15235 = vmatprep.subr.bf16.mxu0 %v15234_v60 }
 0x6ed   :  { %15237 = vmatpush3.bf16.msra.mxu0 %v15234_v60  ;;  %v15294_v60 = vpack.c.bf16 %v5296_v59, %v5295_v58  ;;  %v5644_v59 = vld [vmem:[#allocation4 + $0x910] sm:$0xff] }
 0x6ee   :  { %15239 = vmatprep.subr.bf16.mxu0 %v15238_v32 }
 0x6f0   :  { %13701 = vmatmul.mubr.msk.f32.vlgmr.msra.gmra.mrb[12].mxu0 %vm3617_vm5, %v16740_v11  ;;  %v4945_v11 = vld [vmem:[#allocation2 + $0x34] sm:$0xff] }
 0x6f1   :  { %13703 = vmatprep.mubr.msk.f32.mxu0 %vm3617_vm5, %v16778_v43  ;;  %15241 = vmatpush3.bf16.msra.mxu0 %v15238_v32  ;;  %v15298_v32 = vpack.c.bf16 %v5298_v62, %v5297_v61 }
 0x6f2   :  { %15243 = vmatprep.subr.bf16.mxu0 %v15242_v0 }
 0x6f4   :  { %13704 = vmatmul.mubr.msk.f32.gmra.mrb[14].mxu0 %vm3617_vm5, %v4832_v37 }
 0x6f5   :  { %15245 = vmatpush3.bf16.msra.mxu0 %v15242_v0  ;;  %13722 = vmatprep.mubr.msk.f32.mxu0 %vm3617_vm5, %v16717_v48  ;;  %v5091_v48 = vld [vmem:[#allocation4 + $0x7d8] sm:$0xff]  ;;  %v5300_v0 = vld [vmem:[#allocation4 + $0x828] sm:$0xff] }
 0x6f6   :  { %15247 = vmatprep.subr.bf16.mxu0 %v15246_v3  ;;  %v15262_v43 = vpack.c.bf16 %v5091_v48, %v5090_v13  ;;  %v15302_v2 = vpack.c.bf16 %v5300_v0, %v5299_v63  ;;  %v5412_v13 = vld [vmem:[#allocation4 + $0x860] sm:$0xff]  ;;  %v5413_v48 = vld [vmem:[#allocation4 + $0x868] sm:$0xff]  ;;  %v5648_v0 = vld [vmem:[#allocation4 + $0x930] sm:$0xff] }
 0x6f8   :  { %15263 = vmatprep.subr.bf16.mxu1 %v15262_v43 }
 0x6f9   :  { %15249 = vmatpush3.bf16.msra.mxu0 %v15246_v3  ;;  %15265 = vmatpush3.bf16.msra.mxu1 %v15262_v43  ;;  %v5301_v3 = vld [vmem:[#allocation4 + $0x830] sm:$0xff]  ;;  %v15318_v43 = vpack.c.bf16 %v5413_v48, %v5412_v13 }
 0x6fa   :  { %15251 = vmatprep.subr.bf16.mxu0 %v15250_v8  ;;  %15267 = vmatprep.subr.bf16.mxu1 %v15266_v15  ;;  %v15306_v5 = vpack.c.bf16 %v5302_v4, %v5301_v3  ;;  %v5755_v4 = vld [vmem:[#allocation4 + $0x940] sm:$0xff]  ;;  %v5761_v48 = vld [vmem:[#allocation4 + $0x970] sm:$0xff] }
 0x6fd   :  { %15253 = vmatpush3.bf16.msra.mxu0 %v15250_v8  ;;  %15269 = vmatpush3.bf16.msra.mxu1 %v15266_v15  ;;  %v5303_v8 = vld [vmem:[#allocation4 + $0x840] sm:$0xff] }
 0x6fe   :  { %v5416_v15 = vld [vmem:[#allocation4 + $0x880] sm:$0xff] }
 0x700   :  { %13723 = vmatmul.mubr.msk.f32.vlgmr.msra.gmra.mrb[12].mxu0 %vm3617_vm5, %v16750_v22  ;;  %v5094_v22 = vld [vmem:[#allocation4 + $0x7f0] sm:$0xff] }
 0x701   :  { %13725 = vmatprep.mubr.msk.f32.mxu0 %vm3617_vm5, %v16788_v25  ;;  %v15270_v17 = vpack.c.bf16 %v5095_v16, %v5094_v22  ;;  %v5417_v22 = vld [vmem:[#allocation4 + $0x888] sm:$0xff] }
 0x703   :  { %15271 = vmatprep.subr.bf16.mxu1 %v15270_v17 }
 0x704   :  { %13726 = vmatmul.mubr.msk.f32.gmra.mrb[14].mxu0 %vm3617_vm5, %v4945_v11  ;;  %15273 = vmatpush3.bf16.msra.mxu1 %v15270_v17  ;;  %v5304_v11 = vld [vmem:[#allocation4 + $0x848] sm:$0xff]  ;;  %v15326_v17 = vpack.c.bf16 %v5417_v22, %v5416_v15  ;;  %v5870_v22 = vld [vmem:[#allocation4 + $0x990] sm:$0xff] }
 0x705   :  { %15275 = vmatprep.subr.bf16.mxu1 %v15274_v21 }
 0x722   :  { %v13460_v9 = vpop.f32.mrb[12].mxu1 }
 0x723   :  { %v3696_v7 = vpop.f32.mrb[13].mxu1 }
 0x726   :  { %v13463_v10 = vpop.f32.mrb[14].mxu1 }
 0x727   :  { %v3706_v12 = vpop.f32.mrb[15].mxu1 }
 0x7d3   :  { %v13724_v23 = vpop.f32.mrb[12].mxu0 }
 0x7d4   :  { %v15958_v44 = vadd.f32 %v13724_v23, %v13460_v9  ;;  %v5032_v25 = vpop.f32.mrb[13].mxu0  ;;  %v15310_v9 = vpack.c.bf16 %v5304_v11, %v5303_v8  ;;  %v5526_v23 = vld [vmem:[#allocation4 + $0x8a8] sm:$0xff]  ;;  %v5757_v11 = vld [vmem:[#allocation4 + $0x950] sm:$0xff] }
 0x7d5   :  { %v15959_v27 = vadd.f32 %v5032_v25, %v3696_v7  ;;  %v5410_v7 = vld [vmem:[#allocation4 + $0x850] sm:$0xff]  ;;  %v5528_v25 = vld [vmem:[#allocation4 + $0x8b8] sm:$0xff] }
 0x7d6   :  { %v16822_v29 = vadd.f32 %v15958_v44, %v11740_v24  ;;  %v5527_v44 = vld [vmem:[#allocation4 + $0x8b0] sm:$0xff] }
 0x7d7   :  { %v16824_v31 = vadd.f32 %v15959_v27, %v11740_v24  ;;  %v13727_v33 = vpop.f32.mrb[14].mxu0  ;;  %v15338_v27 = vpack.c.bf16 %v5528_v25, %v5527_v44  ;;  %v15398_v44 = vpack.c.bf16 %v5873_v19, %v5872_v18  ;;  %v6218_v18 = vld [vmem:[#allocation4 + $0xa98] sm:$0xff] }
 0x7d8   :  { %5065 = vst [vmem:[#allocation3 + $0x18] sm:$0xff] %v16822_v29  ;;  %v15960_v34 = vadd.f32 %v13727_v33, %v13463_v10  ;;  %v5042_v35 = vpop.f32.mrb[15].mxu0  ;;  %v5411_v10 = vld [vmem:[#allocation4 + $0x858] sm:$0xff] }
 0x7d9   :  { %5064 = vst [vmem:[#allocation3 + $0x10] sm:$0xff] %v16824_v31  ;;  %v15961_v36 = vadd.f32 %v5042_v35, %v3706_v12  ;;  %v15314_v12 = vpack.c.bf16 %v5411_v10, %v5410_v7  ;;  %v5530_v35 = vld [vmem:[#allocation4 + $0x8c8] sm:$0xff]  ;;  %v5759_v10 = vld [vmem:[#allocation4 + $0x960] sm:$0xff] }
 0x7da   :  { %v16828_v38 = vadd.f32 %v15960_v34, %v11740_v24  ;;  %v5529_v34 = vld [vmem:[#allocation4 + $0x8c0] sm:$0xff] }
 0x7db   :  { %v16830_v39 = vadd.f32 %v15961_v36, %v11740_v24  ;;  %v15342_v45 = vpack.c.bf16 %v5530_v35, %v5529_v34  ;;  %v5875_v34 = vld [vmem:[#allocation4 + $0x9b8] sm:$0xff] }
 0x7dc   :  { %5067 = vst [vmem:[#allocation3 + $0x28] sm:$0xff] %v16828_v38 }
 0x7dd   :  { %5066 = vst [vmem:[#allocation3 + $0x20] sm:$0xff] %v16830_v39 }
 0x7e0   :  { %v16834_v50 = vld [vmem:[#allocation3 + $0xe] sm:$0xff]  ;;  %v16836_v53 = vld [vmem:[#allocation3 + $0x16] sm:$0xff] }
 0x7e1   :  { %13749 = vmatmul.mubr.msk.f32.vlgmr.msra.gmra.mrb[16].mxu1 %vm5096_vm6, %v16834_v50  ;;  %v16847_v30 = vld [vmem:[#allocation3 + $0xc] sm:$0xff]  ;;  %v16851_v1 = vld [vmem:[#allocation3 + $0x14] sm:$0xff] }
 0x7e2   :  { %15277 = vmatpush3.bf16.msra.mxu1 %v15274_v21  ;;  %13751 = vmatprep.mubr.msk.f32.mxu1 %vm5096_vm6, %v16836_v53  ;;  %v5406_v16 = vld [vmem:[#allocation3 + $0xa] sm:$0xff]  ;;  %v5525_v21 = vld [vmem:[#allocation4 + $0x8a0] sm:$0xff]  ;;  %v16868_v33 = vld [vmem:[#allocation3 + $0x12] sm:$0xff] }
 0x7e3   :  { %15279 = vmatprep.subr.bf16.mxu1 %v15278_v42  ;;  %v15334_v24 = vpack.c.bf16 %v5526_v23, %v5525_v21  ;;  %v6586_v21 = vld [vmem:[#allocation4 + $0xbb8] sm:$0xff]  ;;  %v6587_v23 = vld [vmem:[#allocation4 + $0xbc0] sm:$0xff] }
 0x7e4   :  { %v16842_v47 = vld [vmem:[#allocation3 + $0x1e] sm:$0xff]  ;;  %v16896_v13 = vld [vmem:[#allocation3 + $0x26] sm:$0xff] }
 0x7e5   :  { %13752 = vmatmul.mubr.msk.f32.gmra.mrb[18].mxu1 %vm5096_vm6, %v16842_v47  ;;  %v16855_v37 = vld [vmem:[#allocation3 + $0x1c] sm:$0xff]  ;;  %v16886_v62 = vld [vmem:[#allocation3 + $0x24] sm:$0xff] }
 0x7e6   :  { %15281 = vmatpush3.bf16.msra.mxu1 %v15278_v42  ;;  %13774 = vmatprep.mubr.msk.f32.mxu1 %vm5096_vm6, %v5068_v54  ;;  %v16872_v36 = vld [vmem:[#allocation3 + $0x1a] sm:$0xff]  ;;  %v16876_v46 = vld [vmem:[#allocation3 + $0x22] sm:$0xff]  ;;  %v5531_v42 = vld [vmem:[#allocation4 + $0x8d0] sm:$0xff] }
 0x7e7   :  { %15283 = vmatprep.subr.bf16.mxu1 %v15282_v52  ;;  %v15346_v51 = vpack.c.bf16 %v5532_v49, %v5531_v42  ;;  %v5534_v54 = vld [vmem:[#allocation4 + $0x8e8] sm:$0xff] }
 0x7e8   :  { %v5877_v42 = vld [vmem:[#allocation4 + $0x9c8] sm:$0xff] }
 0x7ea   :  { %15285 = vmatpush3.bf16.msra.mxu1 %v15282_v52  ;;  %v5533_v52 = vld [vmem:[#allocation4 + $0x8e0] sm:$0xff] }
 0x7eb   :  { %15287 = vmatprep.subr.bf16.mxu1 %v15286_v56  ;;  %v15350_v40 = vpack.c.bf16 %v5534_v54, %v5533_v52  ;;  %v5879_v52 = vld [vmem:[#allocation4 + $0x9d8] sm:$0xff] }
 0x7ee   :  { %15289 = vmatpush3.bf16.msra.mxu1 %v15286_v56  ;;  %v5641_v56 = vld [vmem:[#allocation4 + $0x8f8] sm:$0xff] }
 0x7ef   :  { %15291 = vmatprep.subr.bf16.mxu1 %v15290_v26  ;;  %v15354_v57 = vpack.c.bf16 %v5641_v56, %v5640_v55  ;;  %v5986_v55 = vld [vmem:[#allocation4 + $0x9e8] sm:$0xff] }
 0x7f2   :  { %15293 = vmatpush3.bf16.msra.mxu1 %v15290_v26  ;;  %v5643_v26 = vld [vmem:[#allocation4 + $0x908] sm:$0xff] }
 0x7f3   :  { %15295 = vmatprep.subr.bf16.mxu1 %v15294_v60  ;;  %v15358_v58 = vpack.c.bf16 %v5643_v26, %v5642_v28  ;;  %v5988_v28 = vld [vmem:[#allocation4 + $0x9f8] sm:$0xff] }
 0x7f5   :  { %13775 = vmatmul.mubr.msk.f32.vlgmr.msra.gmra.mrb[16].mxu1 %vm5096_vm6, %v16847_v30 }
 0x7f6   :  { %13777 = vmatprep.mubr.msk.f32.mxu1 %vm5096_vm6, %v16851_v1  ;;  %15297 = vmatpush3.bf16.msra.mxu1 %v15294_v60  ;;  %v5645_v60 = vld [vmem:[#allocation4 + $0x918] sm:$0xff] }
 0x7f7   :  { %15299 = vmatprep.subr.bf16.mxu1 %v15298_v32  ;;  %v15362_v61 = vpack.c.bf16 %v5645_v60, %v5644_v59  ;;  %v5990_v59 = vld [vmem:[#allocation4 + $0xa08] sm:$0xff] }
 0x7f8   :  { %v16914_v60 = vld [vmem:[#allocation3 + $0x2a] sm:$0xff] }
 0x7f9   :  { %13778 = vmatmul.mubr.msk.f32.gmra.mrb[18].mxu1 %vm5096_vm6, %v16855_v37 }
 0x7fa   :  { %15301 = vmatpush3.bf16.msra.mxu1 %v15298_v32  ;;  %13800 = vmatprep.mubr.msk.f32.mxu1 %vm5096_vm6, %v16681_v6  ;;  %v15322_v6 = vpack.c.bf16 %v5415_v14, %v5414_v41  ;;  %v5646_v32 = vld [vmem:[#allocation4 + $0x920] sm:$0xff] }
 0x7fb   :  { %15303 = vmatprep.subr.bf16.mxu1 %v15302_v2  ;;  %v5763_v14 = vld [vmem:[#allocation4 + $0x980] sm:$0xff] }
 0x7fe   :  { %15305 = vmatpush3.bf16.msra.mxu1 %v15302_v2  ;;  %v5649_v2 = vld [vmem:[#allocation4 + $0x938] sm:$0xff] }
 0x7ff   :  { %15307 = vmatprep.subr.bf16.mxu1 %v15306_v5  ;;  %v15370_v3 = vpack.c.bf16 %v5649_v2, %v5648_v0  ;;  %v5994_v0 = vld [vmem:[#allocation4 + $0xa28] sm:$0xff] }
 0x802   :  { %15309 = vmatpush3.bf16.msra.mxu1 %v15306_v5  ;;  %v5756_v5 = vld [vmem:[#allocation4 + $0x948] sm:$0xff] }
 0x803   :  { %15311 = vmatprep.subr.bf16.mxu1 %v15310_v9  ;;  %v15374_v8 = vpack.c.bf16 %v5756_v5, %v5755_v4  ;;  %v6101_v4 = vld [vmem:[#allocation4 + $0xa38] sm:$0xff] }
 0x806   :  { %15313 = vmatpush3.bf16.msra.mxu1 %v15310_v9  ;;  %v5758_v9 = vld [vmem:[#allocation4 + $0x958] sm:$0xff] }
 0x807   :  { %15315 = vmatprep.subr.bf16.mxu1 %v15314_v12  ;;  %v15378_v7 = vpack.c.bf16 %v5758_v9, %v5757_v11  ;;  %v6103_v11 = vld [vmem:[#allocation4 + $0xa48] sm:$0xff] }
 0x809   :  { %13801 = vmatmul.mubr.msk.f32.vlgmr.msra.gmra.mrb[16].mxu1 %vm5096_vm6, %v16824_v31 }
 0x80a   :  { %13803 = vmatprep.mubr.msk.f32.mxu1 %vm5096_vm6, %v16822_v29  ;;  %15317 = vmatpush3.bf16.msra.mxu1 %v15314_v12  ;;  %v5760_v12 = vld [vmem:[#allocation4 + $0x968] sm:$0xff] }
 0x80b   :  { %15319 = vmatprep.subr.bf16.mxu1 %v15318_v43 }
 0x80d   :  { %13804 = vmatmul.mubr.msk.f32.gmra.mrb[18].mxu1 %vm5096_vm6, %v16830_v39 }
 0x80e   :  { %15321 = vmatpush3.bf16.msra.mxu1 %v15318_v43  ;;  %13826 = vmatprep.mubr.msk.f32.mxu1 %vm5096_vm6, %v5406_v16  ;;  %v5762_v43 = vld [vmem:[#allocation4 + $0x978] sm:$0xff] }
 0x80f   :  { %15323 = vmatprep.subr.bf16.mxu1 %v15322_v6  ;;  %v15386_v41 = vpack.c.bf16 %v5762_v43, %v5761_v48  ;;  %v5871_v16 = vld [vmem:[#allocation4 + $0x998] sm:$0xff]  ;;  %v6107_v48 = vld [vmem:[#allocation4 + $0xa68] sm:$0xff] }
 0x812   :  { %15325 = vmatpush3.bf16.msra.mxu1 %v15322_v6  ;;  %v5764_v6 = vld [vmem:[#allocation4 + $0x988] sm:$0xff] }
 0x813   :  { %15327 = vmatprep.subr.bf16.mxu1 %v15326_v17  ;;  %v15390_v15 = vpack.c.bf16 %v5764_v6, %v5763_v14  ;;  %v6109_v14 = vld [vmem:[#allocation4 + $0xa78] sm:$0xff] }
 0x816   :  { %15329 = vmatpush3.bf16.msra.mxu1 %v15326_v17  ;;  %v15394_v17 = vpack.c.bf16 %v5871_v16, %v5870_v22  ;;  %v6216_v22 = vld [vmem:[#allocation4 + $0xa88] sm:$0xff] }
 0x817   :  { %15331 = vmatprep.subr.bf16.mxu1 %v15330_v20 }
 0x81a   :  { %15333 = vmatpush3.bf16.msra.mxu1 %v15330_v20  ;;  %v6585_v20 = vld [vmem:[#allocation4 + $0xbb0] sm:$0xff] }
 0x81b   :  { %15335 = vmatprep.subr.bf16.mxu1 %v15334_v24 }
 0x81d   :  { %13827 = vmatmul.mubr.msk.f32.vlgmr.msra.gmra.mrb[16].mxu1 %vm5096_vm6, %v16868_v33 }
 0x81e   :  { %13829 = vmatprep.mubr.msk.f32.mxu1 %vm5096_vm6, %v16872_v36  ;;  %15337 = vmatpush3.bf16.msra.mxu1 %v15334_v24  ;;  %v15514_v24 = vpack.c.bf16 %v6586_v21, %v6585_v20  ;;  %v6219_v20 = vld [vmem:[#allocation4 + $0xaa0] sm:$0xff]  ;;  %v6220_v21 = vld [vmem:[#allocation4 + $0xaa8] sm:$0xff] }
 0x81f   :  { %15339 = vmatprep.subr.bf16.mxu1 %v15338_v27 }
 0x820   :  { %15515 = vmatprep.subr.bf16.mxu0 %v15514_v24 }
 0x821   :  { %13830 = vmatmul.mubr.msk.f32.gmra.mrb[18].mxu1 %vm5096_vm6, %v16876_v46  ;;  %15517 = vmatpush3.bf16.msra.mxu0 %v15514_v24  ;;  %v6221_v24 = vld [vmem:[#allocation4 + $0xab0] sm:$0xff] }
 0x822   :  { %15341 = vmatpush3.bf16.msra.mxu1 %v15338_v27  ;;  %13852 = vmatprep.mubr.msk.f32.mxu1 %vm5096_vm6, %v16847_v30  ;;  %v5647_v30 = vld [vmem:[#allocation4 + $0x928] sm:$0xff]  ;;  %v5874_v27 = vld [vmem:[#allocation4 + $0x9b0] sm:$0xff] }
 0x823   :  { %15343 = vmatprep.subr.bf16.mxu1 %v15342_v45  ;;  %v15366_v63 = vpack.c.bf16 %v5647_v30, %v5646_v32  ;;  %v15402_v35 = vpack.c.bf16 %v5875_v34, %v5874_v27  ;;  %v5992_v32 = vld [vmem:[#allocation4 + $0xa18] sm:$0xff]  ;;  %v6224_v27 = vld [vmem:[#allocation4 + $0xac8] sm:$0xff] }
 0x824   :  { %v6331_v34 = vld [vmem:[#allocation4 + $0xad8] sm:$0xff] }
 0x826   :  { %15345 = vmatpush3.bf16.msra.mxu1 %v15342_v45  ;;  %v5876_v45 = vld [vmem:[#allocation4 + $0x9c0] sm:$0xff] }
 0x827   :  { %15347 = vmatprep.subr.bf16.mxu1 %v15346_v51  ;;  %v15406_v49 = vpack.c.bf16 %v5877_v42, %v5876_v45  ;;  %v6332_v45 = vld [vmem:[#allocation4 + $0xae0] sm:$0xff]  ;;  %v6333_v42 = vld [vmem:[#allocation4 + $0xae8] sm:$0xff] }
 0x82a   :  { %15349 = vmatpush3.bf16.msra.mxu1 %v15346_v51  ;;  %v5878_v51 = vld [vmem:[#allocation4 + $0x9d0] sm:$0xff] }
 0x82b   :  { %15351 = vmatprep.subr.bf16.mxu1 %v15350_v40  ;;  %v15410_v54 = vpack.c.bf16 %v5879_v52, %v5878_v51  ;;  %v6334_v51 = vld [vmem:[#allocation4 + $0xaf0] sm:$0xff]  ;;  %v6335_v52 = vld [vmem:[#allocation4 + $0xaf8] sm:$0xff] }
 0x82e   :  { %15353 = vmatpush3.bf16.msra.mxu1 %v15350_v40  ;;  %v5985_v40 = vld [vmem:[#allocation4 + $0x9e0] sm:$0xff] }
 0x82f   :  { %15355 = vmatprep.subr.bf16.mxu1 %v15354_v57  ;;  %v15414_v56 = vpack.c.bf16 %v5986_v55, %v5985_v40  ;;  %v6337_v40 = vld [vmem:[#allocation4 + $0xb08] sm:$0xff]  ;;  %v16941_v55 = vld [vmem:[#allocation2] sm:$0xff] }
 0x831   :  { %13853 = vmatmul.mubr.msk.f32.vlgmr.msra.gmra.mrb[16].mxu1 %vm5096_vm6, %v16851_v1 }
 0x832   :  { %13855 = vmatprep.mubr.msk.f32.mxu1 %vm5096_vm6, %v16855_v37  ;;  %15357 = vmatpush3.bf16.msra.mxu1 %v15354_v57  ;;  %v5987_v57 = vld [vmem:[#allocation4 + $0x9f0] sm:$0xff] }
 0x833   :  { %15359 = vmatprep.subr.bf16.mxu1 %v15358_v58  ;;  %v15418_v26 = vpack.c.bf16 %v5988_v28, %v5987_v57  ;;  %v6339_v57 = vld [vmem:[#allocation4 + $0xb18] sm:$0xff]  ;;  %v6445_v28 = vld [vmem:[#allocation4 + $0xb20] sm:$0xff] }
 0x835   :  { %13856 = vmatmul.mubr.msk.f32.gmra.mrb[18].mxu1 %vm5096_vm6, %v16886_v62 }
 0x836   :  { %15361 = vmatpush3.bf16.msra.mxu1 %v15358_v58  ;;  %13878 = vmatprep.mubr.msk.f32.mxu1 %vm5096_vm6, %v16834_v50  ;;  %v15382_v50 = vpack.c.bf16 %v5760_v12, %v5759_v10  ;;  %v5989_v58 = vld [vmem:[#allocation4 + $0xa00] sm:$0xff]  ;;  %v6105_v10 = vld [vmem:[#allocation4 + $0xa58] sm:$0xff]  ;;  %v16924_v12 = vld [vmem:[#allocation3 + $0x2c] sm:$0xff] }
 0x837   :  { %15363 = vmatprep.subr.bf16.mxu1 %v15362_v61 }
 0x83a   :  { %15365 = vmatpush3.bf16.msra.mxu1 %v15362_v61  ;;  %v5991_v61 = vld [vmem:[#allocation4 + $0xa10] sm:$0xff] }
 0x83b   :  { %15367 = vmatprep.subr.bf16.mxu1 %v15366_v63  ;;  %v15426_v30 = vpack.c.bf16 %v5992_v32, %v5991_v61  ;;  %v6449_v32 = vld [vmem:[#allocation4 + $0xb40] sm:$0xff] }
 0x83e   :  { %15369 = vmatpush3.bf16.msra.mxu1 %v15366_v63  ;;  %v5993_v63 = vld [vmem:[#allocation4 + $0xa20] sm:$0xff] }
 0x83f   :  { %15371 = vmatprep.subr.bf16.mxu1 %v15370_v3  ;;  %v15430_v2 = vpack.c.bf16 %v5994_v0, %v5993_v63  ;;  %v6451_v0 = vld [vmem:[#allocation4 + $0xb50] sm:$0xff] }
 0x842   :  { %15373 = vmatpush3.bf16.msra.mxu1 %v15370_v3  ;;  %v6100_v3 = vld [vmem:[#allocation4 + $0xa30] sm:$0xff] }
 0x843   :  { %15375 = vmatprep.subr.bf16.mxu1 %v15374_v8  ;;  %v15434_v5 = vpack.c.bf16 %v6101_v4, %v6100_v3  ;;  %v6453_v4 = vld [vmem:[#allocation4 + $0xb60] sm:$0xff] }
 0x845   :  { %13879 = vmatmul.mubr.msk.f32.vlgmr.msra.gmra.mrb[16].mxu1 %vm5096_vm6, %v16836_v53 }
 0x846   :  { %13881 = vmatprep.mubr.msk.f32.mxu1 %vm5096_vm6, %v16842_v47  ;;  %15377 = vmatpush3.bf16.msra.mxu1 %v15374_v8  ;;  %v6102_v8 = vld [vmem:[#allocation4 + $0xa40] sm:$0xff] }
 0x847   :  { %15379 = vmatprep.subr.bf16.mxu1 %v15378_v7  ;;  %v15438_v9 = vpack.c.bf16 %v6103_v11, %v6102_v8  ;;  %v6590_v8 = vld [vmem:[#allocation4 + $0xbd8] sm:$0xff] }
 0x849   :  { %13882 = vmatmul.mubr.msk.f32.gmra.mrb[18].mxu1 %vm5096_vm6, %v16896_v13 }
 0x84a   :  { %15381 = vmatpush3.bf16.msra.mxu1 %v15378_v7  ;;  %13904 = vmatprep.mubr.msk.f32.mxu1 %vm5096_vm6, %v16824_v31  ;;  %v6588_v31 = vld [vmem:[#allocation4 + $0xbc8] sm:$0xff]  ;;  %v6104_v7 = vld [vmem:[#allocation4 + $0xa50] sm:$0xff] }
 0x84b   :  { %15383 = vmatprep.subr.bf16.mxu1 %v15382_v50  ;;  %v15518_v25 = vpack.c.bf16 %v6588_v31, %v6587_v23  ;;  %v6099_v23 = vld [vmem:[#allocation3 + $0x2e] sm:$0xff]  ;;  %v6222_v31 = vld [vmem:[#allocation4 + $0xab8] sm:$0xff] }
 0x84d   :  { %15519 = vmatprep.subr.bf16.mxu0 %v15518_v25 }
 0x84e   :  { %15385 = vmatpush3.bf16.msra.mxu1 %v15382_v50  ;;  %15521 = vmatpush3.bf16.msra.mxu0 %v15518_v25  ;;  %v6106_v50 = vld [vmem:[#allocation4 + $0xa60] sm:$0xff] }
 0x84f   :  { %15387 = vmatprep.subr.bf16.mxu1 %v15386_v41  ;;  %v15446_v43 = vpack.c.bf16 %v6107_v48, %v6106_v50  ;;  %v6223_v25 = vld [vmem:[#allocation4 + $0xac0] sm:$0xff]  ;;  %v6573_v50 = vld [vmem:[#allocation4 + $0xb70] sm:$0xff]  ;;  %v6574_v48 = vld [vmem:[#allocation4 + $0xb78] sm:$0xff] }
 0x852   :  { %15389 = vmatpush3.bf16.msra.mxu1 %v15386_v41  ;;  %v6108_v41 = vld [vmem:[#allocation4 + $0xa70] sm:$0xff] }
 0x853   :  { %15391 = vmatprep.subr.bf16.mxu1 %v15390_v15  ;;  %v15450_v6 = vpack.c.bf16 %v6109_v14, %v6108_v41 }
 0x856   :  { %15393 = vmatpush3.bf16.msra.mxu1 %v15390_v15  ;;  %v6215_v15 = vld [vmem:[#allocation4 + $0xa80] sm:$0xff] }
 0x857   :  { %15395 = vmatprep.subr.bf16.mxu1 %v15394_v17  ;;  %v15454_v16 = vpack.c.bf16 %v6216_v22, %v6215_v15 }
 0x859   :  { %13905 = vmatmul.mubr.msk.f32.vlgmr.msra.gmra.mrb[16].mxu1 %vm5096_vm6, %v16822_v29 }
 0x85a   :  { %13907 = vmatprep.mubr.msk.f32.mxu1 %vm5096_vm6, %v16830_v39  ;;  %15397 = vmatpush3.bf16.msra.mxu1 %v15394_v17  ;;  %v6217_v17 = vld [vmem:[#allocation4 + $0xa90] sm:$0xff] }
 0x85b   :  { %15399 = vmatprep.subr.bf16.mxu1 %v15398_v44  ;;  %v15458_v19 = vpack.c.bf16 %v6218_v18, %v6217_v17  ;;  %v6575_v18 = vld [vmem:[#allocation4 + $0xb80] sm:$0xff] }
 0x85d   :  { %13908 = vmatmul.mubr.msk.f32.gmra.mrb[18].mxu1 %vm5096_vm6, %v16828_v38 }
 0x85e   :  { %15401 = vmatpush3.bf16.msra.mxu1 %v15398_v44  ;;  %13930 = vmatprep.mubr.msk.f32.mxu1 %vm5096_vm6, %v16868_v33  ;;  %v15422_v33 = vpack.c.bf16 %v5990_v59, %v5989_v58  ;;  %v15466_v44 = vpack.c.bf16 %v6222_v31, %v6221_v24  ;;  %v6447_v59 = vld [vmem:[#allocation4 + $0xb30] sm:$0xff]  ;;  %v6578_v24 = vld [vmem:[#allocation4 + $0xb98] sm:$0xff] }
 0x85f   :  { %15403 = vmatprep.subr.bf16.mxu1 %v15402_v35 }
 0x862   :  { %15405 = vmatpush3.bf16.msra.mxu1 %v15402_v35 }
 0x863   :  { %15407 = vmatprep.subr.bf16.mxu1 %v15406_v49 }
 0x866   :  { %15409 = vmatpush3.bf16.msra.mxu1 %v15406_v49  ;;  %v15478_v49 = vpack.c.bf16 %v6333_v42, %v6332_v45  ;;  %v6793_v42 = vld [vmem:[#allocation4 + $0xc00] sm:$0xff] }
 0x867   :  { %15411 = vmatprep.subr.bf16.mxu1 %v15410_v54 }
 0x86a   :  { %15413 = vmatpush3.bf16.msra.mxu1 %v15410_v54  ;;  %v6336_v54 = vld [vmem:[#allocation4 + $0xb00] sm:$0xff] }
 0x86b   :  { %15415 = vmatprep.subr.bf16.mxu1 %v15414_v56 }
 0x86d   :  { %13931 = vmatmul.mubr.msk.f32.vlgmr.msra.gmra.mrb[16].mxu1 %vm5096_vm6, %v16872_v36 }
 0x86e   :  { %13933 = vmatprep.mubr.msk.f32.mxu1 %vm5096_vm6, %v16876_v46  ;;  %15417 = vmatpush3.bf16.msra.mxu1 %v15414_v56  ;;  %v15486_v56 = vpack.c.bf16 %v6337_v40, %v6336_v54  ;;  %v6796_v54 = vld [vmem:[#allocation4 + $0xc18] sm:$0xff] }
 0x86f   :  { %15419 = vmatprep.subr.bf16.mxu1 %v15418_v26 }
 0x871   :  { %13934 = vmatmul.mubr.msk.f32.gmra.mrb[18].mxu1 %vm5096_vm6, %v16914_v60 }
 0x872   :  { %15421 = vmatpush3.bf16.msra.mxu1 %v15418_v26  ;;  %13956 = vmatprep.mubr.msk.f32.mxu1 %vm5096_vm6, %v16851_v1  ;;  %v15442_v1 = vpack.c.bf16 %v6105_v10, %v6104_v7  ;;  %v6446_v26 = vld [vmem:[#allocation4 + $0xb28] sm:$0xff] }
 0x873   :  { %15423 = vmatprep.subr.bf16.mxu1 %v15422_v33  ;;  %v15494_v58 = vpack.c.bf16 %v6446_v26, %v6445_v28  ;;  %v6592_v7 = vld [vmem:[#allocation4 + $0xbe8] sm:$0xff]  ;;  %v6904_v26 = vld [vmem:[#allocation4 + $0xc30] sm:$0xff] }
 0x876   :  { %15425 = vmatpush3.bf16.msra.mxu1 %v15422_v33  ;;  %v6448_v33 = vld [vmem:[#allocation4 + $0xb38] sm:$0xff] }
 0x877   :  { %15427 = vmatprep.subr.bf16.mxu1 %v15426_v30  ;;  %v15498_v61 = vpack.c.bf16 %v6448_v33, %v6447_v59  ;;  %v6906_v33 = vld [vmem:[#allocation4 + $0xc40] sm:$0xff] }
 0x87a   :  { %15429 = vmatpush3.bf16.msra.mxu1 %v15426_v30  ;;  %v6450_v30 = vld [vmem:[#allocation4 + $0xb48] sm:$0xff] }
 0x87b   :  { %15431 = vmatprep.subr.bf16.mxu1 %v15430_v2  ;;  %v15502_v63 = vpack.c.bf16 %v6450_v30, %v6449_v32  ;;  %v6908_v30 = vld [vmem:[#allocation4 + $0xc50] sm:$0xff] }
 0x87e   :  { %15433 = vmatpush3.bf16.msra.mxu1 %v15430_v2  ;;  %v6452_v2 = vld [vmem:[#allocation4 + $0xb58] sm:$0xff] }
 0x87f   :  { %15435 = vmatprep.subr.bf16.mxu1 %v15434_v5  ;;  %v15506_v3 = vpack.c.bf16 %v6452_v2, %v6451_v0  ;;  %v6910_v0 = vld [vmem:[#allocation4 + $0xc60] sm:$0xff]  ;;  %v6911_v2 = vld [vmem:[#allocation4 + $0xc68] sm:$0xff] }
 0x881   :  { %13957 = vmatmul.mubr.msk.f32.vlgmr.msra.gmra.mrb[16].mxu1 %vm5096_vm6, %v16855_v37 }
 0x882   :  { %13959 = vmatprep.mubr.msk.f32.mxu1 %vm5096_vm6, %v16886_v62  ;;  %15437 = vmatpush3.bf16.msra.mxu1 %v15434_v5  ;;  %v6454_v5 = vld [vmem:[#allocation4 + $0xb68] sm:$0xff] }
 0x883   :  { %15439 = vmatprep.subr.bf16.mxu1 %v15438_v9 }
 0x885   :  { %13960 = vmatmul.mubr.msk.f32.gmra.mrb[18].mxu1 %vm5096_vm6, %v16924_v12 }
 0x886   :  { %15441 = vmatpush3.bf16.msra.mxu1 %v15438_v9  ;;  %13982 = vmatprep.mubr.msk.f32.mxu1 %vm5096_vm6, %v16836_v53  ;;  %v15462_v53 = vpack.c.bf16 %v6220_v21, %v6219_v20  ;;  %v6591_v9 = vld [vmem:[#allocation4 + $0xbe0] sm:$0xff]  ;;  %v6577_v21 = vld [vmem:[#allocation4 + $0xb90] sm:$0xff] }
 0x887   :  { %15443 = vmatprep.subr.bf16.mxu1 %v15442_v1  ;;  %v15526_v10 = vpack.c.bf16 %v6592_v7, %v6591_v9  ;;  %v15538_v31 = vpack.c.bf16 %v6578_v24, %v6577_v21  ;;  %v7021_v7 = vld [vmem:[#allocation4 + $0xc90] sm:$0xff]  ;;  %v7135_v24 = vld [vmem:[#allocation4 + $0xcd8] sm:$0xff] }
 0x888   :  { %v7134_v21 = vld [vmem:[#allocation4 + $0xcd0] sm:$0xff] }
 0x88a   :  { %15445 = vmatpush3.bf16.msra.mxu1 %v15442_v1  ;;  %v6581_v1 = vld [vmem:[#allocation2 + $0x6] sm:$0xff] }
 0x88b   :  { %15447 = vmatprep.subr.bf16.mxu1 %v15446_v43  ;;  %14082 = vmatprep.mubr.msk.f32.mxu0 %vm3617_vm5, %v6581_v1 }
 0x88e   :  { %15449 = vmatpush3.bf16.msra.mxu1 %v15446_v43 }
 0x88f   :  { %15451 = vmatprep.subr.bf16.mxu1 %v15450_v6 }
 0x892   :  { %15453 = vmatpush3.bf16.msra.mxu1 %v15450_v6 }
 0x893   :  { %15455 = vmatprep.subr.bf16.mxu1 %v15454_v16 }
 0x895   :  { %13983 = vmatmul.mubr.msk.f32.vlgmr.msra.gmra.mrb[16].mxu1 %vm5096_vm6, %v16842_v47  ;;  %v15470_v47 = vpack.c.bf16 %v6224_v27, %v6223_v25  ;;  %v6579_v27 = vld [vmem:[#allocation4 + $0xba0] sm:$0xff] }
 0x896   :  { %13985 = vmatprep.mubr.msk.f32.mxu1 %vm5096_vm6, %v16896_v13  ;;  %15457 = vmatpush3.bf16.msra.mxu1 %v15454_v16  ;;  %v6330_v13 = vld [vmem:[#allocation4 + $0xad0] sm:$0xff] }
 0x897   :  { %15459 = vmatprep.subr.bf16.mxu1 %v15458_v19  ;;  %v15474_v35 = vpack.c.bf16 %v6331_v34, %v6330_v13  ;;  %v6791_v34 = vld [vmem:[#allocation4 + $0xbf0] sm:$0xff] }
 0x899   :  { %13986 = vmatmul.mubr.msk.f32.gmra.mrb[18].mxu1 %vm5096_vm6, %v6099_v23 }
 0x89a   :  { %15461 = vmatpush3.bf16.msra.mxu1 %v15458_v19  ;;  %14008 = vmatprep.mubr.msk.f32.mxu1 %vm5096_vm6, %v16822_v29  ;;  %v15482_v29 = vpack.c.bf16 %v6335_v52, %v6334_v51  ;;  %v6576_v19 = vld [vmem:[#allocation4 + $0xb88] sm:$0xff] }
 0x89b   :  { %15463 = vmatprep.subr.bf16.mxu1 %v15462_v53  ;;  %v15534_v20 = vpack.c.bf16 %v6576_v19, %v6575_v18  ;;  %v7132_v18 = vld [vmem:[#allocation4 + $0xcc0] sm:$0xff]  ;;  %v7133_v19 = vld [vmem:[#allocation4 + $0xcc8] sm:$0xff] }
 0x89e   :  { %15465 = vmatpush3.bf16.msra.mxu1 %v15462_v53 }
 0x89f   :  { %15467 = vmatprep.subr.bf16.mxu1 %v15466_v44 }
 0x8a2   :  { %15469 = vmatpush3.bf16.msra.mxu1 %v15466_v44  ;;  %v6569_v44 = vld [vmem:[#allocation2 + $0x4] sm:$0xff] }
 0x8a3   :  { %15471 = vmatprep.subr.bf16.mxu1 %v15470_v47 }
 0x8a6   :  { %15473 = vmatpush3.bf16.msra.mxu1 %v15470_v47  ;;  %v6580_v47 = vld [vmem:[#allocation4 + $0xba8] sm:$0xff] }
 0x8a7   :  { %15475 = vmatprep.subr.bf16.mxu1 %v15474_v35  ;;  %v15542_v13 = vpack.c.bf16 %v6580_v47, %v6579_v27  ;;  %v7136_v27 = vld [vmem:[#allocation4 + $0xce0] sm:$0xff]  ;;  %v7137_v47 = vld [vmem:[#allocation4 + $0xce8] sm:$0xff] }
 0x8a9   :  { %14009 = vmatmul.mubr.msk.f32.vlgmr.msra.gmra.mrb[16].mxu1 %vm5096_vm6, %v16830_v39  ;;  %v6338_v39 = vld [vmem:[#allocation4 + $0xb10] sm:$0xff] }
 0x8aa   :  { %14011 = vmatprep.mubr.msk.f32.mxu1 %vm5096_vm6, %v16828_v38  ;;  %15477 = vmatpush3.bf16.msra.mxu1 %v15474_v35  ;;  %v15490_v38 = vpack.c.bf16 %v6339_v57, %v6338_v39  ;;  %v6792_v35 = vld [vmem:[#allocation4 + $0xbf8] sm:$0xff]  ;;  %v6797_v57 = vld [vmem:[#allocation4 + $0xc20] sm:$0xff] }
 0x8ab   :  { %15479 = vmatprep.subr.bf16.mxu1 %v15478_v49  ;;  %v15546_v45 = vpack.c.bf16 %v6792_v35, %v6791_v34  ;;  %v7243_v34 = vld [vmem:[#allocation4 + $0xcf0] sm:$0xff]  ;;  %v7244_v35 = vld [vmem:[#allocation4 + $0xcf8] sm:$0xff] }
 0x8ad   :  { %14012 = vmatmul.mubr.msk.f32.gmra.mrb[18].mxu1 %vm5096_vm6, %v16941_v55 }
 0x8ae   :  { %15481 = vmatpush3.bf16.msra.mxu1 %v15478_v49  ;;  %14034 = vmatprep.mubr.msk.f32.mxu1 %vm5096_vm6, %v16872_v36  ;;  %v6329_v36 = vld [vmem:[#allocation3 + $0x32] sm:$0xff]  ;;  %v6794_v49 = vld [vmem:[#allocation4 + $0xc08] sm:$0xff] }
 0x8af   :  { %15483 = vmatprep.subr.bf16.mxu1 %v15482_v29  ;;  %v15550_v51 = vpack.c.bf16 %v6794_v49, %v6793_v42  ;;  %v7245_v42 = vld [vmem:[#allocation4 + $0xd00] sm:$0xff]  ;;  %v7246_v49 = vld [vmem:[#allocation4 + $0xd08] sm:$0xff] }
 0x8b2   :  { %15485 = vmatpush3.bf16.msra.mxu1 %v15482_v29  ;;  %v6795_v29 = vld [vmem:[#allocation4 + $0xc10] sm:$0xff] }
 0x8b3   :  { %15487 = vmatprep.subr.bf16.mxu1 %v15486_v56 }
 0x8b6   :  { %15489 = vmatpush3.bf16.msra.mxu1 %v15486_v56  ;;  %v15554_v56 = vpack.c.bf16 %v6796_v54, %v6795_v29  ;;  %v7248_v29 = vld [vmem:[#allocation4 + $0xd18] sm:$0xff] }
 0x8b7   :  { %15491 = vmatprep.subr.bf16.mxu1 %v15490_v38 }
 0x8ba   :  { %15493 = vmatpush3.bf16.msra.mxu1 %v15490_v38  ;;  %v6798_v38 = vld [vmem:[#allocation4 + $0xc28] sm:$0xff] }
 0x8bb   :  { %15495 = vmatprep.subr.bf16.mxu1 %v15494_v58  ;;  %v15558_v28 = vpack.c.bf16 %v6798_v38, %v6797_v57  ;;  %v7250_v57 = vld [vmem:[#allocation4 + $0xd28] sm:$0xff] }
 0x8bd   :  { %14035 = vmatmul.mubr.msk.f32.vlgmr.msra.gmra.mrb[16].mxu1 %vm5096_vm6, %v16876_v46  ;;  %v15510_v46 = vpack.c.bf16 %v6454_v5, %v6453_v4  ;;  %v15574_v4 = vpack.c.bf16 %v6911_v2, %v6910_v0  ;;  %v7017_v5 = vld [vmem:[#allocation4 + $0xc70] sm:$0xff] }
 0x8be   :  { %14037 = vmatprep.mubr.msk.f32.mxu1 %vm5096_vm6, %v16914_v60  ;;  %15497 = vmatpush3.bf16.msra.mxu1 %v15494_v58  ;;  %v6444_v60 = vld [vmem:[#allocation3 + $0x34] sm:$0xff] }
 0x8bf   :  { %15499 = vmatprep.subr.bf16.mxu1 %v15498_v61  ;;  %v6905_v58 = vld [vmem:[#allocation4 + $0xc38] sm:$0xff]  ;;  %v7469_v2 = vld [vmem:[#allocation4 + $0xd70] sm:$0xff] }
 0x8c0   :  { %v15562_v59 = vpack.c.bf16 %v6905_v58, %v6904_v26  ;;  %v7357_v26 = vld [vmem:[#allocation4 + $0xd38] sm:$0xff] }
 0x8c1   :  { %14038 = vmatmul.mubr.msk.f32.gmra.mrb[18].mxu1 %vm5096_vm6, %v6329_v36  ;;  %v6909_v36 = vld [vmem:[#allocation4 + $0xc58] sm:$0xff] }
 0x8c2   :  { %15501 = vmatpush3.bf16.msra.mxu1 %v15498_v61  ;;  %14060 = vmatprep.mubr.msk.f32.mxu1 %vm5096_vm6, %v16855_v37  ;;  %v6589_v37 = vld [vmem:[#allocation4 + $0xbd0] sm:$0xff]  ;;  %v6907_v61 = vld [vmem:[#allocation4 + $0xc48] sm:$0xff] }
 0x8c3   :  { %15503 = vmatprep.subr.bf16.mxu1 %v15502_v63  ;;  %v15522_v11 = vpack.c.bf16 %v6590_v8, %v6589_v37  ;;  %v15566_v32 = vpack.c.bf16 %v6907_v61, %v6906_v33  ;;  %v7019_v37 = vld [vmem:[#allocation4 + $0xc80] sm:$0xff]  ;;  %v7020_v8 = vld [vmem:[#allocation4 + $0xc88] sm:$0xff] }
 0x8c4   :  { %v7359_v33 = vld [vmem:[#allocation4 + $0xd48] sm:$0xff] }
 0x8c5   :  { %15523 = vmatprep.subr.bf16.mxu0 %v15522_v11 }
 0x8c6   :  { %15505 = vmatpush3.bf16.msra.mxu1 %v15502_v63  ;;  %15525 = vmatpush3.bf16.msra.mxu0 %v15522_v11  ;;  %v15570_v63 = vpack.c.bf16 %v6909_v36, %v6908_v30  ;;  %v15582_v11 = vpack.c.bf16 %v7020_v8, %v7019_v37  ;;  %v7361_v30 = vld [vmem:[#allocation4 + $0xd58] sm:$0xff]  ;;  %v7362_v36 = vld [vmem:[#allocation4 + $0xd60] sm:$0xff]  ;;  %v7473_v37 = vld [vmem:[#allocation4 + $0xd90] sm:$0xff] }
 0x8c7   :  { %15507 = vmatprep.subr.bf16.mxu1 %v15506_v3  ;;  %15527 = vmatprep.subr.bf16.mxu0 %v15526_v10  ;;  %v7474_v8 = vld [vmem:[#allocation4 + $0xd98] sm:$0xff] }
 0x8ca   :  { %15509 = vmatpush3.bf16.msra.mxu1 %v15506_v3  ;;  %15529 = vmatpush3.bf16.msra.mxu0 %v15526_v10  ;;  %v7022_v10 = vld [vmem:[#allocation4 + $0xc98] sm:$0xff] }
 0x8cb   :  { %15511 = vmatprep.subr.bf16.mxu1 %v15510_v46 }
 0x8ce   :  { %15513 = vmatpush3.bf16.msra.mxu1 %v15510_v46  ;;  %v7018_v46 = vld [vmem:[#allocation4 + $0xc78] sm:$0xff] }
 0x8d1   :  { %14061 = vmatmul.mubr.msk.f32.vlgmr.msra.gmra.mrb[16].mxu1 %vm5096_vm6, %v16886_v62  ;;  %v15530_v62 = vpack.c.bf16 %v6574_v48, %v6573_v50  ;;  %v15586_v50 = vpack.c.bf16 %v7022_v10, %v7021_v7  ;;  %v7475_v7 = vld [vmem:[#allocation4 + $0xda0] sm:$0xff]  ;;  %v7476_v10 = vld [vmem:[#allocation4 + $0xda8] sm:$0xff] }
 0x8d2   :  { %14063 = vmatprep.mubr.msk.f32.mxu1 %vm5096_vm6, %v16924_v12  ;;  %v11793_v12 = vld [vmem:[#allocation6 + $0x7] ss:$0 sm:$0xff] }
 0x8d3   :  { %15531 = vmatprep.subr.bf16.mxu0 %v15530_v62 }
 0x8d5   :  { %14064 = vmatmul.mubr.msk.f32.gmra.mrb[18].mxu1 %vm5096_vm6, %v6444_v60  ;;  %v15578_v60 = vpack.c.bf16 %v7018_v46, %v7017_v5  ;;  %v7471_v5 = vld [vmem:[#allocation4 + $0xd80] sm:$0xff]  ;;  %v7472_v46 = vld [vmem:[#allocation4 + $0xd88] sm:$0xff] }
 0x9a4   :  { %v14062_v43 = vpop.f32.mrb[16].mxu1 }
 0x9a5   :  { %v16960_v41 = vadd.f32 %v14062_v43, %v11793_v12  ;;  %v6533_v14 = vpop.f32.mrb[17].mxu1 }
 0x9a6   :  { %v16962_v6 = vadd.f32 %v11793_v12, %v6533_v14  ;;  %v7130_v14 = vld [vmem:[#allocation4 + $0xcb0] sm:$0xff] }
 0x9a7   :  { %6566 = vst [vmem:[#allocation2 + $0x18] sm:$0xff] %v16960_v41 }
 0x9a8   :  { %6565 = vst [vmem:[#allocation2 + $0x10] sm:$0xff] %v16962_v6  ;;  %v14065_v15 = vpop.f32.mrb[18].mxu1 }
 0x9a9   :  { %v16966_v22 = vadd.f32 %v14065_v15, %v11793_v12  ;;  %v6543_v16 = vpop.f32.mrb[19].mxu1  ;;  %v7131_v15 = vld [vmem:[#allocation4 + $0xcb8] sm:$0xff] }
 0x9aa   :  { %v16968_v17 = vadd.f32 %v11793_v12, %v6543_v16  ;;  %v7024_v12 = vld [vmem:[#allocation4 + $0xca8] sm:$0xff]  ;;  %v15594_v16 = vpack.c.bf16 %v7131_v15, %v7130_v14  ;;  %v7584_v14 = vld [vmem:[#allocation4 + $0xdc0] sm:$0xff] }
 0x9ab   :  { %6568 = vst [vmem:[#allocation2 + $0x28] sm:$0xff] %v16966_v22  ;;  %v7585_v15 = vld [vmem:[#allocation4 + $0xdc8] sm:$0xff] }
 0x9ac   :  { %6567 = vst [vmem:[#allocation2 + $0x20] sm:$0xff] %v16968_v17 }
 0x9af   :  { %v16972_v53 = vld [vmem:[#allocation2 + $0xe] sm:$0xff]  ;;  %v16974_v23 = vld [vmem:[#allocation2 + $0x16] sm:$0xff] }
 0x9b0   :  { %14083 = vmatmul.mubr.msk.f32.vlgmr.msra.gmra.mrb[16].mxu0 %vm3617_vm5, %v16972_v53  ;;  %v16985_v52 = vld [vmem:[#allocation2 + $0xc] sm:$0xff]  ;;  %v16989_v40 = vld [vmem:[#allocation2 + $0x14] sm:$0xff] }
 0x9b1   :  { %15533 = vmatpush3.bf16.msra.mxu0 %v15530_v62  ;;  %14085 = vmatprep.mubr.msk.f32.mxu0 %vm3617_vm5, %v16974_v23  ;;  %v6900_v3 = vld [vmem:[#allocation2 + $0xa] sm:$0xff]  ;;  %v17006_v9 = vld [vmem:[#allocation2 + $0x12] sm:$0xff]  ;;  %v7023_v62 = vld [vmem:[#allocation4 + $0xca0] sm:$0xff] }
 0x9b2   :  { %15535 = vmatprep.subr.bf16.mxu0 %v15534_v20  ;;  %v15590_v43 = vpack.c.bf16 %v7024_v12, %v7023_v62  ;;  %v7582_v62 = vld [vmem:[#allocation4 + $0xdb0] sm:$0xff]  ;;  %v7583_v12 = vld [vmem:[#allocation4 + $0xdb8] sm:$0xff] }
 0x9b3   :  { %v16980_v25 = vld [vmem:[#allocation2 + $0x1e] sm:$0xff]  ;;  %v17034_v54 = vld [vmem:[#allocation2 + $0x26] sm:$0xff] }
 0x9b4   :  { %14086 = vmatmul.mubr.msk.f32.gmra.mrb[18].mxu0 %vm3617_vm5, %v16980_v25  ;;  %v16993_v39 = vld [vmem:[#allocation2 + $0x1c] sm:$0xff] }
 0x9b5   :  { %15537 = vmatpush3.bf16.msra.mxu0 %v15534_v20  ;;  %14104 = vmatprep.mubr.msk.f32.mxu0 %vm3617_vm5, %v6569_v44  ;;  %v17010_v1 = vld [vmem:[#allocation2 + $0x1a] sm:$0xff]  ;;  %v17014_v48 = vld [vmem:[#allocation2 + $0x22] sm:$0xff]  ;;  %v15598_v20 = vpack.c.bf16 %v7133_v19, %v7132_v18  ;;  %v7586_v18 = vld [vmem:[#allocation4 + $0xdd0] sm:$0xff] }
 0x9b6   :  { %15539 = vmatprep.subr.bf16.mxu0 %v15538_v31  ;;  %v17024_v44 = vld [vmem:[#allocation2 + $0x24] sm:$0xff]  ;;  %v7587_v19 = vld [vmem:[#allocation4 + $0xdd8] sm:$0xff] }
 0x9b9   :  { %15541 = vmatpush3.bf16.msra.mxu0 %v15538_v31  ;;  %v15602_v31 = vpack.c.bf16 %v7135_v24, %v7134_v21  ;;  %v7588_v21 = vld [vmem:[#allocation4 + $0xde0] sm:$0xff]  ;;  %v7589_v24 = vld [vmem:[#allocation4 + $0xde8] sm:$0xff] }
 0x9ba   :  { %15543 = vmatprep.subr.bf16.mxu0 %v15542_v13 }
 0x9bd   :  { %15545 = vmatpush3.bf16.msra.mxu0 %v15542_v13  ;;  %v15606_v13 = vpack.c.bf16 %v7137_v47, %v7136_v27  ;;  %v7695_v27 = vld [vmem:[#allocation4 + $0xdf0] sm:$0xff]  ;;  %v7696_v47 = vld [vmem:[#allocation4 + $0xdf8] sm:$0xff] }
 0x9be   :  { %15547 = vmatprep.subr.bf16.mxu0 %v15546_v45 }
 0x9c0   :  { %14105 = vmatmul.mubr.msk.f32.vlgmr.msra.gmra.mrb[16].mxu0 %vm3617_vm5, %v16985_v52 }
 0x9c1   :  { %14107 = vmatprep.mubr.msk.f32.mxu0 %vm3617_vm5, %v16989_v40  ;;  %15549 = vmatpush3.bf16.msra.mxu0 %v15546_v45  ;;  %v15610_v45 = vpack.c.bf16 %v7244_v35, %v7243_v34  ;;  %v7697_v34 = vld [vmem:[#allocation4 + $0xe00] sm:$0xff]  ;;  %v7698_v35 = vld [vmem:[#allocation4 + $0xe08] sm:$0xff] }
 0x9c2   :  { %15551 = vmatprep.subr.bf16.mxu0 %v15550_v51 }
 0x9c4   :  { %14108 = vmatmul.mubr.msk.f32.gmra.mrb[18].mxu0 %vm3617_vm5, %v16993_v39 }
 0x9c5   :  { %15553 = vmatpush3.bf16.msra.mxu0 %v15550_v51  ;;  %14126 = vmatprep.mubr.msk.f32.mxu0 %vm3617_vm5, %v16941_v55  ;;  %v15614_v51 = vpack.c.bf16 %v7246_v49, %v7245_v42  ;;  %v7699_v42 = vld [vmem:[#allocation4 + $0xe10] sm:$0xff]  ;;  %v7700_v49 = vld [vmem:[#allocation4 + $0xe18] sm:$0xff] }
 0x9c6   :  { %15555 = vmatprep.subr.bf16.mxu0 %v15554_v56 }
 0x9c9   :  { %15557 = vmatpush3.bf16.msra.mxu0 %v15554_v56  ;;  %v7249_v56 = vld [vmem:[#allocation4 + $0xd20] sm:$0xff] }
 0x9ca   :  { %15559 = vmatprep.subr.bf16.mxu0 %v15558_v28  ;;  %v15622_v38 = vpack.c.bf16 %v7250_v57, %v7249_v56  ;;  %v7808_v56 = vld [vmem:[#allocation4 + $0xe30] sm:$0xff]  ;;  %v7809_v57 = vld [vmem:[#allocation4 + $0xe38] sm:$0xff] }
 0x9cd   :  { %15561 = vmatpush3.bf16.msra.mxu0 %v15558_v28  ;;  %v7356_v28 = vld [vmem:[#allocation4 + $0xd30] sm:$0xff] }
 0x9ce   :  { %15563 = vmatprep.subr.bf16.mxu0 %v15562_v59  ;;  %v15626_v58 = vpack.c.bf16 %v7357_v26, %v7356_v28  ;;  %v7812_v26 = vld [vmem:[#allocation4 + $0xe50] sm:$0xff] }
 0x9d0   :  { %14127 = vmatmul.mubr.msk.f32.vlgmr.msra.gmra.mrb[16].mxu0 %vm3617_vm5, %v16962_v6 }
 0x9d1   :  { %14129 = vmatprep.mubr.msk.f32.mxu0 %vm3617_vm5, %v16960_v41  ;;  %15565 = vmatpush3.bf16.msra.mxu0 %v15562_v59  ;;  %v7358_v59 = vld [vmem:[#allocation4 + $0xd40] sm:$0xff] }
 0x9d2   :  { %15567 = vmatprep.subr.bf16.mxu0 %v15566_v32  ;;  %v15630_v61 = vpack.c.bf16 %v7359_v33, %v7358_v59  ;;  %v7814_v59 = vld [vmem:[#allocation4 + $0xe60] sm:$0xff]  ;;  %v7815_v33 = vld [vmem:[#allocation4 + $0xe68] sm:$0xff] }
 0x9d4   :  { %14130 = vmatmul.mubr.msk.f32.gmra.mrb[18].mxu0 %vm3617_vm5, %v16968_v17 }
 0x9d5   :  { %15569 = vmatpush3.bf16.msra.mxu0 %v15566_v32  ;;  %14148 = vmatprep.mubr.msk.f32.mxu0 %vm3617_vm5, %v6900_v3  ;;  %v7360_v32 = vld [vmem:[#allocation4 + $0xd50] sm:$0xff]  ;;  %v7470_v3 = vld [vmem:[#allocation4 + $0xd78] sm:$0xff] }
 0x9d6   :  { %15571 = vmatprep.subr.bf16.mxu0 %v15570_v63 }
 0x9d9   :  { %15573 = vmatpush3.bf16.msra.mxu0 %v15570_v63  ;;  %v7363_v63 = vld [vmem:[#allocation4 + $0xd68] sm:$0xff] }
 0x9da   :  { %15575 = vmatprep.subr.bf16.mxu0 %v15574_v4  ;;  %v15638_v0 = vpack.c.bf16 %v7363_v63, %v7362_v36  ;;  %v7925_v63 = vld [vmem:[#allocation4 + $0xe90] sm:$0xff] }
 0x9dd   :  { %15577 = vmatpush3.bf16.msra.mxu0 %v15574_v4  ;;  %v15642_v4 = vpack.c.bf16 %v7470_v3, %v7469_v2  ;;  %v7927_v3 = vld [vmem:[#allocation4 + $0xea0] sm:$0xff] }
 0x9de   :  { %15579 = vmatprep.subr.bf16.mxu0 %v15578_v60 }
 0x9e0   :  { %14149 = vmatmul.mubr.msk.f32.vlgmr.msra.gmra.mrb[16].mxu0 %vm3617_vm5, %v17006_v9 }
 0x9e1   :  { %14151 = vmatprep.mubr.msk.f32.mxu0 %vm3617_vm5, %v17010_v1  ;;  %15581 = vmatpush3.bf16.msra.mxu0 %v15578_v60  ;;  %v15646_v60 = vpack.c.bf16 %v7472_v46, %v7471_v5  ;;  %v8057_v46 = vld [vmem:[#allocation4 + $0xee0] sm:$0xff] }
 0x9e2   :  { %15583 = vmatprep.subr.bf16.mxu0 %v15582_v11 }
 0x9e4   :  { %14152 = vmatmul.mubr.msk.f32.gmra.mrb[18].mxu0 %vm3617_vm5, %v17014_v48 }
 0x9e5   :  { %15585 = vmatpush3.bf16.msra.mxu0 %v15582_v11  ;;  %14170 = vmatprep.mubr.msk.f32.mxu0 %vm3617_vm5, %v16985_v52  ;;  %v7247_v52 = vld [vmem:[#allocation4 + $0xd10] sm:$0xff]  ;;  %v15650_v11 = vpack.c.bf16 %v7474_v8, %v7473_v37  ;;  %v8060_v8 = vld [vmem:[#allocation4 + $0xef8] sm:$0xff] }
 0x9e6   :  { %15587 = vmatprep.subr.bf16.mxu0 %v15586_v50 }
 0x9e9   :  { %15589 = vmatpush3.bf16.msra.mxu0 %v15586_v50  ;;  %v15654_v50 = vpack.c.bf16 %v7476_v10, %v7475_v7  ;;  %v8062_v7 = vld [vmem:[#allocation4 + $0xf08] sm:$0xff] }
 0x9ea   :  { %15591 = vmatprep.subr.bf16.mxu0 %v15590_v43 }
 0x9ed   :  { %15593 = vmatpush3.bf16.msra.mxu0 %v15590_v43  ;;  %v15658_v43 = vpack.c.bf16 %v7583_v12, %v7582_v62  ;;  %v11846_v12 = vld [vmem:[#allocation6 + $0x8] ss:$0 sm:$0xff] }
 0x9ee   :  { %15595 = vmatprep.subr.bf16.mxu0 %v15594_v16 }
 0x9f0   :  { %14171 = vmatmul.mubr.msk.f32.vlgmr.msra.gmra.mrb[16].mxu0 %vm3617_vm5, %v16989_v40 }
 0x9f1   :  { %14173 = vmatprep.mubr.msk.f32.mxu0 %vm3617_vm5, %v16993_v39  ;;  %15597 = vmatpush3.bf16.msra.mxu0 %v15594_v16  ;;  %v15662_v16 = vpack.c.bf16 %v7585_v15, %v7584_v14 }
 0x9f2   :  { %15599 = vmatprep.subr.bf16.mxu0 %v15598_v20 }
 0x9f4   :  { %14174 = vmatmul.mubr.msk.f32.gmra.mrb[18].mxu0 %vm3617_vm5, %v17024_v44 }
 0x9f5   :  { %15601 = vmatpush3.bf16.msra.mxu0 %v15598_v20  ;;  %14192 = vmatprep.mubr.msk.f32.mxu0 %vm3617_vm5, %v16972_v53  ;;  %v15618_v53 = vpack.c.bf16 %v7248_v29, %v7247_v52  ;;  %v17062_v20 = vld [vmem:[#allocation2 + $0x2c] sm:$0xff]  ;;  %v7701_v52 = vld [vmem:[#allocation4 + $0xe20] sm:$0xff] }
 0x9f6   :  { %15603 = vmatprep.subr.bf16.mxu0 %v15602_v31  ;;  %v7702_v29 = vld [vmem:[#allocation4 + $0xe28] sm:$0xff] }
 0x9f9   :  { %15605 = vmatpush3.bf16.msra.mxu0 %v15602_v31  ;;  %v15670_v31 = vpack.c.bf16 %v7589_v24, %v7588_v21  ;;  %v8049_v21 = vld [vmem:[#allocation4 + $0xec0] sm:$0xff]  ;;  %v8050_v24 = vld [vmem:[#allocation4 + $0xec8] sm:$0xff] }
 0x9fa   :  { %15607 = vmatprep.subr.bf16.mxu0 %v15606_v13 }
 0x9fd   :  { %15609 = vmatpush3.bf16.msra.mxu0 %v15606_v13  ;;  %v15674_v13 = vpack.c.bf16 %v7696_v47, %v7695_v27  ;;  %v15738_v47 = vpack.c.bf16 %v8050_v24, %v8049_v21  ;;  %v8710_v21 = vld [vmem:[#allocation4 + $0xff8] sm:$0xff] }
 0x9fe   :  { %15611 = vmatprep.subr.bf16.mxu0 %v15610_v45 }
 0xa00   :  { %14193 = vmatmul.mubr.msk.f32.vlgmr.msra.gmra.mrb[16].mxu0 %vm3617_vm5, %v16974_v23 }
 0xa01   :  { %14195 = vmatprep.mubr.msk.f32.mxu0 %vm3617_vm5, %v16980_v25  ;;  %15613 = vmatpush3.bf16.msra.mxu0 %v15610_v45  ;;  %v15678_v45 = vpack.c.bf16 %v7698_v35, %v7697_v34  ;;  %v8052_v34 = vld [vmem:[#allocation4 + $0xed8] sm:$0xff] }
 0xa02   :  { %15615 = vmatprep.subr.bf16.mxu0 %v15614_v51 }
 0xa04   :  { %14196 = vmatmul.mubr.msk.f32.gmra.mrb[18].mxu0 %vm3617_vm5, %v17034_v54 }
 0xa05   :  { %15617 = vmatpush3.bf16.msra.mxu0 %v15614_v51  ;;  %14214 = vmatprep.mubr.msk.f32.mxu0 %vm3617_vm5, %v16962_v6  ;;  %v15634_v6 = vpack.c.bf16 %v7361_v30, %v7360_v32  ;;  %v7581_v51 = vld [vmem:[#allocation2 + $0x2e] sm:$0xff]  ;;  %v7922_v30 = vld [vmem:[#allocation4 + $0xe78] sm:$0xff] }
 0xa06   :  { %15619 = vmatprep.subr.bf16.mxu0 %v15618_v53  ;;  %v7921_v32 = vld [vmem:[#allocation4 + $0xe70] sm:$0xff] }
 0xa09   :  { %15621 = vmatpush3.bf16.msra.mxu0 %v15618_v53  ;;  %v15686_v53 = vpack.c.bf16 %v7702_v29, %v7701_v52  ;;  %v8263_v52 = vld [vmem:[#allocation4 + $0xf20] sm:$0xff]  ;;  %v8264_v29 = vld [vmem:[#allocation4 + $0xf28] sm:$0xff] }
 0xa0a   :  { %15623 = vmatprep.subr.bf16.mxu0 %v15622_v38 }
 0xa0d   :  { %15625 = vmatpush3.bf16.msra.mxu0 %v15622_v38  ;;  %v7811_v38 = vld [vmem:[#allocation4 + $0xe48] sm:$0xff] }
 0xa0e   :  { %15627 = vmatprep.subr.bf16.mxu0 %v15626_v58 }
 0xa10   :  { %14215 = vmatmul.mubr.msk.f32.vlgmr.msra.gmra.mrb[16].mxu0 %vm3617_vm5, %v16960_v41 }
 0xa11   :  { %14217 = vmatprep.mubr.msk.f32.mxu0 %vm3617_vm5, %v16968_v17  ;;  %15629 = vmatpush3.bf16.msra.mxu0 %v15626_v58  ;;  %v7813_v58 = vld [vmem:[#allocation4 + $0xe58] sm:$0xff] }
 0xa12   :  { %15631 = vmatprep.subr.bf16.mxu0 %v15630_v61 }
 0xa14   :  { %14218 = vmatmul.mubr.msk.f32.gmra.mrb[18].mxu0 %vm3617_vm5, %v16966_v22 }
 0xa15   :  { %15633 = vmatpush3.bf16.msra.mxu0 %v15630_v61  ;;  %14236 = vmatprep.mubr.msk.f32.mxu0 %vm3617_vm5, %v17006_v9  ;;  %v17052_v9 = vld [vmem:[#allocation2 + $0x2a] sm:$0xff]  ;;  %v15702_v61 = vpack.c.bf16 %v7815_v33, %v7814_v59  ;;  %v8376_v33 = vld [vmem:[#allocation4 + $0xf60] sm:$0xff] }
 0xa16   :  { %15635 = vmatprep.subr.bf16.mxu0 %v15634_v6 }
 0xa19   :  { %15637 = vmatpush3.bf16.msra.mxu0 %v15634_v6  ;;  %v7924_v6 = vld [vmem:[#allocation4 + $0xe88] sm:$0xff] }
 0xa1a   :  { %15639 = vmatprep.subr.bf16.mxu0 %v15638_v0 }
 0xa1d   :  { %15641 = vmatpush3.bf16.msra.mxu0 %v15638_v0  ;;  %v7926_v0 = vld [vmem:[#allocation4 + $0xe98] sm:$0xff] }
 0xa1e   :  { %15643 = vmatprep.subr.bf16.mxu0 %v15642_v4  ;;  %v15714_v2 = vpack.c.bf16 %v7926_v0, %v7925_v63  ;;  %v8485_v0 = vld [vmem:[#allocation4 + $0xf80] sm:$0xff] }
 0xa20   :  { %14237 = vmatmul.mubr.msk.f32.vlgmr.msra.gmra.mrb[16].mxu0 %vm3617_vm5, %v17010_v1 }
 0xa21   :  { %14239 = vmatprep.mubr.msk.f32.mxu0 %vm3617_vm5, %v17014_v48  ;;  %15645 = vmatpush3.bf16.msra.mxu0 %v15642_v4  ;;  %v7928_v4 = vld [vmem:[#allocation4 + $0xea8] sm:$0xff] }
 0xa22   :  { %15647 = vmatprep.subr.bf16.mxu0 %v15646_v60  ;;  %v15718_v5 = vpack.c.bf16 %v7928_v4, %v7927_v3  ;;  %v8487_v4 = vld [vmem:[#allocation4 + $0xf90] sm:$0xff] }
 0xa24   :  { %14240 = vmatmul.mubr.msk.f32.gmra.mrb[18].mxu0 %vm3617_vm5, %v17052_v9 }
 0xa25   :  { %15649 = vmatpush3.bf16.msra.mxu0 %v15646_v60  ;;  %14258 = vmatprep.mubr.msk.f32.mxu0 %vm3617_vm5, %v16989_v40  ;;  %v15666_v40 = vpack.c.bf16 %v7587_v19, %v7586_v18  ;;  %v8058_v60 = vld [vmem:[#allocation4 + $0xee8] sm:$0xff] }
 0xa26   :  { %15651 = vmatprep.subr.bf16.mxu0 %v15650_v11  ;;  %v15722_v37 = vpack.c.bf16 %v8058_v60, %v8057_v46 }
 0xa28   :  { %15723 = vmatprep.subr.bf16.mxu1 %v15722_v37 }
 0xa29   :  { %15653 = vmatpush3.bf16.msra.mxu0 %v15650_v11  ;;  %15725 = vmatpush3.bf16.msra.mxu1 %v15722_v37  ;;  %v8594_v37 = vld [vmem:[#allocation4 + $0xfa0] sm:$0xff] }
 0xa2a   :  { %15655 = vmatprep.subr.bf16.mxu0 %v15654_v50 }
 0xa2d   :  { %15657 = vmatpush3.bf16.msra.mxu0 %v15654_v50  ;;  %v8048_v50 = vld [vmem:[#allocation4 + $0xeb8] sm:$0xff] }
 0xa2e   :  { %15659 = vmatprep.subr.bf16.mxu0 %v15658_v43 }
 0xa30   :  { %14259 = vmatmul.mubr.msk.f32.vlgmr.msra.gmra.mrb[16].mxu0 %vm3617_vm5, %v16993_v39 }
 0xa31   :  { %14261 = vmatprep.mubr.msk.f32.mxu0 %vm3617_vm5, %v17024_v44  ;;  %15661 = vmatpush3.bf16.msra.mxu0 %v15658_v43 }
 0xa32   :  { %15663 = vmatprep.subr.bf16.mxu0 %v15662_v16 }
 0xa34   :  { %14262 = vmatmul.mubr.msk.f32.gmra.mrb[18].mxu0 %vm3617_vm5, %v17062_v20 }
 0xa35   :  { %15665 = vmatpush3.bf16.msra.mxu0 %v15662_v16  ;;  %14280 = vmatprep.mubr.msk.f32.mxu0 %vm3617_vm5, %v16974_v23  ;;  %v15682_v23 = vpack.c.bf16 %v7700_v49, %v7699_v42  ;;  %v8261_v49 = vld [vmem:[#allocation4 + $0xf10] sm:$0xff] }
 0xa36   :  { %15667 = vmatprep.subr.bf16.mxu0 %v15666_v40 }
 0xa39   :  { %15669 = vmatpush3.bf16.msra.mxu0 %v15666_v40 }
 0xa3a   :  { %15671 = vmatprep.subr.bf16.mxu0 %v15670_v31 }
 0xa3d   :  { %15673 = vmatpush3.bf16.msra.mxu0 %v15670_v31 }
 0xa3e   :  { %15675 = vmatprep.subr.bf16.mxu0 %v15674_v13 }
 0xa40   :  { %14281 = vmatmul.mubr.msk.f32.vlgmr.msra.gmra.mrb[16].mxu0 %vm3617_vm5, %v16980_v25  ;;  %v15690_v25 = vpack.c.bf16 %v7809_v57, %v7808_v56  ;;  %v8265_v56 = vld [vmem:[#allocation4 + $0xf30] sm:$0xff]  ;;  %v8266_v57 = vld [vmem:[#allocation4 + $0xf38] sm:$0xff] }
 0xa41   :  { %14283 = vmatprep.mubr.msk.f32.mxu0 %vm3617_vm5, %v17034_v54  ;;  %15677 = vmatpush3.bf16.msra.mxu0 %v15674_v13  ;;  %v7810_v54 = vld [vmem:[#allocation4 + $0xe40] sm:$0xff]  ;;  %v8051_v13 = vld [vmem:[#allocation4 + $0xed0] sm:$0xff] }
 0xa42   :  { %15679 = vmatprep.subr.bf16.mxu0 %v15678_v45  ;;  %v15694_v28 = vpack.c.bf16 %v7811_v38, %v7810_v54  ;;  %v15742_v42 = vpack.c.bf16 %v8052_v34, %v8051_v13  ;;  %v8372_v54 = vld [vmem:[#allocation4 + $0xf40] sm:$0xff]  ;;  %v8818_v34 = vld [vmem:[#allocation4 + $0x1010] sm:$0xff] }
 0xa44   :  { %14284 = vmatmul.mubr.msk.f32.gmra.mrb[18].mxu0 %vm3617_vm5, %v7581_v51 }
 0xa45   :  { %15681 = vmatpush3.bf16.msra.mxu0 %v15678_v45  ;;  %14302 = vmatprep.mubr.msk.f32.mxu0 %vm3617_vm5, %v16960_v41  ;;  %v15698_v41 = vpack.c.bf16 %v7813_v58, %v7812_v26  ;;  %v8374_v26 = vld [vmem:[#allocation4 + $0xf50] sm:$0xff]  ;;  %v8375_v58 = vld [vmem:[#allocation4 + $0xf58] sm:$0xff] }
 0xa46   :  { %15683 = vmatprep.subr.bf16.mxu0 %v15682_v23 }
 0xa49   :  { %15685 = vmatpush3.bf16.msra.mxu0 %v15682_v23  ;;  %v8262_v23 = vld [vmem:[#allocation4 + $0xf18] sm:$0xff] }
 0xa4a   :  { %15687 = vmatprep.subr.bf16.mxu0 %v15686_v53  ;;  %v15746_v51 = vpack.c.bf16 %v8262_v23, %v8261_v49  ;;  %v8821_v49 = vld [vmem:[#allocation4 + $0x1028] sm:$0xff] }
 0xa4d   :  { %15689 = vmatpush3.bf16.msra.mxu0 %v15686_v53  ;;  %v15750_v53 = vpack.c.bf16 %v8264_v29, %v8263_v52  ;;  %v8927_v52 = vld [vmem:[#allocation4 + $0x1030] sm:$0xff]  ;;  %v8928_v29 = vld [vmem:[#allocation4 + $0x1038] sm:$0xff] }
 0xa4e   :  { %15691 = vmatprep.subr.bf16.mxu0 %v15690_v25 }
 0xa50   :  { %14303 = vmatmul.mubr.msk.f32.vlgmr.msra.gmra.mrb[16].mxu0 %vm3617_vm5, %v16968_v17  ;;  %v15706_v17 = vpack.c.bf16 %v7922_v30, %v7921_v32 }
 0xa51   :  { %14305 = vmatprep.mubr.msk.f32.mxu0 %vm3617_vm5, %v16966_v22  ;;  %15693 = vmatpush3.bf16.msra.mxu0 %v15690_v25  ;;  %v7923_v22 = vld [vmem:[#allocation4 + $0xe80] sm:$0xff]  ;;  %v15754_v25 = vpack.c.bf16 %v8266_v57, %v8265_v56  ;;  %v8930_v57 = vld [vmem:[#allocation4 + $0x1048] sm:$0xff] }
 0xa52   :  { %15695 = vmatprep.subr.bf16.mxu0 %v15694_v28  ;;  %v15710_v36 = vpack.c.bf16 %v7924_v6, %v7923_v22  ;;  %v8483_v22 = vld [vmem:[#allocation4 + $0xf70] sm:$0xff]  ;;  %v8484_v6 = vld [vmem:[#allocation4 + $0xf78] sm:$0xff]  ;;  %v8929_v56 = vld [vmem:[#allocation4 + $0x1040] sm:$0xff] }
 0xa53   :  { %v15770_v63 = vpack.c.bf16 %v8484_v6, %v8483_v22 }
 0xa54   :  { %14306 = vmatmul.mubr.msk.f32.gmra.mrb[18].mxu0 %vm3617_vm5, %v16941_v55 }
 0xa55   :  { %15697 = vmatpush3.bf16.msra.mxu0 %v15694_v28  ;;  %14324 = vmatprep.mubr.msk.f32.mxu0 %vm3617_vm5, %v17010_v1  ;;  %v7807_v1 = vld [vmem:[#allocation2 + $0x32] sm:$0xff] }
 0xa56   :  { %15699 = vmatprep.subr.bf16.mxu0 %v15698_v41 }
 0xa59   :  { %15701 = vmatpush3.bf16.msra.mxu0 %v15698_v41  ;;  %v15762_v41 = vpack.c.bf16 %v8375_v58, %v8374_v26  ;;  %v17189_v26 = vld [vmem:[#allocation2] sm:$0xff] }
 0xa5a   :  { %15703 = vmatprep.subr.bf16.mxu0 %v15702_v61  ;;  %v9059_v58 = vld [vmem:[#allocation4 + $0x1080] sm:$0xff] }
 0xa5d   :  { %15705 = vmatpush3.bf16.msra.mxu0 %v15702_v61  ;;  %v8377_v61 = vld [vmem:[#allocation4 + $0xf68] sm:$0xff] }
 0xa5e   :  { %15707 = vmatprep.subr.bf16.mxu0 %v15706_v17  ;;  %v15766_v30 = vpack.c.bf16 %v8377_v61, %v8376_v33  ;;  %v9061_v33 = vld [vmem:[#allocation4 + $0x1090] sm:$0xff] }
 0xa60   :  { %14325 = vmatmul.mubr.msk.f32.vlgmr.msra.gmra.mrb[16].mxu0 %vm3617_vm5, %v17014_v48  ;;  %v7920_v48 = vld [vmem:[#allocation2 + $0x34] sm:$0xff] }
 0xa61   :  { %14327 = vmatprep.mubr.msk.f32.mxu0 %vm3617_vm5, %v17052_v9  ;;  %15709 = vmatpush3.bf16.msra.mxu0 %v15706_v17  ;;  %v8061_v9 = vld [vmem:[#allocation4 + $0xf00] sm:$0xff] }
 0xa62   :  { %15711 = vmatprep.subr.bf16.mxu0 %v15710_v36  ;;  %v15730_v10 = vpack.c.bf16 %v8062_v7, %v8061_v9  ;;  %v8597_v9 = vld [vmem:[#allocation4 + $0xfb8] sm:$0xff] }
 0xa64   :  { %14328 = vmatmul.mubr.msk.f32.gmra.mrb[18].mxu0 %vm3617_vm5, %v7807_v1  ;;  %v8486_v1 = vld [vmem:[#allocation4 + $0xf88] sm:$0xff] }
 0xa65   :  { %15713 = vmatpush3.bf16.msra.mxu0 %v15710_v36  ;;  %14346 = vmatprep.mubr.msk.f32.mxu0 %vm3617_vm5, %v16993_v39  ;;  %v8059_v39 = vld [vmem:[#allocation4 + $0xef0] sm:$0xff] }
 0xa66   :  { %15715 = vmatprep.subr.bf16.mxu0 %v15714_v2  ;;  %v15726_v11 = vpack.c.bf16 %v8060_v8, %v8059_v39  ;;  %v8595_v39 = vld [vmem:[#allocation4 + $0xfa8] sm:$0xff] }
 0xa67   :  { %v15782_v8 = vpack.c.bf16 %v8595_v39, %v8594_v37  ;;  %v9262_v37 = vld [vmem:[#allocation4 + $0x10a8] sm:$0xff] }
 0xa68   :  { %15727 = vmatprep.subr.bf16.mxu1 %v15726_v11 }
 0xa69   :  { %15717 = vmatpush3.bf16.msra.mxu0 %v15714_v2  ;;  %15729 = vmatpush3.bf16.msra.mxu1 %v15726_v11  ;;  %v15774_v2 = vpack.c.bf16 %v8486_v1, %v8485_v0  ;;  %v8596_v11 = vld [vmem:[#allocation4 + $0xfb0] sm:$0xff] }
 0xa6a   :  { %15719 = vmatprep.subr.bf16.mxu0 %v15718_v5  ;;  %15731 = vmatprep.subr.bf16.mxu1 %v15730_v10  ;;  %v15786_v7 = vpack.c.bf16 %v8597_v9, %v8596_v11  ;;  %v9263_v9 = vld [vmem:[#allocation4 + $0x10b0] sm:$0xff] }
 0xa6d   :  { %15721 = vmatpush3.bf16.msra.mxu0 %v15718_v5  ;;  %15733 = vmatpush3.bf16.msra.mxu1 %v15730_v10  ;;  %v8488_v5 = vld [vmem:[#allocation4 + $0xf98] sm:$0xff]  ;;  %v8598_v10 = vld [vmem:[#allocation4 + $0xfc0] sm:$0xff] }
 0xa6e   :  { %v15778_v46 = vpack.c.bf16 %v8488_v5, %v8487_v4  ;;  %v9054_v4 = vld [vmem:[#allocation4 + $0x1078] sm:$0xff] }
 0xa70   :  { %14347 = vmatmul.mubr.msk.f32.vlgmr.msra.gmra.mrb[16].mxu0 %vm3617_vm5, %v17024_v44  ;;  %v8047_v44 = vld [vmem:[#allocation4 + $0xeb0] sm:$0xff] }
 0xa71   :  { %14349 = vmatprep.mubr.msk.f32.mxu0 %vm3617_vm5, %v17062_v20  ;;  %v15734_v62 = vpack.c.bf16 %v8048_v50, %v8047_v44  ;;  %v8599_v44 = vld [vmem:[#allocation4 + $0xfc8] sm:$0xff] }
 0xa72   :  { %v15790_v50 = vpack.c.bf16 %v8599_v44, %v8598_v10  ;;  %v9370_v44 = vld [vmem:[#allocation4 + $0x10c0] sm:$0xff] }
 0xa73   :  { %15735 = vmatprep.subr.bf16.mxu1 %v15734_v62 }
 0xa74   :  { %14350 = vmatmul.mubr.msk.f32.gmra.mrb[18].mxu0 %vm3617_vm5, %v7920_v48 }
 0xb43   :  { %v14348_v43 = vpop.f32.mrb[16].mxu0 }
 0xb44   :  { %v17095_v14 = vadd.f32 %v14348_v43, %v11846_v12  ;;  %v8007_v15 = vpop.f32.mrb[17].mxu0 }
 0xb45   :  { %v17097_v16 = vadd.f32 %v11846_v12, %v8007_v15  ;;  %v8707_v15 = vld [vmem:[#allocation4 + $0xfe0] sm:$0xff] }
 0xb46   :  { %8040 = vst [vmem:[#allocation3 + $0x18] sm:$0xff] %v17095_v14 }
 0xb47   :  { %8039 = vst [vmem:[#allocation3 + $0x10] sm:$0xff] %v17097_v16  ;;  %v14351_v18 = vpop.f32.mrb[18].mxu0 }
 0xb48   :  { %v17101_v19 = vadd.f32 %v14351_v18, %v11846_v12  ;;  %v8017_v40 = vpop.f32.mrb[19].mxu0 }
 0xb49   :  { %v17103_v20 = vadd.f32 %v11846_v12, %v8017_v40  ;;  %v8706_v12 = vld [vmem:[#allocation4 + $0xfd8] sm:$0xff]  ;;  %v8709_v40 = vld [vmem:[#allocation4 + $0xff0] sm:$0xff] }
 0xb4a   :  { %8042 = vst [vmem:[#allocation3 + $0x28] sm:$0xff] %v17101_v19  ;;  %v15802_v24 = vpack.c.bf16 %v8710_v21, %v8709_v40  ;;  %v9479_v40 = vld [vmem:[#allocation4 + $0x10e0] sm:$0xff]  ;;  %v9480_v21 = vld [vmem:[#allocation4 + $0x10e8] sm:$0xff] }
 0xb4b   :  { %8041 = vst [vmem:[#allocation3 + $0x20] sm:$0xff] %v17103_v20 }
 0xb4e   :  { %v8053_v31 = vld [vmem:[#allocation3 + $0xa] sm:$0xff]  ;;  %v17107_v27 = vld [vmem:[#allocation3 + $0x12] sm:$0xff] }
 0xb4f   :  { %14364 = vmatprep.mubr.msk.f32.mxu1 %vm2608_vm4, %v8053_v31  ;;  %v8257_v38 = vld [vmem:[#allocation3 + $0xc] sm:$0xff]  ;;  %v17129_v59 = vld [vmem:[#allocation3 + $0x14] sm:$0xff] }
 0xb50   :  { %14365 = vmatmul.mubr.msk.f32.vlgmr.msra.gmra.mrb[20].mxu1 %vm2608_vm4, %v17107_v27  ;;  %v8368_v36 = vld [vmem:[#allocation3 + $0xe] sm:$0xff]  ;;  %v17142_v3 = vld [vmem:[#allocation3 + $0x16] sm:$0xff] }
 0xb51   :  { %15737 = vmatpush3.bf16.msra.mxu1 %v15734_v62  ;;  %v8705_v62 = vld [vmem:[#allocation4 + $0xfd0] sm:$0xff] }
 0xb52   :  { %v17112_v35 = vld [vmem:[#allocation3 + $0x1a] sm:$0xff]  ;;  %15739 = vmatprep.subr.bf16.mxu1 %v15738_v47  ;;  %v17114_v45 = vld [vmem:[#allocation3 + $0x22] sm:$0xff]  ;;  %v15794_v43 = vpack.c.bf16 %v8706_v12, %v8705_v62  ;;  %v8593_v31 = vld [vmem:[#allocation3 + $0x2a] sm:$0xff] }
 0xb53   :  { %14367 = vmatprep.mubr.msk.f32.mxu1 %vm2608_vm4, %v17112_v35  ;;  %v17133_v32 = vld [vmem:[#allocation3 + $0x1c] sm:$0xff]  ;;  %v17137_v17 = vld [vmem:[#allocation3 + $0x24] sm:$0xff]  ;;  %v9372_v12 = vld [vmem:[#allocation4 + $0x10d0] sm:$0xff] }
 0xb54   :  { %14368 = vmatmul.mubr.msk.f32.gmra.mrb[22].mxu1 %vm2608_vm4, %v17114_v45  ;;  %v17146_v48 = vld [vmem:[#allocation3 + $0x1e] sm:$0xff]  ;;  %v17150_v60 = vld [vmem:[#allocation3 + $0x26] sm:$0xff] }
 0xb55   :  { %15741 = vmatpush3.bf16.msra.mxu1 %v15738_v47  ;;  %14382 = vmatprep.mubr.msk.f32.mxu1 %vm2608_vm4, %v16941_v55  ;;  %v8373_v55 = vld [vmem:[#allocation4 + $0xf48] sm:$0xff] }
 0xb56   :  { %15743 = vmatprep.subr.bf16.mxu1 %v15742_v42  ;;  %v15758_v28 = vpack.c.bf16 %v8373_v55, %v8372_v54  ;;  %v8817_v47 = vld [vmem:[#allocation4 + $0x1008] sm:$0xff]  ;;  %v8931_v54 = vld [vmem:[#allocation4 + $0x1050] sm:$0xff]  ;;  %v8932_v55 = vld [vmem:[#allocation4 + $0x1058] sm:$0xff] }
 0xb59   :  { %15745 = vmatpush3.bf16.msra.mxu1 %v15742_v42  ;;  %v8819_v42 = vld [vmem:[#allocation4 + $0x1018] sm:$0xff] }
 0xb5a   :  { %15747 = vmatprep.subr.bf16.mxu1 %v15746_v51 }
 0xb5c   :  { %14383 = vmatmul.mubr.msk.f32.vlgmr.msra.gmra.mrb[20].mxu1 %vm2608_vm4, %v17097_v16 }
 0xb5d   :  { %14385 = vmatprep.mubr.msk.f32.mxu1 %vm2608_vm4, %v17095_v14  ;;  %15749 = vmatpush3.bf16.msra.mxu1 %v15746_v51  ;;  %v8704_v51 = vld [vmem:[#allocation3 + $0x2c] sm:$0xff] }
 0xb5e   :  { %15751 = vmatprep.subr.bf16.mxu1 %v15750_v53 }
 0xb60   :  { %14386 = vmatmul.mubr.msk.f32.gmra.mrb[22].mxu1 %vm2608_vm4, %v17103_v20 }
 0xb61   :  { %15753 = vmatpush3.bf16.msra.mxu1 %v15750_v53  ;;  %14400 = vmatprep.mubr.msk.f32.mxu1 %vm2608_vm4, %v8257_v38  ;;  %v15818_v53 = vpack.c.bf16 %v8928_v29, %v8927_v52  ;;  %v15826_v38 = vpack.c.bf16 %v8932_v55, %v8931_v54  ;;  %v9590_v29 = vld [vmem:[#allocation4 + $0x1110] sm:$0xff] }
 0xb62   :  { %15755 = vmatprep.subr.bf16.mxu1 %v15754_v25  ;;  %v9699_v55 = vld [vmem:[#allocation4 + $0x1130] sm:$0xff] }
 0xb65   :  { %15757 = vmatpush3.bf16.msra.mxu1 %v15754_v25  ;;  %v15822_v25 = vpack.c.bf16 %v8930_v57, %v8929_v56  ;;  %v9697_v57 = vld [vmem:[#allocation4 + $0x1120] sm:$0xff] }
 0xb66   :  { %15759 = vmatprep.subr.bf16.mxu1 %v15758_v28 }
 0xb68   :  { %14401 = vmatmul.mubr.msk.f32.vlgmr.msra.gmra.mrb[20].mxu1 %vm2608_vm4, %v17129_v59 }
 0xb69   :  { %14403 = vmatprep.mubr.msk.f32.mxu1 %vm2608_vm4, %v17133_v32  ;;  %15761 = vmatpush3.bf16.msra.mxu1 %v15758_v28  ;;  %v8815_v28 = vld [vmem:[#allocation3 + $0x2e] sm:$0xff] }
 0xb6a   :  { %15763 = vmatprep.subr.bf16.mxu1 %v15762_v41 }
 0xb6c   :  { %14404 = vmatmul.mubr.msk.f32.gmra.mrb[22].mxu1 %vm2608_vm4, %v17137_v17 }
 0xb6d   :  { %15765 = vmatpush3.bf16.msra.mxu1 %v15762_v41  ;;  %14418 = vmatprep.mubr.msk.f32.mxu1 %vm2608_vm4, %v8368_v36  ;;  %v9060_v41 = vld [vmem:[#allocation4 + $0x1088] sm:$0xff] }
 0xb6e   :  { %15767 = vmatprep.subr.bf16.mxu1 %v15766_v30 }
 0xb71   :  { %15769 = vmatpush3.bf16.msra.mxu1 %v15766_v30 }
 0xb72   :  { %15771 = vmatprep.subr.bf16.mxu1 %v15770_v63 }
 0xb74   :  { %14419 = vmatmul.mubr.msk.f32.vlgmr.msra.gmra.mrb[20].mxu1 %vm2608_vm4, %v17142_v3 }
 0xb75   :  { %14421 = vmatprep.mubr.msk.f32.mxu1 %vm2608_vm4, %v17146_v48  ;;  %15773 = vmatpush3.bf16.msra.mxu1 %v15770_v63 }
 0xb76   :  { %15775 = vmatprep.subr.bf16.mxu1 %v15774_v2 }
 0xb78   :  { %14422 = vmatmul.mubr.msk.f32.gmra.mrb[22].mxu1 %vm2608_vm4, %v17150_v60 }
 0xb79   :  { %15777 = vmatpush3.bf16.msra.mxu1 %v15774_v2  ;;  %14436 = vmatprep.mubr.msk.f32.mxu1 %vm2608_vm4, %v17097_v16  ;;  %v8708_v16 = vld [vmem:[#allocation4 + $0xfe8] sm:$0xff] }
 0xb7a   :  { %15779 = vmatprep.subr.bf16.mxu1 %v15778_v46  ;;  %v15798_v18 = vpack.c.bf16 %v8708_v16, %v8707_v15 }
 0xb7d   :  { %15781 = vmatpush3.bf16.msra.mxu1 %v15778_v46 }
 0xb7e   :  { %15783 = vmatprep.subr.bf16.mxu1 %v15782_v8 }
 0xb80   :  { %14437 = vmatmul.mubr.msk.f32.vlgmr.msra.gmra.mrb[20].mxu1 %vm2608_vm4, %v17095_v14 }
 0xb81   :  { %14439 = vmatprep.mubr.msk.f32.mxu1 %vm2608_vm4, %v17103_v20  ;;  %15785 = vmatpush3.bf16.msra.mxu1 %v15782_v8 }
 0xb82   :  { %15787 = vmatprep.subr.bf16.mxu1 %v15786_v7 }
 0xb84   :  { %14440 = vmatmul.mubr.msk.f32.gmra.mrb[22].mxu1 %vm2608_vm4, %v17101_v19 }
 0xb85   :  { %15789 = vmatpush3.bf16.msra.mxu1 %v15786_v7  ;;  %14454 = vmatprep.mubr.msk.f32.mxu1 %vm2608_vm4, %v17107_v27  ;;  %v8816_v27 = vld [vmem:[#allocation4 + $0x1000] sm:$0xff]  ;;  %v9264_v7 = vld [vmem:[#allocation4 + $0x10b8] sm:$0xff] }
 0xb86   :  { %15791 = vmatprep.subr.bf16.mxu1 %v15790_v50  ;;  %v15806_v13 = vpack.c.bf16 %v8817_v47, %v8816_v27  ;;  %v15850_v10 = vpack.c.bf16 %v9264_v7, %v9263_v9  ;;  %v9481_v47 = vld [vmem:[#allocation4 + $0x10f0] sm:$0xff] }
 0xb89   :  { %15793 = vmatpush3.bf16.msra.mxu1 %v15790_v50  ;;  %v9371_v50 = vld [vmem:[#allocation4 + $0x10c8] sm:$0xff] }
 0xb8a   :  { %15795 = vmatprep.subr.bf16.mxu1 %v15794_v43  ;;  %v15854_v62 = vpack.c.bf16 %v9371_v50, %v9370_v44  ;;  %v10039_v50 = vld [vmem:[#allocation4 + $0x1190] sm:$0xff] }
 0xb8c   :  { %14455 = vmatmul.mubr.msk.f32.vlgmr.msra.gmra.mrb[20].mxu1 %vm2608_vm4, %v17112_v35  ;;  %v15810_v35 = vpack.c.bf16 %v8819_v42, %v8818_v34 }
 0xb8d   :  { %14457 = vmatprep.mubr.msk.f32.mxu1 %vm2608_vm4, %v17114_v45  ;;  %15797 = vmatpush3.bf16.msra.mxu1 %v15794_v43  ;;  %v8820_v45 = vld [vmem:[#allocation4 + $0x1020] sm:$0xff]  ;;  %v9373_v43 = vld [vmem:[#allocation4 + $0x10d8] sm:$0xff] }
 0xb8e   :  { %15799 = vmatprep.subr.bf16.mxu1 %v15798_v18  ;;  %v15814_v23 = vpack.c.bf16 %v8821_v49, %v8820_v45  ;;  %v15858_v16 = vpack.c.bf16 %v9373_v43, %v9372_v12  ;;  %v9588_v45 = vld [vmem:[#allocation4 + $0x1100] sm:$0xff]  ;;  %v9589_v49 = vld [vmem:[#allocation4 + $0x1108] sm:$0xff]  ;;  %v10246_v12 = vld [vmem:[#allocation4 + $0x11b8] sm:$0xff] }
 0xb90   :  { %14458 = vmatmul.mubr.msk.f32.gmra.mrb[22].mxu1 %vm2608_vm4, %v8593_v31  ;;  %v15862_v31 = vpack.c.bf16 %v9480_v21, %v9479_v40  ;;  %v10247_v40 = vld [vmem:[#allocation4 + $0x11c0] sm:$0xff] }
 0xb91   :  { %15801 = vmatpush3.bf16.msra.mxu1 %v15798_v18  ;;  %14472 = vmatprep.mubr.msk.f32.mxu1 %vm2608_vm4, %v17129_v59  ;;  %v15830_v59 = vpack.c.bf16 %v9060_v41, %v9059_v58  ;;  %v9806_v58 = vld [vmem:[#allocation4 + $0x1140] sm:$0xff]  ;;  %v9807_v41 = vld [vmem:[#allocation4 + $0x1148] sm:$0xff] }
 0xb92   :  { %15803 = vmatprep.subr.bf16.mxu1 %v15802_v24 }
 0xb93   :  { %15831 = vmatprep.subr.bf16.mxu0 %v15830_v59 }
 0xb94   :  { %15833 = vmatpush3.bf16.msra.mxu0 %v15830_v59  ;;  %v15886_v59 = vpack.c.bf16 %v9807_v41, %v9806_v58  ;;  %v10679_v58 = vld [vmem:[#allocation4 + $0x1220] sm:$0xff] }
 0xb95   :  { %15805 = vmatpush3.bf16.msra.mxu1 %v15802_v24 }
 0xb96   :  { %15807 = vmatprep.subr.bf16.mxu1 %v15806_v13 }
 0xb98   :  { %14473 = vmatmul.mubr.msk.f32.vlgmr.msra.gmra.mrb[20].mxu1 %vm2608_vm4, %v17133_v32  ;;  %v9051_v32 = vld [vmem:[#allocation4 + $0x1060] sm:$0xff] }
 0xb99   :  { %14475 = vmatprep.mubr.msk.f32.mxu1 %vm2608_vm4, %v17137_v17  ;;  %15809 = vmatpush3.bf16.msra.mxu1 %v15806_v13  ;;  %v9482_v13 = vld [vmem:[#allocation4 + $0x10f8] sm:$0xff] }
 0xb9a   :  { %15811 = vmatprep.subr.bf16.mxu1 %v15810_v35  ;;  %v15866_v42 = vpack.c.bf16 %v9482_v13, %v9481_v47 }
 0xb9c   :  { %14476 = vmatmul.mubr.msk.f32.gmra.mrb[22].mxu1 %vm2608_vm4, %v8704_v51  ;;  %v15870_v51 = vpack.c.bf16 %v9589_v49, %v9588_v45  ;;  %v10461_v45 = vld [vmem:[#allocation4 + $0x11e0] sm:$0xff]  ;;  %v10462_v49 = vld [vmem:[#allocation4 + $0x11e8] sm:$0xff] }
 0xb9d   :  { %15813 = vmatpush3.bf16.msra.mxu1 %v15810_v35  ;;  %14490 = vmatprep.mubr.msk.f32.mxu1 %vm2608_vm4, %v17142_v3  ;;  %v9053_v3 = vld [vmem:[#allocation4 + $0x1070] sm:$0xff] }
 0xb9e   :  { %15815 = vmatprep.subr.bf16.mxu1 %v15814_v23  ;;  %v15842_v46 = vpack.c.bf16 %v9054_v4, %v9053_v3  ;;  %v10044_v3 = vld [vmem:[#allocation4 + $0x1198] sm:$0xff]  ;;  %v10045_v4 = vld [vmem:[#allocation4 + $0x11a0] sm:$0xff] }
 0xba1   :  { %15817 = vmatpush3.bf16.msra.mxu1 %v15814_v23 }
 0xba2   :  { %15819 = vmatprep.subr.bf16.mxu1 %v15818_v53 }
 0xba4   :  { %14491 = vmatmul.mubr.msk.f32.vlgmr.msra.gmra.mrb[20].mxu1 %vm2608_vm4, %v17146_v48 }
 0xba5   :  { %14493 = vmatprep.mubr.msk.f32.mxu1 %vm2608_vm4, %v17150_v60  ;;  %15821 = vmatpush3.bf16.msra.mxu1 %v15818_v53  ;;  %v9261_v60 = vld [vmem:[#allocation4 + $0x10a0] sm:$0xff]  ;;  %v9591_v53 = vld [vmem:[#allocation4 + $0x1118] sm:$0xff] }
 0xba6   :  { %15823 = vmatprep.subr.bf16.mxu1 %v15822_v25  ;;  %v15846_v11 = vpack.c.bf16 %v9262_v37, %v9261_v60  ;;  %v15874_v56 = vpack.c.bf16 %v9591_v53, %v9590_v29  ;;  %v10038_v60 = vld [vmem:[#allocation4 + $0x1188] sm:$0xff]  ;;  %v11920_v37 = vld [vmem:[#allocation6 + $0xa] ss:$0 sm:$0xff]  ;;  %v10463_v29 = vld [vmem:[#allocation4 + $0x11f0] sm:$0xff] }
 0xba7   :  { %v10569_v53 = vld [vmem:[#allocation4 + $0x11f8] sm:$0xff] }
 0xba8   :  { %14494 = vmatmul.mubr.msk.f32.gmra.mrb[22].mxu1 %vm2608_vm4, %v8815_v28 }
 0xba9   :  { %15825 = vmatpush3.bf16.msra.mxu1 %v15822_v25  ;;  %14508 = vmatprep.mubr.msk.f32.mxu1 %vm2608_vm4, %v17095_v14  ;;  %v9062_v14 = vld [vmem:[#allocation4 + $0x1098] sm:$0xff]  ;;  %v9698_v25 = vld [vmem:[#allocation4 + $0x1128] sm:$0xff] }
 0xbaa   :  { %15827 = vmatprep.subr.bf16.mxu1 %v15826_v38  ;;  %v15834_v61 = vpack.c.bf16 %v9062_v14, %v9061_v33  ;;  %v15878_v54 = vpack.c.bf16 %v9698_v25, %v9697_v57  ;;  %v9808_v14 = vld [vmem:[#allocation4 + $0x1150] sm:$0xff]  ;;  %v10571_v25 = vld [vmem:[#allocation4 + $0x1208] sm:$0xff] }
 0xbac   :  { %15835 = vmatprep.subr.bf16.mxu0 %v15834_v61 }
 0xbad   :  { %15829 = vmatpush3.bf16.msra.mxu1 %v15826_v38  ;;  %15837 = vmatpush3.bf16.msra.mxu0 %v15834_v61  ;;  %v9700_v38 = vld [vmem:[#allocation4 + $0x1138] sm:$0xff] }
 0xbae   :  { %v15882_v28 = vpack.c.bf16 %v9700_v38, %v9699_v55  ;;  %v9809_v61 = vld [vmem:[#allocation4 + $0x1158] sm:$0xff] }
 0xbaf   :  { %v10678_v55 = vld [vmem:[#allocation4 + $0x1218] sm:$0xff] }
 0xbb0   :  { %14509 = vmatmul.mubr.msk.f32.vlgmr.msra.gmra.mrb[20].mxu1 %vm2608_vm4, %v17103_v20  ;;  %v9052_v20 = vld [vmem:[#allocation4 + $0x1068] sm:$0xff] }
 0xbb1   :  { %14511 = vmatprep.mubr.msk.f32.mxu1 %vm2608_vm4, %v17101_v19  ;;  %v15838_v30 = vpack.c.bf16 %v9052_v20, %v9051_v32  ;;  %v11883_v19 = vld [vmem:[#allocation6 + $0x9] ss:$0 sm:$0xff]  ;;  %v15890_v32 = vpack.c.bf16 %v9809_v61, %v9808_v14 }
 0xbb2   :  { %v9915_v20 = vld [vmem:[#allocation4 + $0x1160] sm:$0xff] }
 0xbb3   :  { %15839 = vmatprep.subr.bf16.mxu0 %v15838_v30  ;;  %v10805_v14 = vld [vmem:[#allocation4 + $0x1240] sm:$0xff] }
 0xbb4   :  { %14512 = vmatmul.mubr.msk.f32.gmra.mrb[22].mxu1 %vm2608_vm4, %v17189_v26 }
 0xc83   :  { %v14510_v17 = vpop.f32.mrb[20].mxu1 }
 0xc84   :  { %v17193_v22 = vadd.f32 %v14510_v17, %v11883_v19  ;;  %v9011_v6 = vpop.f32.mrb[21].mxu1 }
 0xc85   :  { %v17195_v36 = vadd.f32 %v11883_v19, %v9011_v6  ;;  %v9917_v6 = vld [vmem:[#allocation4 + $0x1170] sm:$0xff] }
 0xc86   :  { %9044 = vst [vmem:[#allocation2 + $0x18] sm:$0xff] %v17193_v22 }
 0xc87   :  { %9043 = vst [vmem:[#allocation2 + $0x10] sm:$0xff] %v17195_v36  ;;  %v14513_v63 = vpop.f32.mrb[22].mxu1 }
 0xc88   :  { %v17199_v0 = vadd.f32 %v14513_v63, %v11883_v19  ;;  %v9021_v1 = vpop.f32.mrb[23].mxu1 }
 0xc89   :  { %v17201_v2 = vadd.f32 %v11883_v19, %v9021_v1 }
 0xc8a   :  { %9046 = vst [vmem:[#allocation2 + $0x28] sm:$0xff] %v17199_v0 }
 0xc8b   :  { %9045 = vst [vmem:[#allocation2 + $0x20] sm:$0xff] %v17201_v2 }
 0xc8e   :  { %v9055_v5 = vld [vmem:[#allocation2 + $0xa] sm:$0xff]  ;;  %v17205_v48 = vld [vmem:[#allocation2 + $0x12] sm:$0xff] }
 0xc8f   :  { %14522 = vmatprep.mubr.msk.f32.mxu0 %vm1067_vm3, %v9055_v5  ;;  %v9257_v15 = vld [vmem:[#allocation2 + $0xc] sm:$0xff]  ;;  %v9258_v18 = vld [vmem:[#allocation2 + $0x14] sm:$0xff]  ;;  %v15902_v5 = vpack.c.bf16 %v10045_v4, %v10044_v3 }
 0xc90   :  { %14523 = vmatmul.mubr.msk.f32.vlgmr.msra.gmra.mrb[20].mxu0 %vm1067_vm3, %v17205_v48  ;;  %v9366_v34 = vld [vmem:[#allocation2 + $0xe] sm:$0xff]  ;;  %v9367_v35 = vld [vmem:[#allocation2 + $0x16] sm:$0xff] }
 0xc91   :  { %15841 = vmatpush3.bf16.msra.mxu0 %v15838_v30  ;;  %v9587_v33 = vld [vmem:[#allocation2 + $0x2a] sm:$0xff]  ;;  %15903 = vmatprep.subr.bf16.mxu1 %v15902_v5 }
 0xc92   :  { %v17210_v39 = vld [vmem:[#allocation2 + $0x1a] sm:$0xff]  ;;  %15843 = vmatprep.subr.bf16.mxu0 %v15842_v46  ;;  %v17212_v8 = vld [vmem:[#allocation2 + $0x22] sm:$0xff]  ;;  %v9696_v17 = vld [vmem:[#allocation2 + $0x2c] sm:$0xff]  ;;  %15905 = vmatpush3.bf16.msra.mxu1 %v15902_v5 }
 0xc93   :  { %14525 = vmatprep.mubr.msk.f32.mxu0 %vm1067_vm3, %v17210_v39  ;;  %v9259_v24 = vld [vmem:[#allocation2 + $0x1c] sm:$0xff]  ;;  %v9260_v27 = vld [vmem:[#allocation2 + $0x24] sm:$0xff]  ;;  %v9805_v1 = vld [vmem:[#allocation2 + $0x2e] sm:$0xff] }
 0xc94   :  { %14526 = vmatmul.mubr.msk.f32.gmra.mrb[22].mxu0 %vm1067_vm3, %v17212_v8  ;;  %v9368_v23 = vld [vmem:[#allocation2 + $0x1e] sm:$0xff]  ;;  %v9369_v52 = vld [vmem:[#allocation2 + $0x26] sm:$0xff] }
 0xc95   :  { %15845 = vmatpush3.bf16.msra.mxu0 %v15842_v46  ;;  %14536 = vmatprep.mubr.msk.f32.mxu0 %vm1067_vm3, %v17189_v26  ;;  %v9916_v30 = vld [vmem:[#allocation4 + $0x1168] sm:$0xff]  ;;  %v10037_v46 = vld [vmem:[#allocation4 + $0x1180] sm:$0xff] }
 0xc96   :  { %15847 = vmatprep.subr.bf16.mxu0 %v15846_v11  ;;  %v15894_v19 = vpack.c.bf16 %v9916_v30, %v9915_v20  ;;  %v10799_v20 = vld [vmem:[#allocation4 + $0x1230] sm:$0xff] }
 0xc98   :  { %14537 = vmatmul.mubr.msk.f32.vlgmr.msra.gmra.mrb[20].mxu0 %vm1067_vm3, %v17195_v36 }
 0xc99   :  { %15849 = vmatpush3.bf16.msra.mxu0 %v15846_v11  ;;  %14539 = vmatprep.mubr.msk.f32.mxu0 %vm1067_vm3, %v17193_v22 }
 0xc9a   :  { %15851 = vmatprep.subr.bf16.mxu0 %v15850_v10 }
 0xc9c   :  { %14540 = vmatmul.mubr.msk.f32.gmra.mrb[22].mxu0 %vm1067_vm3, %v17201_v2 }
 0xc9d   :  { %15853 = vmatpush3.bf16.msra.mxu0 %v15850_v10  ;;  %14550 = vmatprep.mubr.msk.f32.mxu0 %vm1067_vm3, %v9257_v15 }
 0xc9e   :  { %15855 = vmatprep.subr.bf16.mxu0 %v15854_v62 }
 0xca0   :  { %14551 = vmatmul.mubr.msk.f32.vlgmr.msra.gmra.mrb[20].mxu0 %vm1067_vm3, %v9258_v18 }
 0xca1   :  { %15857 = vmatpush3.bf16.msra.mxu0 %v15854_v62  ;;  %14553 = vmatprep.mubr.msk.f32.mxu0 %vm1067_vm3, %v9259_v24  ;;  %v10245_v62 = vld [vmem:[#allocation4 + $0x11b0] sm:$0xff] }
 0xca2   :  { %15859 = vmatprep.subr.bf16.mxu0 %v15858_v16 }
 0xca4   :  { %14554 = vmatmul.mubr.msk.f32.gmra.mrb[22].mxu0 %vm1067_vm3, %v9260_v27 }
 0xca5   :  { %15861 = vmatpush3.bf16.msra.mxu0 %v15858_v16  ;;  %14564 = vmatprep.mubr.msk.f32.mxu0 %vm1067_vm3, %v9366_v34  ;;  %v15910_v16 = vpack.c.bf16 %v10246_v12, %v10245_v62 }
 0xca6   :  { %15863 = vmatprep.subr.bf16.mxu0 %v15862_v31 }
 0xca8   :  { %14565 = vmatmul.mubr.msk.f32.vlgmr.msra.gmra.mrb[20].mxu0 %vm1067_vm3, %v9367_v35 }
 0xca9   :  { %15865 = vmatpush3.bf16.msra.mxu0 %v15862_v31  ;;  %14567 = vmatprep.mubr.msk.f32.mxu0 %vm1067_vm3, %v9368_v23  ;;  %v10354_v31 = vld [vmem:[#allocation4 + $0x11d0] sm:$0xff] }
 0xcaa   :  { %15867 = vmatprep.subr.bf16.mxu0 %v15866_v42 }
 0xcac   :  { %14568 = vmatmul.mubr.msk.f32.gmra.mrb[22].mxu0 %vm1067_vm3, %v9369_v52 }
 0xcad   :  { %15869 = vmatpush3.bf16.msra.mxu0 %v15866_v42  ;;  %14578 = vmatprep.mubr.msk.f32.mxu0 %vm1067_vm3, %v17195_v36  ;;  %v9918_v36 = vld [vmem:[#allocation4 + $0x1178] sm:$0xff] }
 0xcae   :  { %15871 = vmatprep.subr.bf16.mxu0 %v15870_v51  ;;  %v15898_v63 = vpack.c.bf16 %v9918_v36, %v9917_v6  ;;  %v10355_v42 = vld [vmem:[#allocation4 + $0x11d8] sm:$0xff] }
 0xcb0   :  { %14579 = vmatmul.mubr.msk.f32.vlgmr.msra.gmra.mrb[20].mxu0 %vm1067_vm3, %v17193_v22 }
 0xcb1   :  { %15873 = vmatpush3.bf16.msra.mxu0 %v15870_v51  ;;  %14581 = vmatprep.mubr.msk.f32.mxu0 %vm1067_vm3, %v17201_v2  ;;  %v15918_v51 = vpack.c.bf16 %v10462_v49, %v10461_v45 }
 0xcb2   :  { %15875 = vmatprep.subr.bf16.mxu0 %v15874_v56 }
 0xcb4   :  { %14582 = vmatmul.mubr.msk.f32.gmra.mrb[22].mxu0 %vm1067_vm3, %v17199_v0 }
 0xcb5   :  { %15877 = vmatpush3.bf16.msra.mxu0 %v15874_v56  ;;  %14592 = vmatprep.mubr.msk.f32.mxu0 %vm1067_vm3, %v17205_v48  ;;  %v10046_v48 = vld [vmem:[#allocation4 + $0x11a8] sm:$0xff]  ;;  %v10570_v56 = vld [vmem:[#allocation4 + $0x1200] sm:$0xff] }
 0xcb6   :  { %15879 = vmatprep.subr.bf16.mxu0 %v15878_v54  ;;  %14644 = vmatprep.subr.mxu1 %v10046_v48  ;;  %v15922_v57 = vpack.c.bf16 %v10570_v56, %v10569_v53 }
 0xcb7   :  { %14645 = vmatpush3.msra.mxu1 %v10046_v48  ;;  %v11004_v48 = vld [vmem:[#allocation4 + $0x1248] sm:$0xff] }
 0xcb8   :  { %14593 = vmatmul.mubr.msk.f32.vlgmr.msra.gmra.mrb[20].mxu0 %vm1067_vm3, %v17210_v39 }
 0xcb9   :  { %15881 = vmatpush3.bf16.msra.mxu0 %v15878_v54  ;;  %14595 = vmatprep.mubr.msk.f32.mxu0 %vm1067_vm3, %v17212_v8  ;;  %v10677_v54 = vld [vmem:[#allocation4 + $0x1210] sm:$0xff] }
 0xcba   :  { %15883 = vmatprep.subr.bf16.mxu0 %v15882_v28  ;;  %v15926_v38 = vpack.c.bf16 %v10678_v55, %v10677_v54 }
 0xcbc   :  { %14596 = vmatmul.mubr.msk.f32.gmra.mrb[22].mxu0 %vm1067_vm3, %v9587_v33  ;;  %v10804_v33 = vld [vmem:[#allocation4 + $0x1238] sm:$0xff] }
 0xcbd   :  { %15885 = vmatpush3.bf16.msra.mxu0 %v15882_v28  ;;  %14606 = vmatprep.mubr.msk.f32.mxu0 %vm1067_vm3, %v9258_v18  ;;  %v15930_v61 = vpack.c.bf16 %v10805_v14, %v10804_v33 }
 0xcbe   :  { %15887 = vmatprep.subr.bf16.mxu0 %v15886_v59 }
 0xcc0   :  { %14607 = vmatmul.mubr.msk.f32.vlgmr.msra.gmra.mrb[20].mxu0 %vm1067_vm3, %v9259_v24  ;;  %v10353_v24 = vld [vmem:[#allocation4 + $0x11c8] sm:$0xff] }
 0xcc1   :  { %15889 = vmatpush3.bf16.msra.mxu0 %v15886_v59  ;;  %14609 = vmatprep.mubr.msk.f32.mxu0 %vm1067_vm3, %v9260_v27  ;;  %v15914_v47 = vpack.c.bf16 %v10354_v31, %v10353_v24  ;;  %v11432_v24 = vld [vmem:[#allocation4 + $0x1288] sm:$0xff]  ;;  %v11433_v31 = vld [vmem:[#allocation4 + $0x1290] sm:$0xff] }
 0xcc2   :  { %15891 = vmatprep.subr.bf16.mxu0 %v15890_v32 }
 0xcc4   :  { %14610 = vmatmul.mubr.msk.f32.gmra.mrb[22].mxu0 %vm1067_vm3, %v9696_v17 }
 0xcc5   :  { %15893 = vmatpush3.bf16.msra.mxu0 %v15890_v32  ;;  %14620 = vmatprep.mubr.msk.f32.mxu0 %vm1067_vm3, %v9367_v35  ;;  %v10798_v32 = vld [vmem:[#allocation4 + $0x1228] sm:$0xff] }
 0xcc6   :  { %15895 = vmatprep.subr.bf16.mxu0 %v15894_v19  ;;  %v15934_v30 = vpack.c.bf16 %v10799_v20, %v10798_v32 }
 0xcc8   :  { %14621 = vmatmul.mubr.msk.f32.vlgmr.msra.gmra.mrb[20].mxu0 %vm1067_vm3, %v9368_v23 }
 0xcc9   :  { %15897 = vmatpush3.bf16.msra.mxu0 %v15894_v19  ;;  %14623 = vmatprep.mubr.msk.f32.mxu0 %vm1067_vm3, %v9369_v52  ;;  %v11949_v19 = vld [vmem:[#allocation6 + $0xb] ss:$0 sm:$0xff] }
 0xcca   :  { %15899 = vmatprep.subr.bf16.mxu0 %v15898_v63 }
 0xccc   :  { %14624 = vmatmul.mubr.msk.f32.gmra.mrb[22].mxu0 %vm1067_vm3, %v9805_v1 }
 0xccd   :  { %15901 = vmatpush3.bf16.msra.mxu0 %v15898_v63  ;;  %14634 = vmatprep.mubr.msk.f32.mxu0 %vm1067_vm3, %v17193_v22  ;;  %v15906_v22 = vpack.c.bf16 %v10038_v60, %v10037_v46  ;;  %v11005_v46 = vld [vmem:[#allocation4 + $0x1250] sm:$0xff] }
 0xcce   :  { %15931 = vmatprep.subr.bf16.mxu0 %v15930_v61 }
 0xccf   :  { %15907 = vmatprep.subr.bf16.mxu1 %v15906_v22 }
 0xcd0   :  { %14635 = vmatmul.mubr.msk.f32.vlgmr.msra.gmra.mrb[20].mxu0 %vm1067_vm3, %v17201_v2 }
 0xcd1   :  { %14637 = vmatprep.mubr.msk.f32.mxu0 %vm1067_vm3, %v17199_v0  ;;  %15933 = vmatpush3.bf16.msra.mxu0 %v15930_v61 }
 0xcd2   :  { %15935 = vmatprep.subr.bf16.mxu0 %v15934_v30 }
 0xcd4   :  { %14638 = vmatmul.mubr.msk.f32.gmra.mrb[22].mxu0 %vm1067_vm3, %v17189_v26 }
 0xda3   :  { %v14636_v2 = vpop.f32.mrb[20].mxu0 }
 0xda4   :  { %v17265_v39 = vadd.f32 %v14636_v2, %v11920_v37  ;;  %v9997_v0 = vpop.f32.mrb[21].mxu0 }
 0xda5   :  { %v10025_v8 = vadd.f32 %v11920_v37, %v9997_v0  ;;  %v11111_v0 = vld [vmem:[#allocation4 + $0x1258] sm:$0xff] }
 0xda6   :  { %10030 = vst [vmem:[#allocation3 + $0x18] sm:$0xff] %v17265_v39 }
 0xda7   :  { %10029 = vst [vmem:[#allocation3 + $0x10] sm:$0xff] %v10025_v8  ;;  %v14639_v26 = vpop.f32.mrb[22].mxu0 }
 0xda8   :  { %v10028_v11 = vadd.f32 %v14639_v26, %v11920_v37  ;;  %v10007_v9 = vpop.f32.mrb[23].mxu0 }
 0xda9   :  { %v10027_v7 = vadd.f32 %v11920_v37, %v10007_v9  ;;  %v15938_v37 = vpack.c.bf16 %v11005_v46, %v11004_v48 }
 0xdaa   :  { %10032 = vst [vmem:[#allocation3 + $0x28] sm:$0xff] %v10028_v11 }
 0xdab   :  { %10031 = vst [vmem:[#allocation3 + $0x20] sm:$0xff] %v10027_v7 }
 0xdae   :  { %v10040_v10 = vld [vmem:[#allocation3 + $0xc] sm:$0xff]  ;;  %v17268_v44 = vld [vmem:[#allocation3 + $0x14] sm:$0xff] }
 0xdaf   :  { %14646 = vmatprep.mubr.msk.f32.mxu1 %vm519_vm2, %v10040_v10  ;;  %v10033_v18 = vld [vmem:[#allocation3 + $0xa] sm:$0xff]  ;;  %v10034_v21 = vld [vmem:[#allocation3 + $0x12] sm:$0xff] }
 0xdb0   :  { %14647 = vmatmul.mubr.msk.f32.vlgmr.msra.gmra.mrb[24].mxu1 %vm519_vm2, %v17268_v44  ;;  %v10241_v34 = vld [vmem:[#allocation3 + $0xe] sm:$0xff]  ;;  %v10242_v35 = vld [vmem:[#allocation3 + $0x16] sm:$0xff] }
 0xdb1   :  { %15909 = vmatpush3.bf16.msra.mxu1 %v15906_v22  ;;  %v10460_v28 = vld [vmem:[#allocation3 + $0x2a] sm:$0xff] }
 0xdb2   :  { %v17273_v43 = vld [vmem:[#allocation3 + $0x1c] sm:$0xff]  ;;  %14656 = vmatprep.subr.mxu1 %v10039_v50  ;;  %v17275_v15 = vld [vmem:[#allocation3 + $0x24] sm:$0xff]  ;;  %v10568_v41 = vld [vmem:[#allocation3 + $0x2c] sm:$0xff] }
 0xdb3   :  { %14649 = vmatprep.mubr.msk.f32.mxu1 %vm519_vm2, %v17273_v43  ;;  %v10035_v27 = vld [vmem:[#allocation3 + $0x1a] sm:$0xff]  ;;  %v10036_v13 = vld [vmem:[#allocation3 + $0x22] sm:$0xff]  ;;  %v10676_v59 = vld [vmem:[#allocation3 + $0x2e] sm:$0xff] }
 0xdb4   :  { %14650 = vmatmul.mubr.msk.f32.gmra.mrb[26].mxu1 %vm519_vm2, %v17275_v15  ;;  %v10243_v23 = vld [vmem:[#allocation3 + $0x1e] sm:$0xff]  ;;  %v10244_v52 = vld [vmem:[#allocation3 + $0x26] sm:$0xff] }
 0xdb5   :  { %14657 = vmatpush3.msra.mxu1 %v10039_v50  ;;  %14658 = vmatprep.mubr.msk.f32.mxu1 %vm519_vm2, %v10033_v18  ;;  %v11219_v50 = vld [vmem:[#allocation4 + $0x1270] sm:$0xff]  ;;  %v11325_v18 = vld [vmem:[#allocation4 + $0x1278] sm:$0xff] }
 0xdb6   :  { %15911 = vmatprep.subr.bf16.mxu1 %v15910_v16 }
 0xdb8   :  { %14659 = vmatmul.mubr.msk.f32.vlgmr.msra.gmra.mrb[24].mxu1 %vm519_vm2, %v10034_v21 }
 0xdb9   :  { %15913 = vmatpush3.bf16.msra.mxu1 %v15910_v16  ;;  %14661 = vmatprep.mubr.msk.f32.mxu1 %vm519_vm2, %v10035_v27 }
 0xdba   :  { %14668 = vmatprep.subr.mxu1 %v10247_v40 }
 0xdbc   :  { %14662 = vmatmul.mubr.msk.f32.gmra.mrb[26].mxu1 %vm519_vm2, %v10036_v13 }
 0xdbd   :  { %14669 = vmatpush3.msra.mxu1 %v10247_v40  ;;  %14670 = vmatprep.mubr.msk.f32.mxu1 %vm519_vm2, %v10241_v34  ;;  %v11326_v40 = vld [vmem:[#allocation4 + $0x1280] sm:$0xff] }
 0xdbe   :  { %15915 = vmatprep.subr.bf16.mxu1 %v15914_v47 }
 0xdc0   :  { %14671 = vmatmul.mubr.msk.f32.vlgmr.msra.gmra.mrb[24].mxu1 %vm519_vm2, %v10242_v35 }
 0xdc1   :  { %15917 = vmatpush3.bf16.msra.mxu1 %v15914_v47  ;;  %14673 = vmatprep.mubr.msk.f32.mxu1 %vm519_vm2, %v10243_v23 }
 0xdc2   :  { %14680 = vmatprep.subr.mxu1 %v10355_v42 }
 0xdc4   :  { %14674 = vmatmul.mubr.msk.f32.gmra.mrb[26].mxu1 %vm519_vm2, %v10244_v52 }
 0xdc5   :  { %14681 = vmatpush3.msra.mxu1 %v10355_v42  ;;  %14682 = vmatprep.mubr.msk.f32.mxu1 %vm519_vm2, %v10025_v8  ;;  %v11112_v8 = vld [vmem:[#allocation4 + $0x1260] sm:$0xff] }
 0xdc6   :  { %15919 = vmatprep.subr.bf16.mxu1 %v15918_v51  ;;  %v11978_v42 = vld [vmem:[#allocation6 + $0xc] ss:$0 sm:$0xff] }
 0xdc8   :  { %14683 = vmatmul.mubr.msk.f32.vlgmr.msra.gmra.mrb[24].mxu1 %vm519_vm2, %v17265_v39 }
 0xdc9   :  { %15921 = vmatpush3.bf16.msra.mxu1 %v15918_v51  ;;  %14685 = vmatprep.mubr.msk.f32.mxu1 %vm519_vm2, %v10027_v7 }
 0xdca   :  { %14692 = vmatprep.subr.mxu1 %v10463_v29 }
 0xdcc   :  { %14686 = vmatmul.mubr.msk.f32.gmra.mrb[26].mxu1 %vm519_vm2, %v10028_v11  ;;  %v15942_v11 = vpack.c.bf16 %v11112_v8, %v11111_v0 }
 0xdcd   :  { %14693 = vmatpush3.msra.mxu1 %v10463_v29  ;;  %14694 = vmatprep.mubr.msk.f32.mxu1 %vm519_vm2, %v10034_v21  ;;  %v15950_v21 = vpack.c.bf16 %v11326_v40, %v11325_v18 }
 0xdce   :  { %15923 = vmatprep.subr.bf16.mxu1 %v15922_v57 }
 0xdd0   :  { %14695 = vmatmul.mubr.msk.f32.vlgmr.msra.gmra.mrb[24].mxu1 %vm519_vm2, %v10035_v27  ;;  %v15954_v27 = vpack.c.bf16 %v11433_v31, %v11432_v24 }
 0xdd1   :  { %15925 = vmatpush3.bf16.msra.mxu1 %v15922_v57  ;;  %14697 = vmatprep.mubr.msk.f32.mxu1 %vm519_vm2, %v10036_v13 }
 0xdd2   :  { %14704 = vmatprep.subr.mxu1 %v10571_v25 }
 0xdd4   :  { %14698 = vmatmul.mubr.msk.f32.gmra.mrb[26].mxu1 %vm519_vm2, %v10460_v28 }
 0xdd5   :  { %14705 = vmatpush3.msra.mxu1 %v10571_v25  ;;  %14706 = vmatprep.mubr.msk.f32.mxu1 %vm519_vm2, %v17268_v44  ;;  %v11218_v44 = vld [vmem:[#allocation4 + $0x1268] sm:$0xff] }
 0xdd6   :  { %15927 = vmatprep.subr.bf16.mxu1 %v15926_v38  ;;  %v15946_v12 = vpack.c.bf16 %v11219_v50, %v11218_v44 }
 0xdd8   :  { %14707 = vmatmul.mubr.msk.f32.vlgmr.msra.gmra.mrb[24].mxu1 %vm519_vm2, %v17273_v43 }
 0xdd9   :  { %15929 = vmatpush3.bf16.msra.mxu1 %v15926_v38  ;;  %14709 = vmatprep.mubr.msk.f32.mxu1 %vm519_vm2, %v17275_v15 }
 0xdda   :  { %14716 = vmatprep.subr.mxu1 %v10679_v58 }
 0xddc   :  { %14710 = vmatmul.mubr.msk.f32.gmra.mrb[26].mxu1 %vm519_vm2, %v10568_v41 }
 0xddd   :  { %14717 = vmatpush3.msra.mxu1 %v10679_v58  ;;  %14718 = vmatprep.mubr.msk.f32.mxu1 %vm519_vm2, %v10242_v35 }
 0xde0   :  { %14719 = vmatmul.mubr.msk.f32.vlgmr.msra.gmra.mrb[24].mxu1 %vm519_vm2, %v10243_v23 }
 0xde1   :  { %14721 = vmatprep.mubr.msk.f32.mxu1 %vm519_vm2, %v10244_v52 }
 0xde4   :  { %14722 = vmatmul.mubr.msk.f32.gmra.mrb[26].mxu1 %vm519_vm2, %v10676_v59 }
 0xeb3   :  { %v14720_v17 = vpop.f32.mrb[24].mxu1 }
 0xeb4   :  { %v10787_v6 = vadd.f32 %v14720_v17, %v11949_v19  ;;  %v10758_v36 = vpop.f32.mrb[25].mxu1 }
 0xeb5   :  { %v10786_v63 = vadd.f32 %v11949_v19, %v10758_v36 }
 0xeb6   :  { %10791 = vst [vmem:[#allocation2 + $0x18] sm:$0xff] %v10787_v6 }
 0xeb7   :  { %10790 = vst [vmem:[#allocation2 + $0x10] sm:$0xff] %v10786_v63  ;;  %v14723_v1 = vpop.f32.mrb[26].mxu1 }
 0xeb8   :  { %v10789_v3 = vadd.f32 %v14723_v1, %v11949_v19  ;;  %v10768_v4 = vpop.f32.mrb[27].mxu1 }
 0xeb9   :  { %v10788_v5 = vadd.f32 %v11949_v19, %v10768_v4 }
 0xeba   :  { %10793 = vst [vmem:[#allocation2 + $0x28] sm:$0xff] %v10789_v3 }
 0xebb   :  { %10792 = vst [vmem:[#allocation2 + $0x20] sm:$0xff] %v10788_v5 }
 0xebe   :  { %v10800_v60 = vld [vmem:[#allocation2 + $0xc] sm:$0xff]  ;;  %v10801_v22 = vld [vmem:[#allocation2 + $0x14] sm:$0xff] }
 0xebf   :  { %14728 = vmatprep.mubr.msk.f32.mxu0 %vm190_vm1, %v10800_v60  ;;  %v10794_v26 = vld [vmem:[#allocation2 + $0xa] sm:$0xff]  ;;  %v10795_v9 = vld [vmem:[#allocation2 + $0x12] sm:$0xff] }
 0xec0   :  { %14729 = vmatmul.mubr.msk.f32.vlgmr.msra.gmra.mrb[24].mxu0 %vm190_vm1, %v10801_v22  ;;  %v11000_v62 = vld [vmem:[#allocation2 + $0xe] sm:$0xff]  ;;  %v11001_v43 = vld [vmem:[#allocation2 + $0x16] sm:$0xff] }
 0xec1   :  { %15937 = vmatpush3.bf16.msra.mxu0 %v15934_v30  ;;  %v11217_v47 = vld [vmem:[#allocation2 + $0x2a] sm:$0xff] }
 0xec2   :  { %v10802_v2 = vld [vmem:[#allocation2 + $0x1c] sm:$0xff]  ;;  %v10803_v39 = vld [vmem:[#allocation2 + $0x24] sm:$0xff]  ;;  %15939 = vmatprep.subr.bf16.mxu0 %v15938_v37  ;;  %v11324_v13 = vld [vmem:[#allocation2 + $0x2c] sm:$0xff] }
 0xec3   :  { %14731 = vmatprep.mubr.msk.f32.mxu0 %vm190_vm1, %v10802_v2  ;;  %v10796_v7 = vld [vmem:[#allocation2 + $0x1a] sm:$0xff]  ;;  %v10797_v10 = vld [vmem:[#allocation2 + $0x22] sm:$0xff]  ;;  %v11431_v34 = vld [vmem:[#allocation2 + $0x2e] sm:$0xff] }
 0xec4   :  { %14732 = vmatmul.mubr.msk.f32.gmra.mrb[26].mxu0 %vm190_vm1, %v10803_v39  ;;  %v11002_v15 = vld [vmem:[#allocation2 + $0x1e] sm:$0xff]  ;;  %v11003_v16 = vld [vmem:[#allocation2 + $0x26] sm:$0xff] }
 0xec5   :  { %14738 = vmatprep.mubr.msk.f32.mxu0 %vm190_vm1, %v10794_v26 }
 0xec8   :  { %14739 = vmatmul.mubr.msk.f32.vlgmr.msra.gmra.mrb[24].mxu0 %vm190_vm1, %v10795_v9 }
 0xec9   :  { %15941 = vmatpush3.bf16.msra.mxu0 %v15938_v37  ;;  %14741 = vmatprep.mubr.msk.f32.mxu0 %vm190_vm1, %v10796_v7 }
 0xeca   :  { %15943 = vmatprep.subr.bf16.mxu0 %v15942_v11 }
 0xecc   :  { %14742 = vmatmul.mubr.msk.f32.gmra.mrb[26].mxu0 %vm190_vm1, %v10797_v10 }
 0xecd   :  { %14748 = vmatprep.mubr.msk.f32.mxu0 %vm190_vm1, %v11000_v62 }
 0xed0   :  { %14749 = vmatmul.mubr.msk.f32.vlgmr.msra.gmra.mrb[24].mxu0 %vm190_vm1, %v11001_v43 }
 0xed1   :  { %15945 = vmatpush3.bf16.msra.mxu0 %v15942_v11  ;;  %14751 = vmatprep.mubr.msk.f32.mxu0 %vm190_vm1, %v11002_v15 }
 0xed2   :  { %15947 = vmatprep.subr.bf16.mxu0 %v15946_v12 }
 0xed4   :  { %14752 = vmatmul.mubr.msk.f32.gmra.mrb[26].mxu0 %vm190_vm1, %v11003_v16 }
 0xed5   :  { %14758 = vmatprep.mubr.msk.f32.mxu0 %vm190_vm1, %v10786_v63 }
 0xed8   :  { %14759 = vmatmul.mubr.msk.f32.vlgmr.msra.gmra.mrb[24].mxu0 %vm190_vm1, %v10787_v6 }
 0xed9   :  { %15949 = vmatpush3.bf16.msra.mxu0 %v15946_v12  ;;  %14761 = vmatprep.mubr.msk.f32.mxu0 %vm190_vm1, %v10788_v5 }
 0xeda   :  { %15951 = vmatprep.subr.bf16.mxu0 %v15950_v21 }
 0xedc   :  { %14762 = vmatmul.mubr.msk.f32.gmra.mrb[26].mxu0 %vm190_vm1, %v10789_v3 }
 0xedd   :  { %14768 = vmatprep.mubr.msk.f32.mxu0 %vm190_vm1, %v10795_v9 }
 0xee0   :  { %14769 = vmatmul.mubr.msk.f32.vlgmr.msra.gmra.mrb[24].mxu0 %vm190_vm1, %v10796_v7 }
 0xee1   :  { %15953 = vmatpush3.bf16.msra.mxu0 %v15950_v21  ;;  %14771 = vmatprep.mubr.msk.f32.mxu0 %vm190_vm1, %v10797_v10 }
 0xee2   :  { %15955 = vmatprep.subr.bf16.mxu0 %v15954_v27 }
 0xee4   :  { %14772 = vmatmul.mubr.msk.f32.gmra.mrb[26].mxu0 %vm190_vm1, %v11217_v47 }
 0xee5   :  { %14778 = vmatprep.mubr.msk.f32.mxu0 %vm190_vm1, %v10801_v22 }
 0xee8   :  { %14779 = vmatmul.mubr.msk.f32.vlgmr.msra.gmra.mrb[24].mxu0 %vm190_vm1, %v10802_v2 }
 0xee9   :  { %15957 = vmatpush3.bf16.msra.mxu0 %v15954_v27  ;;  %14781 = vmatprep.mubr.msk.f32.mxu0 %vm190_vm1, %v10803_v39 }
 0xeec   :  { %14782 = vmatmul.mubr.msk.f32.gmra.mrb[26].mxu0 %vm190_vm1, %v11324_v13 }
 0xeed   :  { %14788 = vmatprep.mubr.msk.f32.mxu0 %vm190_vm1, %v11001_v43 }
 0xef0   :  { %14789 = vmatmul.mubr.msk.f32.vlgmr.msra.gmra.mrb[24].mxu0 %vm190_vm1, %v11002_v15 }
 0xef1   :  { %14791 = vmatprep.mubr.msk.f32.mxu0 %vm190_vm1, %v11003_v16 }
 0xef4   :  { %14792 = vmatmul.mubr.msk.f32.gmra.mrb[26].mxu0 %vm190_vm1, %v11431_v34 }
 0xfc3   :  { %v14790_v35 = vpop.f32.mrb[24].mxu0 }
 0xfc4   :  { %v11541_v45 = vadd.f32 %v14790_v35, %v11978_v42  ;;  %v11512_v49 = vpop.f32.mrb[25].mxu0 }
 0xfc5   :  { %v11540_v23 = vadd.f32 %v11978_v42, %v11512_v49 }
 0xfc6   :  { %11545 = vst [vmem:[%s17352_s3 + $0x8] sm:$0xff] %v11541_v45 }
 0xfc7   :  { %11544 = vst [vmem:[%s17352_s3] sm:$0xff] %v11540_v23  ;;  %v14793_v51 = vpop.f32.mrb[26].mxu0 }
 0xfc8   :  { %v11543_v52 = vadd.f32 %v14793_v51, %v11978_v42  ;;  %v11522_v29 = vpop.f32.mrb[27].mxu0 }
 0xfc9   :  { %v11542_v53 = vadd.f32 %v11978_v42, %v11522_v29 }
 0xfca   :  { %11547 = vst [vmem:[%s17352_s3 + $0x18] sm:$0xff] %v11543_v52 }
 0xfcb   :  { %11546 = vst [vmem:[%s17352_s3 + $0x10] sm:$0xff] %v11542_v53 }
 0xfcc   :  { %11552 = vsyncpa [#allocation5], 1 }
 0xfcd   :  { %11553 = vsyncpa [#allocation7], 1 }

</bundles_post_ra>
